<compile_context>
chip_gen: v6e
topology: v6e:2x2x1
jax: 0.10.0
libtpu: 0.0.40
codegen_flags: <defaults>
</compile_context>

<pallas_src>
import jax
import jax.numpy as jnp
from jax.experimental import pallas as pl
from jax.experimental.pallas import tpu as pltpu

# ----------------------------- hyper parameters -----------------------------
INPUT_DIM = 32      # input_dim
FC_DIM    = 32      # fc_dim
LOWD_DIM  = 16      # lowD_dim
N_CAT     = 8       # n_categories
STATE_DIM = 4       # state_dim
N_ARM     = 2       # n_arm
BATCH     = 8
TAU       = 1.0 / N_CAT
TEMP      = 1.0
EPS       = 1e-8    # model eps
LN_EPS    = 1e-5    # nn.LayerNorm default eps
LANE      = 128     # lane width of the packed parameter slabs

# ----------------------- packed parameter slab layouts -----------------------
# Weight slab: name -> (row_offset, fan_in, fan_out); stacked along rows,
# zero-padded to 128 lanes.  "wmusig" = [wmu | wsig], "w11x" = [w11|w11p|w11r].
def _build_w_layout():
    defs = [
        ("w1", INPUT_DIM, FC_DIM),
        ("w2", FC_DIM, FC_DIM),
        ("w3", FC_DIM, FC_DIM),
        ("w4", FC_DIM, FC_DIM),
        ("w5", FC_DIM, LOWD_DIM),
        ("wc", LOWD_DIM, N_CAT),
        ("wmusig", LOWD_DIM + N_CAT, 2 * STATE_DIM),
        ("w6", STATE_DIM + N_CAT, LOWD_DIM),
        ("w7", LOWD_DIM, FC_DIM),
        ("w8", FC_DIM, FC_DIM),
        ("w9", FC_DIM, FC_DIM),
        ("w10", FC_DIM, FC_DIM),
        ("w11x", FC_DIM, 3 * INPUT_DIM),
    ]
    layout, off = {}, 0
    for name, fi, fo in defs:
        layout[name] = (off, fi, fo)
        off += fi
    rows = ((off + 7) // 8) * 8
    return layout, rows


W_LAYOUT, W_ROWS = _build_w_layout()

# Vector slab (biases + LayerNorm affine): name -> (row, dim); one row each.
def _build_v_layout():
    defs = [
        ("b1", FC_DIM), ("ln1_g", FC_DIM), ("ln1_b", FC_DIM),
        ("b2", FC_DIM), ("ln2_g", FC_DIM), ("ln2_b", FC_DIM),
        ("b3", FC_DIM), ("ln3_g", FC_DIM), ("ln3_b", FC_DIM),
        ("b4", FC_DIM), ("ln4_g", FC_DIM), ("ln4_b", FC_DIM),
        ("b5", LOWD_DIM), ("ln5_g", LOWD_DIM), ("ln5_b", LOWD_DIM),
        ("bc", N_CAT),
        ("bmusig", 2 * STATE_DIM),
        ("b6", LOWD_DIM), ("b7", FC_DIM), ("b8", FC_DIM),
        ("b9", FC_DIM), ("b10", FC_DIM),
        ("b11x", 3 * INPUT_DIM),
    ]
    layout = {name: (i, d) for i, (name, d) in enumerate(defs)}
    rows = ((len(defs) + 7) // 8) * 8
    return layout, rows


V_LAYOUT, V_ROWS = _build_v_layout()

# Fused output slab: order + widths (unpacked in the wrapper).
OUT_SEGMENTS = [
    ("recon_x", INPUT_DIM), ("zinb_pi", INPUT_DIM), ("zinb_r", INPUT_DIM),
    ("x_low", LOWD_DIM), ("qc", N_CAT), ("s", STATE_DIM), ("c", N_CAT),
    ("mu", STATE_DIM), ("log_var", STATE_DIM), ("log_qc", N_CAT),
]
OUT_W = sum(d for _, d in OUT_SEGMENTS)   # 148


# --------------------------------- kernel -----------------------------------
def cpl_mixvae_kernel(x_ref, u_ref, nz_ref, w_ref, v_ref, out_ref):
    f32 = jnp.float32
    relu = lambda h: jnp.maximum(h, 0.0)
    sigmoid = jax.nn.sigmoid

    def softmax(z):
        z = z - jnp.max(z, axis=-1, keepdims=True)
        e = jnp.exp(z)
        return e * pl.reciprocal(jnp.sum(e, axis=-1, keepdims=True), approx=True)

    # Static unroll over arms: two independent dependency chains in one body.
    for arm in range(N_ARM):

        def get_w(name):
            off, fi, fo = W_LAYOUT[name]
            return w_ref[arm, off:off + fi, :fo]          # static view, (fi, fo)

        def get_v(name):
            row, d = V_LAYOUT[name]
            return v_ref[arm, row:row + 1, :d]            # (1, d), broadcasts over batch

        def lin(h, wn, bn):
            return jnp.dot(h, get_w(wn), preferred_element_type=f32) + get_v(bn)

        def layernorm(h, gn, bn):
            # E[x] and E[x^2] as two independent lane reductions.
            m = jnp.mean(h, axis=-1, keepdims=True)
            m2 = jnp.mean(h * h, axis=-1, keepdims=True)
            v = m2 - m * m                                 # biased var, as in torch LN
            return (h - m) * jax.lax.rsqrt(v + LN_EPS) * get_v(gn) + get_v(bn)

        x = x_ref[arm]                                     # (B, INPUT_DIM)

        # ------------------------------ encoder ------------------------------
        # x_dp dropout == identity (eval / p=0)
        h = layernorm(relu(lin(x, "w1", "b1")), "ln1_g", "ln1_b")
        h = layernorm(relu(lin(h, "w2", "b2")), "ln2_g", "ln2_b")
        h = layernorm(relu(lin(h, "w3", "b3")), "ln3_g", "ln3_b")
        h = layernorm(relu(lin(h, "w4", "b4")), "ln4_g", "ln4_b")
        x_low = layernorm(relu(lin(h, "w5", "b5")), "ln5_g", "ln5_b")   # (B, LOWD_DIM)
        log_qc = softmax(lin(x_low, "wc", "bc"))                        # (B, N_CAT)

        # ------------------ categorical / Gumbel-softmax ---------------------
        qc = softmax(log_qc * float(N_CAT))                # == softmax(log_qc / tau)
        u = u_ref[arm]                                     # (B, N_CAT)
        gumbel = -jnp.log(-jnp.log(u + EPS) + EPS)
        c = softmax((jnp.log(qc + EPS) + gumbel) * (1.0 / TEMP))   # hard=False sample
        # TODO(synk): straight-through hard one-hot branch (hard=True / eval=True)
        # and categorical masking (mask=...) not exercised here.

        # ------------- intermed: fused Linear([x_low, c]) -> mu|sigma --------
        y = jnp.concatenate([x_low, c], axis=-1)           # (B, LOWD_DIM + N_CAT)
        musig = lin(y, "wmusig", "bmusig")                 # (B, 2*STATE_DIM)
        mu = musig[:, :STATE_DIM]
        var = sigmoid(musig[:, STATE_DIM:])
        log_var = jnp.log(var + EPS)
        std = jnp.sqrt(var + EPS)                          # == sqrt(exp(log_var))
        s = nz_ref[arm] * std + mu                         # reparam trick

        # ------------------------------ decoder ------------------------------
        # s_dp dropout == identity; z = cat([c, s])
        z = jnp.concatenate([c, s], axis=-1)               # (B, N_CAT + STATE_DIM)
        h = relu(lin(z, "w6", "b6"))
        h = relu(lin(h, "w7", "b7"))
        h = relu(lin(h, "w8", "b8"))
        h = relu(lin(h, "w9", "b9"))
        h = relu(lin(h, "w10", "b10"))
        heads = lin(h, "w11x", "b11x")                     # fused recon|pi|r, (B, 96)
        recon = relu(heads[:, :INPUT_DIM])
        zinb_pi = sigmoid(heads[:, INPUT_DIM:2 * INPUT_DIM])
        zinb_r = sigmoid(heads[:, 2 * INPUT_DIM:])

        # ---------------------- fused lane-dense output ----------------------
        off = 0
        for arr in (recon, zinb_pi, zinb_r, x_low, qc, s, c, mu, log_var, log_qc):
            d = arr.shape[-1]
            out_ref[arm, :, off:off + d] = arr
            off += d


# ------------------------------- host wrapper --------------------------------
def pack_params(params):
    """Pack the 42 named parameters into two lane-dense slabs per arm."""
    fused = dict(params)
    fused["wmusig"] = jnp.concatenate([params["wmu"], params["wsig"]], axis=-1)
    fused["w11x"] = jnp.concatenate(
        [params["w11"], params["w11p"], params["w11r"]], axis=-1)
    fused["bmusig"] = jnp.concatenate([params["bmu"], params["bsig"]], axis=-1)
    fused["b11x"] = jnp.concatenate(
        [params["b11"], params["b11p"], params["b11r"]], axis=-1)

    w_slab = jnp.zeros((N_ARM, W_ROWS, LANE), jnp.float32)
    for name, (off, fi, fo) in W_LAYOUT.items():
        w_slab = w_slab.at[:, off:off + fi, :fo].set(fused[name])

    v_slab = jnp.zeros((N_ARM, V_ROWS, LANE), jnp.float32)
    for name, (row, d) in V_LAYOUT.items():
        v_slab = v_slab.at[:, row, :d].set(fused[name])
    return w_slab, v_slab


def cpl_mixvae_forward(x, gumbel_u, normal_eps, w_slab, v_slab):
    inputs = [x, gumbel_u, normal_eps, w_slab, v_slab]
    in_specs = [pl.BlockSpec(a.shape, lambda i, _nd=a.ndim: (0,) * _nd)
                for a in inputs]
    out_shape = jax.ShapeDtypeStruct((N_ARM, BATCH, OUT_W), jnp.float32)
    out_specs = pl.BlockSpec((N_ARM, BATCH, OUT_W), lambda i: (0, 0, 0))

    matmul_flops = 2 * N_ARM * BATCH * sum(
        fi * fo for (_, fi, fo) in W_LAYOUT.values())
    bytes_accessed = 4 * (sum(a.size for a in inputs) + N_ARM * BATCH * OUT_W)
    cost = pl.CostEstimate(flops=matmul_flops,
                           transcendentals=N_ARM * BATCH * 256,
                           bytes_accessed=bytes_accessed)

    packed = pl.pallas_call(
        cpl_mixvae_kernel,
        grid=(1,),
        in_specs=in_specs,
        out_specs=out_specs,
        out_shape=out_shape,
        cost_estimate=cost,
        compiler_params=pltpu.CompilerParams(
            dimension_semantics=("arbitrary",)),
    )(*inputs)

    # Unpack the fused output slab into the 10 named outputs (plain JAX slices).
    outs, off = [], 0
    for _, d in OUT_SEGMENTS:
        outs.append(packed[:, :, off:off + d])
        off += d
    return tuple(outs)


# ---------------------------- deterministic init -----------------------------
def init_params(key):
    params = {}

    def linear(k, fan_in, fan_out, wname, bname):
        lim = 1.0 / float(fan_in) ** 0.5
        kw, kb = jax.random.split(k)
        params[wname] = jax.random.uniform(kw, (N_ARM, fan_in, fan_out),
                                           jnp.float32, -lim, lim)
        params[bname] = jax.random.uniform(kb, (N_ARM, fan_out),
                                           jnp.float32, -lim, lim)

    layer_defs = [
        ("w1", "b1", INPUT_DIM, FC_DIM),
        ("w2", "b2", FC_DIM, FC_DIM),
        ("w3", "b3", FC_DIM, FC_DIM),
        ("w4", "b4", FC_DIM, FC_DIM),
        ("w5", "b5", FC_DIM, LOWD_DIM),
        ("wc", "bc", LOWD_DIM, N_CAT),
        ("wmu", "bmu", LOWD_DIM + N_CAT, STATE_DIM),
        ("wsig", "bsig", LOWD_DIM + N_CAT, STATE_DIM),
        ("w6", "b6", STATE_DIM + N_CAT, LOWD_DIM),
        ("w7", "b7", LOWD_DIM, FC_DIM),
        ("w8", "b8", FC_DIM, FC_DIM),
        ("w9", "b9", FC_DIM, FC_DIM),
        ("w10", "b10", FC_DIM, FC_DIM),
        ("w11", "b11", FC_DIM, INPUT_DIM),
        ("w11p", "b11p", FC_DIM, INPUT_DIM),
        ("w11r", "b11r", FC_DIM, INPUT_DIM),
    ]
    keys = jax.random.split(key, len(layer_defs))
    for k, (wn, bn, fi, fo) in zip(keys, layer_defs):
        linear(k, fi, fo, wn, bn)

    # LayerNorm affine params: gamma=1, beta=0 (nn.LayerNorm default init)
    for i, dim in zip(range(1, 6), [FC_DIM, FC_DIM, FC_DIM, FC_DIM, LOWD_DIM]):
        params[f"ln{i}_g"] = jnp.ones((N_ARM, dim), jnp.float32)
        params[f"ln{i}_b"] = jnp.zeros((N_ARM, dim), jnp.float32)
    return params


# ----------------------------------- main ------------------------------------
if __name__ == "__main__":
    root = jax.random.PRNGKey(0)
    k_param, k_x, k_u, k_n = jax.random.split(root, 4)

    params = init_params(k_param)
    w_slab, v_slab = pack_params(params)

    # x is a list of per-arm batches in the torch module -> stacked on arm axis
    x = jax.random.normal(k_x, (N_ARM, BATCH, INPUT_DIM), jnp.float32)
    gumbel_u = jax.random.uniform(k_u, (N_ARM, BATCH, N_CAT), jnp.float32)
    normal_eps = jax.random.normal(k_n, (N_ARM, BATCH, STATE_DIM), jnp.float32)

    outs = cpl_mixvae_forward(x, gumbel_u, normal_eps, w_slab, v_slab)
    outs = jax.block_until_ready(outs)

    names = [n for n, _ in OUT_SEGMENTS]
    for name, o in zip(names, outs):
        assert bool(jnp.all(jnp.isfinite(o))), f"non-finite output in {name}"

    # qc and c are softmax outputs: rows must sum to ~1
    # (tolerance loosened slightly: softmax uses EUP approx reciprocal)
    assert bool(jnp.allclose(jnp.sum(outs[4], axis=-1), 1.0, atol=1e-2))
    assert bool(jnp.allclose(jnp.sum(outs[6], axis=-1), 1.0, atol=1e-2))

    print("KERNEL_OK")
</pallas_src>

<mosaic_0001>
module attributes {stable_mosaic.version = 11 : i64} {
  func.func @cpl_mixvae_kernel(%arg0: i32, %arg1: memref<2x8x32xf32, #tpu.memory_space<vmem>>, %arg2: memref<2x8x8xf32, #tpu.memory_space<vmem>>, %arg3: memref<2x8x4xf32, #tpu.memory_space<vmem>>, %arg4: memref<2x360x128xf32, #tpu.memory_space<vmem>>, %arg5: memref<2x24x128xf32, #tpu.memory_space<vmem>>, %arg6: memref<2x8x148xf32, #tpu.memory_space<vmem>>) attributes {dimension_semantics = [#tpu.dimension_semantics<arbitrary>], iteration_bounds = array<i64: 1>, scalar_prefetch = 0 : i64, scratch_operands = 0 : i64, tpu.core_type = #tpu.core_type<tc>, window_params = [{pipeline_mode = #tpu.pipeline_mode<synchronous>, transform_indices = @transform_0, window_bounds = array<i64: 2, 8, 32>}, {pipeline_mode = #tpu.pipeline_mode<synchronous>, transform_indices = @transform_1, window_bounds = array<i64: 2, 8, 8>}, {pipeline_mode = #tpu.pipeline_mode<synchronous>, transform_indices = @transform_2, window_bounds = array<i64: 2, 8, 4>}, {pipeline_mode = #tpu.pipeline_mode<synchronous>, transform_indices = @transform_3, window_bounds = array<i64: 2, 360, 128>}, {pipeline_mode = #tpu.pipeline_mode<synchronous>, transform_indices = @transform_4, window_bounds = array<i64: 2, 24, 128>}, {pipeline_mode = #tpu.pipeline_mode<synchronous>, transform_indices = @transform_5, window_bounds = array<i64: 2, 8, 148>}]} {
    %c0 = arith.constant 0 : index
    %c0_0 = arith.constant 0 : index
    %c0_1 = arith.constant 0 : index
    %0 = vector.load %arg1[%c0, %c0_0, %c0_1] : memref<2x8x32xf32, #tpu.memory_space<vmem>>, vector<1x8x32xf32>
    %1 = vector.shape_cast %0 : vector<1x8x32xf32> to vector<8x32xf32>
    %c0_2 = arith.constant 0 : index
    %c0_3 = arith.constant 0 : index
    %c0_4 = arith.constant 0 : index
    %2 = vector.load %arg4[%c0_2, %c0_3, %c0_4] : memref<2x360x128xf32, #tpu.memory_space<vmem>>, vector<1x32x32xf32>
    %3 = vector.shape_cast %2 : vector<1x32x32xf32> to vector<32x32xf32>
    %cst = arith.constant dense<0.000000e+00> : vector<8x32xf32>
    %4 = tpu.matmul %1, %3, %cst {dimension_numbers = #tpu.dot_dimension_numbers<[1], [0], [0], [1], [0, 0, 1, 1], [], []>} : vector<8x32xf32>, vector<32x32xf32>, vector<8x32xf32> -> vector<8x32xf32>
    %c0_5 = arith.constant 0 : index
    %c0_6 = arith.constant 0 : index
    %c0_7 = arith.constant 0 : index
    %5 = vector.load %arg5[%c0_5, %c0_6, %c0_7] : memref<2x24x128xf32, #tpu.memory_space<vmem>>, vector<1x1x32xf32>
    %6 = vector.shape_cast %5 : vector<1x1x32xf32> to vector<1x32xf32>
    %7 = vector.broadcast %6 : vector<1x32xf32> to vector<8x32xf32>
    %8 = arith.addf %4, %7 : vector<8x32xf32>
    %cst_8 = arith.constant 0.000000e+00 : f32
    %9 = vector.broadcast %cst_8 : f32 to vector<8x32xf32>
    %10 = arith.maximumf %8, %9 : vector<8x32xf32>
    %cst_9 = arith.constant dense<0.000000e+00> : vector<8xf32>
    %11 = vector.multi_reduction <add>, %10, %cst_9 [1] : vector<8x32xf32> to vector<8xf32>
    %12 = vector.shape_cast %11 : vector<8xf32> to vector<8x1xf32>
    %cst_10 = arith.constant 3.200000e+01 : f32
    %13 = vector.broadcast %cst_10 : f32 to vector<8x1xf32>
    %14 = arith.divf %12, %13 : vector<8x1xf32>
    %15 = arith.mulf %10, %10 : vector<8x32xf32>
    %cst_11 = arith.constant dense<0.000000e+00> : vector<8xf32>
    %16 = vector.multi_reduction <add>, %15, %cst_11 [1] : vector<8x32xf32> to vector<8xf32>
    %17 = vector.shape_cast %16 : vector<8xf32> to vector<8x1xf32>
    %cst_12 = arith.constant 3.200000e+01 : f32
    %18 = vector.broadcast %cst_12 : f32 to vector<8x1xf32>
    %19 = arith.divf %17, %18 : vector<8x1xf32>
    %20 = arith.mulf %14, %14 : vector<8x1xf32>
    %21 = arith.subf %19, %20 : vector<8x1xf32>
    %22 = vector.broadcast %14 : vector<8x1xf32> to vector<8x32xf32>
    %23 = arith.subf %10, %22 : vector<8x32xf32>
    %cst_13 = arith.constant 9.99999974E-6 : f32
    %24 = vector.broadcast %cst_13 : f32 to vector<8x1xf32>
    %25 = arith.addf %21, %24 : vector<8x1xf32>
    %26 = math.rsqrt %25 : vector<8x1xf32>
    %27 = vector.broadcast %26 : vector<8x1xf32> to vector<8x32xf32>
    %28 = arith.mulf %23, %27 : vector<8x32xf32>
    %c0_14 = arith.constant 0 : index
    %c1 = arith.constant 1 : index
    %c0_15 = arith.constant 0 : index
    %29 = vector.load %arg5[%c0_14, %c1, %c0_15] : memref<2x24x128xf32, #tpu.memory_space<vmem>>, vector<1x1x32xf32>
    %30 = vector.shape_cast %29 : vector<1x1x32xf32> to vector<1x32xf32>
    %31 = vector.broadcast %30 : vector<1x32xf32> to vector<8x32xf32>
    %32 = arith.mulf %28, %31 : vector<8x32xf32>
    %c0_16 = arith.constant 0 : index
    %c2 = arith.constant 2 : index
    %c0_17 = arith.constant 0 : index
    %33 = vector.load %arg5[%c0_16, %c2, %c0_17] : memref<2x24x128xf32, #tpu.memory_space<vmem>>, vector<1x1x32xf32>
    %34 = vector.shape_cast %33 : vector<1x1x32xf32> to vector<1x32xf32>
    %35 = vector.broadcast %34 : vector<1x32xf32> to vector<8x32xf32>
    %36 = arith.addf %32, %35 : vector<8x32xf32>
    %c0_18 = arith.constant 0 : index
    %c32 = arith.constant 32 : index
    %c0_19 = arith.constant 0 : index
    %37 = vector.load %arg4[%c0_18, %c32, %c0_19] : memref<2x360x128xf32, #tpu.memory_space<vmem>>, vector<1x32x32xf32>
    %38 = vector.shape_cast %37 : vector<1x32x32xf32> to vector<32x32xf32>
    %cst_20 = arith.constant dense<0.000000e+00> : vector<8x32xf32>
    %39 = tpu.matmul %36, %38, %cst_20 {dimension_numbers = #tpu.dot_dimension_numbers<[1], [0], [0], [1], [0, 0, 1, 1], [], []>} : vector<8x32xf32>, vector<32x32xf32>, vector<8x32xf32> -> vector<8x32xf32>
    %c0_21 = arith.constant 0 : index
    %c3 = arith.constant 3 : index
    %c0_22 = arith.constant 0 : index
    %40 = vector.load %arg5[%c0_21, %c3, %c0_22] : memref<2x24x128xf32, #tpu.memory_space<vmem>>, vector<1x1x32xf32>
    %41 = vector.shape_cast %40 : vector<1x1x32xf32> to vector<1x32xf32>
    %42 = vector.broadcast %41 : vector<1x32xf32> to vector<8x32xf32>
    %43 = arith.addf %39, %42 : vector<8x32xf32>
    %cst_23 = arith.constant 0.000000e+00 : f32
    %44 = vector.broadcast %cst_23 : f32 to vector<8x32xf32>
    %45 = arith.maximumf %43, %44 : vector<8x32xf32>
    %cst_24 = arith.constant dense<0.000000e+00> : vector<8xf32>
    %46 = vector.multi_reduction <add>, %45, %cst_24 [1] : vector<8x32xf32> to vector<8xf32>
    %47 = vector.shape_cast %46 : vector<8xf32> to vector<8x1xf32>
    %cst_25 = arith.constant 3.200000e+01 : f32
    %48 = vector.broadcast %cst_25 : f32 to vector<8x1xf32>
    %49 = arith.divf %47, %48 : vector<8x1xf32>
    %50 = arith.mulf %45, %45 : vector<8x32xf32>
    %cst_26 = arith.constant dense<0.000000e+00> : vector<8xf32>
    %51 = vector.multi_reduction <add>, %50, %cst_26 [1] : vector<8x32xf32> to vector<8xf32>
    %52 = vector.shape_cast %51 : vector<8xf32> to vector<8x1xf32>
    %cst_27 = arith.constant 3.200000e+01 : f32
    %53 = vector.broadcast %cst_27 : f32 to vector<8x1xf32>
    %54 = arith.divf %52, %53 : vector<8x1xf32>
    %55 = arith.mulf %49, %49 : vector<8x1xf32>
    %56 = arith.subf %54, %55 : vector<8x1xf32>
    %57 = vector.broadcast %49 : vector<8x1xf32> to vector<8x32xf32>
    %58 = arith.subf %45, %57 : vector<8x32xf32>
    %cst_28 = arith.constant 9.99999974E-6 : f32
    %59 = vector.broadcast %cst_28 : f32 to vector<8x1xf32>
    %60 = arith.addf %56, %59 : vector<8x1xf32>
    %61 = math.rsqrt %60 : vector<8x1xf32>
    %62 = vector.broadcast %61 : vector<8x1xf32> to vector<8x32xf32>
    %63 = arith.mulf %58, %62 : vector<8x32xf32>
    %c0_29 = arith.constant 0 : index
    %c4 = arith.constant 4 : index
    %c0_30 = arith.constant 0 : index
    %64 = vector.load %arg5[%c0_29, %c4, %c0_30] : memref<2x24x128xf32, #tpu.memory_space<vmem>>, vector<1x1x32xf32>
    %65 = vector.shape_cast %64 : vector<1x1x32xf32> to vector<1x32xf32>
    %66 = vector.broadcast %65 : vector<1x32xf32> to vector<8x32xf32>
    %67 = arith.mulf %63, %66 : vector<8x32xf32>
    %c0_31 = arith.constant 0 : index
    %c5 = arith.constant 5 : index
    %c0_32 = arith.constant 0 : index
    %68 = vector.load %arg5[%c0_31, %c5, %c0_32] : memref<2x24x128xf32, #tpu.memory_space<vmem>>, vector<1x1x32xf32>
    %69 = vector.shape_cast %68 : vector<1x1x32xf32> to vector<1x32xf32>
    %70 = vector.broadcast %69 : vector<1x32xf32> to vector<8x32xf32>
    %71 = arith.addf %67, %70 : vector<8x32xf32>
    %c0_33 = arith.constant 0 : index
    %c64 = arith.constant 64 : index
    %c0_34 = arith.constant 0 : index
    %72 = vector.load %arg4[%c0_33, %c64, %c0_34] : memref<2x360x128xf32, #tpu.memory_space<vmem>>, vector<1x32x32xf32>
    %73 = vector.shape_cast %72 : vector<1x32x32xf32> to vector<32x32xf32>
    %cst_35 = arith.constant dense<0.000000e+00> : vector<8x32xf32>
    %74 = tpu.matmul %71, %73, %cst_35 {dimension_numbers = #tpu.dot_dimension_numbers<[1], [0], [0], [1], [0, 0, 1, 1], [], []>} : vector<8x32xf32>, vector<32x32xf32>, vector<8x32xf32> -> vector<8x32xf32>
    %c0_36 = arith.constant 0 : index
    %c6 = arith.constant 6 : index
    %c0_37 = arith.constant 0 : index
    %75 = vector.load %arg5[%c0_36, %c6, %c0_37] : memref<2x24x128xf32, #tpu.memory_space<vmem>>, vector<1x1x32xf32>
    %76 = vector.shape_cast %75 : vector<1x1x32xf32> to vector<1x32xf32>
    %77 = vector.broadcast %76 : vector<1x32xf32> to vector<8x32xf32>
    %78 = arith.addf %74, %77 : vector<8x32xf32>
    %cst_38 = arith.constant 0.000000e+00 : f32
    %79 = vector.broadcast %cst_38 : f32 to vector<8x32xf32>
    %80 = arith.maximumf %78, %79 : vector<8x32xf32>
    %cst_39 = arith.constant dense<0.000000e+00> : vector<8xf32>
    %81 = vector.multi_reduction <add>, %80, %cst_39 [1] : vector<8x32xf32> to vector<8xf32>
    %82 = vector.shape_cast %81 : vector<8xf32> to vector<8x1xf32>
    %cst_40 = arith.constant 3.200000e+01 : f32
    %83 = vector.broadcast %cst_40 : f32 to vector<8x1xf32>
    %84 = arith.divf %82, %83 : vector<8x1xf32>
    %85 = arith.mulf %80, %80 : vector<8x32xf32>
    %cst_41 = arith.constant dense<0.000000e+00> : vector<8xf32>
    %86 = vector.multi_reduction <add>, %85, %cst_41 [1] : vector<8x32xf32> to vector<8xf32>
    %87 = vector.shape_cast %86 : vector<8xf32> to vector<8x1xf32>
    %cst_42 = arith.constant 3.200000e+01 : f32
    %88 = vector.broadcast %cst_42 : f32 to vector<8x1xf32>
    %89 = arith.divf %87, %88 : vector<8x1xf32>
    %90 = arith.mulf %84, %84 : vector<8x1xf32>
    %91 = arith.subf %89, %90 : vector<8x1xf32>
    %92 = vector.broadcast %84 : vector<8x1xf32> to vector<8x32xf32>
    %93 = arith.subf %80, %92 : vector<8x32xf32>
    %cst_43 = arith.constant 9.99999974E-6 : f32
    %94 = vector.broadcast %cst_43 : f32 to vector<8x1xf32>
    %95 = arith.addf %91, %94 : vector<8x1xf32>
    %96 = math.rsqrt %95 : vector<8x1xf32>
    %97 = vector.broadcast %96 : vector<8x1xf32> to vector<8x32xf32>
    %98 = arith.mulf %93, %97 : vector<8x32xf32>
    %c0_44 = arith.constant 0 : index
    %c7 = arith.constant 7 : index
    %c0_45 = arith.constant 0 : index
    %99 = vector.load %arg5[%c0_44, %c7, %c0_45] : memref<2x24x128xf32, #tpu.memory_space<vmem>>, vector<1x1x32xf32>
    %100 = vector.shape_cast %99 : vector<1x1x32xf32> to vector<1x32xf32>
    %101 = vector.broadcast %100 : vector<1x32xf32> to vector<8x32xf32>
    %102 = arith.mulf %98, %101 : vector<8x32xf32>
    %c0_46 = arith.constant 0 : index
    %c8 = arith.constant 8 : index
    %c0_47 = arith.constant 0 : index
    %103 = vector.load %arg5[%c0_46, %c8, %c0_47] : memref<2x24x128xf32, #tpu.memory_space<vmem>>, vector<1x1x32xf32>
    %104 = vector.shape_cast %103 : vector<1x1x32xf32> to vector<1x32xf32>
    %105 = vector.broadcast %104 : vector<1x32xf32> to vector<8x32xf32>
    %106 = arith.addf %102, %105 : vector<8x32xf32>
    %c0_48 = arith.constant 0 : index
    %c96 = arith.constant 96 : index
    %c0_49 = arith.constant 0 : index
    %107 = vector.load %arg4[%c0_48, %c96, %c0_49] : memref<2x360x128xf32, #tpu.memory_space<vmem>>, vector<1x32x32xf32>
    %108 = vector.shape_cast %107 : vector<1x32x32xf32> to vector<32x32xf32>
    %cst_50 = arith.constant dense<0.000000e+00> : vector<8x32xf32>
    %109 = tpu.matmul %106, %108, %cst_50 {dimension_numbers = #tpu.dot_dimension_numbers<[1], [0], [0], [1], [0, 0, 1, 1], [], []>} : vector<8x32xf32>, vector<32x32xf32>, vector<8x32xf32> -> vector<8x32xf32>
    %c0_51 = arith.constant 0 : index
    %c9 = arith.constant 9 : index
    %c0_52 = arith.constant 0 : index
    %110 = vector.load %arg5[%c0_51, %c9, %c0_52] : memref<2x24x128xf32, #tpu.memory_space<vmem>>, vector<1x1x32xf32>
    %111 = vector.shape_cast %110 : vector<1x1x32xf32> to vector<1x32xf32>
    %112 = vector.broadcast %111 : vector<1x32xf32> to vector<8x32xf32>
    %113 = arith.addf %109, %112 : vector<8x32xf32>
    %cst_53 = arith.constant 0.000000e+00 : f32
    %114 = vector.broadcast %cst_53 : f32 to vector<8x32xf32>
    %115 = arith.maximumf %113, %114 : vector<8x32xf32>
    %cst_54 = arith.constant dense<0.000000e+00> : vector<8xf32>
    %116 = vector.multi_reduction <add>, %115, %cst_54 [1] : vector<8x32xf32> to vector<8xf32>
    %117 = vector.shape_cast %116 : vector<8xf32> to vector<8x1xf32>
    %cst_55 = arith.constant 3.200000e+01 : f32
    %118 = vector.broadcast %cst_55 : f32 to vector<8x1xf32>
    %119 = arith.divf %117, %118 : vector<8x1xf32>
    %120 = arith.mulf %115, %115 : vector<8x32xf32>
    %cst_56 = arith.constant dense<0.000000e+00> : vector<8xf32>
    %121 = vector.multi_reduction <add>, %120, %cst_56 [1] : vector<8x32xf32> to vector<8xf32>
    %122 = vector.shape_cast %121 : vector<8xf32> to vector<8x1xf32>
    %cst_57 = arith.constant 3.200000e+01 : f32
    %123 = vector.broadcast %cst_57 : f32 to vector<8x1xf32>
    %124 = arith.divf %122, %123 : vector<8x1xf32>
    %125 = arith.mulf %119, %119 : vector<8x1xf32>
    %126 = arith.subf %124, %125 : vector<8x1xf32>
    %127 = vector.broadcast %119 : vector<8x1xf32> to vector<8x32xf32>
    %128 = arith.subf %115, %127 : vector<8x32xf32>
    %cst_58 = arith.constant 9.99999974E-6 : f32
    %129 = vector.broadcast %cst_58 : f32 to vector<8x1xf32>
    %130 = arith.addf %126, %129 : vector<8x1xf32>
    %131 = math.rsqrt %130 : vector<8x1xf32>
    %132 = vector.broadcast %131 : vector<8x1xf32> to vector<8x32xf32>
    %133 = arith.mulf %128, %132 : vector<8x32xf32>
    %c0_59 = arith.constant 0 : index
    %c10 = arith.constant 10 : index
    %c0_60 = arith.constant 0 : index
    %134 = vector.load %arg5[%c0_59, %c10, %c0_60] : memref<2x24x128xf32, #tpu.memory_space<vmem>>, vector<1x1x32xf32>
    %135 = vector.shape_cast %134 : vector<1x1x32xf32> to vector<1x32xf32>
    %136 = vector.broadcast %135 : vector<1x32xf32> to vector<8x32xf32>
    %137 = arith.mulf %133, %136 : vector<8x32xf32>
    %c0_61 = arith.constant 0 : index
    %c11 = arith.constant 11 : index
    %c0_62 = arith.constant 0 : index
    %138 = vector.load %arg5[%c0_61, %c11, %c0_62] : memref<2x24x128xf32, #tpu.memory_space<vmem>>, vector<1x1x32xf32>
    %139 = vector.shape_cast %138 : vector<1x1x32xf32> to vector<1x32xf32>
    %140 = vector.broadcast %139 : vector<1x32xf32> to vector<8x32xf32>
    %141 = arith.addf %137, %140 : vector<8x32xf32>
    %c0_63 = arith.constant 0 : index
    %c128 = arith.constant 128 : index
    %c0_64 = arith.constant 0 : index
    %142 = vector.load %arg4[%c0_63, %c128, %c0_64] : memref<2x360x128xf32, #tpu.memory_space<vmem>>, vector<1x32x16xf32>
    %143 = vector.shape_cast %142 : vector<1x32x16xf32> to vector<32x16xf32>
    %cst_65 = arith.constant dense<0.000000e+00> : vector<8x16xf32>
    %144 = tpu.matmul %141, %143, %cst_65 {dimension_numbers = #tpu.dot_dimension_numbers<[1], [0], [0], [1], [0, 0, 1, 1], [], []>} : vector<8x32xf32>, vector<32x16xf32>, vector<8x16xf32> -> vector<8x16xf32>
    %c0_66 = arith.constant 0 : index
    %c12 = arith.constant 12 : index
    %c0_67 = arith.constant 0 : index
    %145 = vector.load %arg5[%c0_66, %c12, %c0_67] : memref<2x24x128xf32, #tpu.memory_space<vmem>>, vector<1x1x16xf32>
    %146 = vector.shape_cast %145 : vector<1x1x16xf32> to vector<1x16xf32>
    %147 = vector.broadcast %146 : vector<1x16xf32> to vector<8x16xf32>
    %148 = arith.addf %144, %147 : vector<8x16xf32>
    %cst_68 = arith.constant 0.000000e+00 : f32
    %149 = vector.broadcast %cst_68 : f32 to vector<8x16xf32>
    %150 = arith.maximumf %148, %149 : vector<8x16xf32>
    %cst_69 = arith.constant dense<0.000000e+00> : vector<8xf32>
    %151 = vector.multi_reduction <add>, %150, %cst_69 [1] : vector<8x16xf32> to vector<8xf32>
    %152 = vector.shape_cast %151 : vector<8xf32> to vector<8x1xf32>
    %cst_70 = arith.constant 1.600000e+01 : f32
    %153 = vector.broadcast %cst_70 : f32 to vector<8x1xf32>
    %154 = arith.divf %152, %153 : vector<8x1xf32>
    %155 = arith.mulf %150, %150 : vector<8x16xf32>
    %cst_71 = arith.constant dense<0.000000e+00> : vector<8xf32>
    %156 = vector.multi_reduction <add>, %155, %cst_71 [1] : vector<8x16xf32> to vector<8xf32>
    %157 = vector.shape_cast %156 : vector<8xf32> to vector<8x1xf32>
    %cst_72 = arith.constant 1.600000e+01 : f32
    %158 = vector.broadcast %cst_72 : f32 to vector<8x1xf32>
    %159 = arith.divf %157, %158 : vector<8x1xf32>
    %160 = arith.mulf %154, %154 : vector<8x1xf32>
    %161 = arith.subf %159, %160 : vector<8x1xf32>
    %162 = vector.broadcast %154 : vector<8x1xf32> to vector<8x16xf32>
    %163 = arith.subf %150, %162 : vector<8x16xf32>
    %cst_73 = arith.constant 9.99999974E-6 : f32
    %164 = vector.broadcast %cst_73 : f32 to vector<8x1xf32>
    %165 = arith.addf %161, %164 : vector<8x1xf32>
    %166 = math.rsqrt %165 : vector<8x1xf32>
    %167 = vector.broadcast %166 : vector<8x1xf32> to vector<8x16xf32>
    %168 = arith.mulf %163, %167 : vector<8x16xf32>
    %c0_74 = arith.constant 0 : index
    %c13 = arith.constant 13 : index
    %c0_75 = arith.constant 0 : index
    %169 = vector.load %arg5[%c0_74, %c13, %c0_75] : memref<2x24x128xf32, #tpu.memory_space<vmem>>, vector<1x1x16xf32>
    %170 = vector.shape_cast %169 : vector<1x1x16xf32> to vector<1x16xf32>
    %171 = vector.broadcast %170 : vector<1x16xf32> to vector<8x16xf32>
    %172 = arith.mulf %168, %171 : vector<8x16xf32>
    %c0_76 = arith.constant 0 : index
    %c14 = arith.constant 14 : index
    %c0_77 = arith.constant 0 : index
    %173 = vector.load %arg5[%c0_76, %c14, %c0_77] : memref<2x24x128xf32, #tpu.memory_space<vmem>>, vector<1x1x16xf32>
    %174 = vector.shape_cast %173 : vector<1x1x16xf32> to vector<1x16xf32>
    %175 = vector.broadcast %174 : vector<1x16xf32> to vector<8x16xf32>
    %176 = arith.addf %172, %175 : vector<8x16xf32>
    %c0_78 = arith.constant 0 : index
    %c160 = arith.constant 160 : index
    %c0_79 = arith.constant 0 : index
    %177 = vector.load %arg4[%c0_78, %c160, %c0_79] : memref<2x360x128xf32, #tpu.memory_space<vmem>>, vector<1x16x8xf32>
    %178 = vector.shape_cast %177 : vector<1x16x8xf32> to vector<16x8xf32>
    %cst_80 = arith.constant dense<0.000000e+00> : vector<8x8xf32>
    %179 = tpu.matmul %176, %178, %cst_80 {dimension_numbers = #tpu.dot_dimension_numbers<[1], [0], [0], [1], [0, 0, 1, 1], [], []>} : vector<8x16xf32>, vector<16x8xf32>, vector<8x8xf32> -> vector<8x8xf32>
    %c0_81 = arith.constant 0 : index
    %c15 = arith.constant 15 : index
    %c0_82 = arith.constant 0 : index
    %180 = vector.load %arg5[%c0_81, %c15, %c0_82] : memref<2x24x128xf32, #tpu.memory_space<vmem>>, vector<1x1x8xf32>
    %181 = vector.shape_cast %180 : vector<1x1x8xf32> to vector<1x8xf32>
    %182 = vector.broadcast %181 : vector<1x8xf32> to vector<8x8xf32>
    %183 = arith.addf %179, %182 : vector<8x8xf32>
    %cst_83 = arith.constant dense<0xFF800000> : vector<8xf32>
    %184 = vector.multi_reduction <maximumf>, %183, %cst_83 [1] : vector<8x8xf32> to vector<8xf32>
    %185 = vector.shape_cast %184 : vector<8xf32> to vector<8x1xf32>
    %186 = vector.broadcast %185 : vector<8x1xf32> to vector<8x8xf32>
    %187 = arith.subf %183, %186 : vector<8x8xf32>
    %188 = math.exp %187 : vector<8x8xf32>
    %cst_84 = arith.constant dense<0.000000e+00> : vector<8xf32>
    %189 = vector.multi_reduction <add>, %188, %cst_84 [1] : vector<8x8xf32> to vector<8xf32>
    %190 = vector.shape_cast %189 : vector<8xf32> to vector<8x1xf32>
    %191 = tpu.reciprocal %190 {approx = true} : vector<8x1xf32> -> vector<8x1xf32>
    %192 = vector.broadcast %191 : vector<8x1xf32> to vector<8x8xf32>
    %193 = arith.mulf %188, %192 : vector<8x8xf32>
    %cst_85 = arith.constant 8.000000e+00 : f32
    %194 = vector.broadcast %cst_85 : f32 to vector<8x8xf32>
    %195 = arith.mulf %193, %194 : vector<8x8xf32>
    %cst_86 = arith.constant dense<0xFF800000> : vector<8xf32>
    %196 = vector.multi_reduction <maximumf>, %195, %cst_86 [1] : vector<8x8xf32> to vector<8xf32>
    %197 = vector.shape_cast %196 : vector<8xf32> to vector<8x1xf32>
    %198 = vector.broadcast %197 : vector<8x1xf32> to vector<8x8xf32>
    %199 = arith.subf %195, %198 : vector<8x8xf32>
    %200 = math.exp %199 : vector<8x8xf32>
    %cst_87 = arith.constant dense<0.000000e+00> : vector<8xf32>
    %201 = vector.multi_reduction <add>, %200, %cst_87 [1] : vector<8x8xf32> to vector<8xf32>
    %202 = vector.shape_cast %201 : vector<8xf32> to vector<8x1xf32>
    %203 = tpu.reciprocal %202 {approx = true} : vector<8x1xf32> -> vector<8x1xf32>
    %204 = vector.broadcast %203 : vector<8x1xf32> to vector<8x8xf32>
    %205 = arith.mulf %200, %204 : vector<8x8xf32>
    %c0_88 = arith.constant 0 : index
    %c0_89 = arith.constant 0 : index
    %c0_90 = arith.constant 0 : index
    %206 = vector.load %arg2[%c0_88, %c0_89, %c0_90] : memref<2x8x8xf32, #tpu.memory_space<vmem>>, vector<1x8x8xf32>
    %207 = vector.shape_cast %206 : vector<1x8x8xf32> to vector<8x8xf32>
    %cst_91 = arith.constant 9.99999993E-9 : f32
    %208 = vector.broadcast %cst_91 : f32 to vector<8x8xf32>
    %209 = arith.addf %207, %208 : vector<8x8xf32>
    %210 = math.log %209 : vector<8x8xf32>
    %cst_92 = arith.constant 0.000000e+00 : f32
    %211 = vector.broadcast %cst_92 : f32 to vector<8x8xf32>
    %212 = arith.subf %211, %210 : vector<8x8xf32>
    %cst_93 = arith.constant 9.99999993E-9 : f32
    %213 = vector.broadcast %cst_93 : f32 to vector<8x8xf32>
    %214 = arith.addf %212, %213 : vector<8x8xf32>
    %215 = math.log %214 : vector<8x8xf32>
    %cst_94 = arith.constant 0.000000e+00 : f32
    %216 = vector.broadcast %cst_94 : f32 to vector<8x8xf32>
    %217 = arith.subf %216, %215 : vector<8x8xf32>
    %cst_95 = arith.constant 9.99999993E-9 : f32
    %218 = vector.broadcast %cst_95 : f32 to vector<8x8xf32>
    %219 = arith.addf %205, %218 : vector<8x8xf32>
    %220 = math.log %219 : vector<8x8xf32>
    %221 = arith.addf %220, %217 : vector<8x8xf32>
    %cst_96 = arith.constant 1.000000e+00 : f32
    %222 = vector.broadcast %cst_96 : f32 to vector<8x8xf32>
    %223 = arith.mulf %221, %222 : vector<8x8xf32>
    %cst_97 = arith.constant dense<0xFF800000> : vector<8xf32>
    %224 = vector.multi_reduction <maximumf>, %223, %cst_97 [1] : vector<8x8xf32> to vector<8xf32>
    %225 = vector.shape_cast %224 : vector<8xf32> to vector<8x1xf32>
    %226 = vector.broadcast %225 : vector<8x1xf32> to vector<8x8xf32>
    %227 = arith.subf %223, %226 : vector<8x8xf32>
    %228 = math.exp %227 : vector<8x8xf32>
    %cst_98 = arith.constant dense<0.000000e+00> : vector<8xf32>
    %229 = vector.multi_reduction <add>, %228, %cst_98 [1] : vector<8x8xf32> to vector<8xf32>
    %230 = vector.shape_cast %229 : vector<8xf32> to vector<8x1xf32>
    %231 = tpu.reciprocal %230 {approx = true} : vector<8x1xf32> -> vector<8x1xf32>
    %232 = vector.broadcast %231 : vector<8x1xf32> to vector<8x8xf32>
    %233 = arith.mulf %228, %232 : vector<8x8xf32>
    %234 = tpu.concatenate %176, %233 in 1 : vector<8x16xf32>, vector<8x8xf32> -> vector<8x24xf32>
    %c0_99 = arith.constant 0 : index
    %c176 = arith.constant 176 : index
    %c0_100 = arith.constant 0 : index
    %235 = vector.load %arg4[%c0_99, %c176, %c0_100] : memref<2x360x128xf32, #tpu.memory_space<vmem>>, vector<1x24x8xf32>
    %236 = vector.shape_cast %235 : vector<1x24x8xf32> to vector<24x8xf32>
    %cst_101 = arith.constant dense<0.000000e+00> : vector<8x8xf32>
    %237 = tpu.matmul %234, %236, %cst_101 {dimension_numbers = #tpu.dot_dimension_numbers<[1], [0], [0], [1], [0, 0, 1, 1], [], []>} : vector<8x24xf32>, vector<24x8xf32>, vector<8x8xf32> -> vector<8x8xf32>
    %c0_102 = arith.constant 0 : index
    %c16 = arith.constant 16 : index
    %c0_103 = arith.constant 0 : index
    %238 = vector.load %arg5[%c0_102, %c16, %c0_103] : memref<2x24x128xf32, #tpu.memory_space<vmem>>, vector<1x1x8xf32>
    %239 = vector.shape_cast %238 : vector<1x1x8xf32> to vector<1x8xf32>
    %240 = vector.broadcast %239 : vector<1x8xf32> to vector<8x8xf32>
    %241 = arith.addf %237, %240 : vector<8x8xf32>
    %242 = vector.extract_strided_slice %241 {offsets = [0, 0], sizes = [8, 4], strides = [1, 1]} : vector<8x8xf32> to vector<8x4xf32>
    %243 = vector.extract_strided_slice %241 {offsets = [0, 4], sizes = [8, 4], strides = [1, 1]} : vector<8x8xf32> to vector<8x4xf32>
    %244 = arith.negf %243 : vector<8x4xf32>
    %245 = math.exp %244 : vector<8x4xf32>
    %cst_104 = arith.constant 1.000000e+00 : f32
    %246 = vector.broadcast %cst_104 : f32 to vector<8x4xf32>
    %247 = arith.addf %246, %245 : vector<8x4xf32>
    %248 = arith.divf %246, %247 : vector<8x4xf32>
    %cst_105 = arith.constant 9.99999993E-9 : f32
    %249 = vector.broadcast %cst_105 : f32 to vector<8x4xf32>
    %250 = arith.addf %248, %249 : vector<8x4xf32>
    %251 = math.log %250 : vector<8x4xf32>
    %cst_106 = arith.constant 9.99999993E-9 : f32
    %252 = vector.broadcast %cst_106 : f32 to vector<8x4xf32>
    %253 = arith.addf %248, %252 : vector<8x4xf32>
    %254 = math.sqrt %253 : vector<8x4xf32>
    %c0_107 = arith.constant 0 : index
    %c0_108 = arith.constant 0 : index
    %c0_109 = arith.constant 0 : index
    %255 = vector.load %arg3[%c0_107, %c0_108, %c0_109] : memref<2x8x4xf32, #tpu.memory_space<vmem>>, vector<1x8x4xf32>
    %256 = vector.shape_cast %255 : vector<1x8x4xf32> to vector<8x4xf32>
    %257 = arith.mulf %256, %254 : vector<8x4xf32>
    %258 = arith.addf %257, %242 : vector<8x4xf32>
    %259 = tpu.concatenate %233, %258 in 1 : vector<8x8xf32>, vector<8x4xf32> -> vector<8x12xf32>
    %c0_110 = arith.constant 0 : index
    %c200 = arith.constant 200 : index
    %c0_111 = arith.constant 0 : index
    %260 = vector.load %arg4[%c0_110, %c200, %c0_111] : memref<2x360x128xf32, #tpu.memory_space<vmem>>, vector<1x12x16xf32>
    %261 = vector.shape_cast %260 : vector<1x12x16xf32> to vector<12x16xf32>
    %cst_112 = arith.constant dense<0.000000e+00> : vector<8x16xf32>
    %262 = tpu.matmul %259, %261, %cst_112 {dimension_numbers = #tpu.dot_dimension_numbers<[1], [0], [0], [1], [0, 0, 1, 1], [], []>} : vector<8x12xf32>, vector<12x16xf32>, vector<8x16xf32> -> vector<8x16xf32>
    %c0_113 = arith.constant 0 : index
    %c17 = arith.constant 17 : index
    %c0_114 = arith.constant 0 : index
    %263 = vector.load %arg5[%c0_113, %c17, %c0_114] : memref<2x24x128xf32, #tpu.memory_space<vmem>>, vector<1x1x16xf32>
    %264 = vector.shape_cast %263 : vector<1x1x16xf32> to vector<1x16xf32>
    %265 = vector.broadcast %264 : vector<1x16xf32> to vector<8x16xf32>
    %266 = arith.addf %262, %265 : vector<8x16xf32>
    %cst_115 = arith.constant 0.000000e+00 : f32
    %267 = vector.broadcast %cst_115 : f32 to vector<8x16xf32>
    %268 = arith.maximumf %266, %267 : vector<8x16xf32>
    %c0_116 = arith.constant 0 : index
    %c212 = arith.constant 212 : index
    %c0_117 = arith.constant 0 : index
    %269 = vector.load %arg4[%c0_116, %c212, %c0_117] : memref<2x360x128xf32, #tpu.memory_space<vmem>>, vector<1x16x32xf32>
    %270 = vector.shape_cast %269 : vector<1x16x32xf32> to vector<16x32xf32>
    %cst_118 = arith.constant dense<0.000000e+00> : vector<8x32xf32>
    %271 = tpu.matmul %268, %270, %cst_118 {dimension_numbers = #tpu.dot_dimension_numbers<[1], [0], [0], [1], [0, 0, 1, 1], [], []>} : vector<8x16xf32>, vector<16x32xf32>, vector<8x32xf32> -> vector<8x32xf32>
    %c0_119 = arith.constant 0 : index
    %c18 = arith.constant 18 : index
    %c0_120 = arith.constant 0 : index
    %272 = vector.load %arg5[%c0_119, %c18, %c0_120] : memref<2x24x128xf32, #tpu.memory_space<vmem>>, vector<1x1x32xf32>
    %273 = vector.shape_cast %272 : vector<1x1x32xf32> to vector<1x32xf32>
    %274 = vector.broadcast %273 : vector<1x32xf32> to vector<8x32xf32>
    %275 = arith.addf %271, %274 : vector<8x32xf32>
    %cst_121 = arith.constant 0.000000e+00 : f32
    %276 = vector.broadcast %cst_121 : f32 to vector<8x32xf32>
    %277 = arith.maximumf %275, %276 : vector<8x32xf32>
    %c0_122 = arith.constant 0 : index
    %c228 = arith.constant 228 : index
    %c0_123 = arith.constant 0 : index
    %278 = vector.load %arg4[%c0_122, %c228, %c0_123] : memref<2x360x128xf32, #tpu.memory_space<vmem>>, vector<1x32x32xf32>
    %279 = vector.shape_cast %278 : vector<1x32x32xf32> to vector<32x32xf32>
    %cst_124 = arith.constant dense<0.000000e+00> : vector<8x32xf32>
    %280 = tpu.matmul %277, %279, %cst_124 {dimension_numbers = #tpu.dot_dimension_numbers<[1], [0], [0], [1], [0, 0, 1, 1], [], []>} : vector<8x32xf32>, vector<32x32xf32>, vector<8x32xf32> -> vector<8x32xf32>
    %c0_125 = arith.constant 0 : index
    %c19 = arith.constant 19 : index
    %c0_126 = arith.constant 0 : index
    %281 = vector.load %arg5[%c0_125, %c19, %c0_126] : memref<2x24x128xf32, #tpu.memory_space<vmem>>, vector<1x1x32xf32>
    %282 = vector.shape_cast %281 : vector<1x1x32xf32> to vector<1x32xf32>
    %283 = vector.broadcast %282 : vector<1x32xf32> to vector<8x32xf32>
    %284 = arith.addf %280, %283 : vector<8x32xf32>
    %cst_127 = arith.constant 0.000000e+00 : f32
    %285 = vector.broadcast %cst_127 : f32 to vector<8x32xf32>
    %286 = arith.maximumf %284, %285 : vector<8x32xf32>
    %c0_128 = arith.constant 0 : index
    %c260 = arith.constant 260 : index
    %c0_129 = arith.constant 0 : index
    %287 = vector.load %arg4[%c0_128, %c260, %c0_129] : memref<2x360x128xf32, #tpu.memory_space<vmem>>, vector<1x32x32xf32>
    %288 = vector.shape_cast %287 : vector<1x32x32xf32> to vector<32x32xf32>
    %cst_130 = arith.constant dense<0.000000e+00> : vector<8x32xf32>
    %289 = tpu.matmul %286, %288, %cst_130 {dimension_numbers = #tpu.dot_dimension_numbers<[1], [0], [0], [1], [0, 0, 1, 1], [], []>} : vector<8x32xf32>, vector<32x32xf32>, vector<8x32xf32> -> vector<8x32xf32>
    %c0_131 = arith.constant 0 : index
    %c20 = arith.constant 20 : index
    %c0_132 = arith.constant 0 : index
    %290 = vector.load %arg5[%c0_131, %c20, %c0_132] : memref<2x24x128xf32, #tpu.memory_space<vmem>>, vector<1x1x32xf32>
    %291 = vector.shape_cast %290 : vector<1x1x32xf32> to vector<1x32xf32>
    %292 = vector.broadcast %291 : vector<1x32xf32> to vector<8x32xf32>
    %293 = arith.addf %289, %292 : vector<8x32xf32>
    %cst_133 = arith.constant 0.000000e+00 : f32
    %294 = vector.broadcast %cst_133 : f32 to vector<8x32xf32>
    %295 = arith.maximumf %293, %294 : vector<8x32xf32>
    %c0_134 = arith.constant 0 : index
    %c292 = arith.constant 292 : index
    %c0_135 = arith.constant 0 : index
    %296 = vector.load %arg4[%c0_134, %c292, %c0_135] : memref<2x360x128xf32, #tpu.memory_space<vmem>>, vector<1x32x32xf32>
    %297 = vector.shape_cast %296 : vector<1x32x32xf32> to vector<32x32xf32>
    %cst_136 = arith.constant dense<0.000000e+00> : vector<8x32xf32>
    %298 = tpu.matmul %295, %297, %cst_136 {dimension_numbers = #tpu.dot_dimension_numbers<[1], [0], [0], [1], [0, 0, 1, 1], [], []>} : vector<8x32xf32>, vector<32x32xf32>, vector<8x32xf32> -> vector<8x32xf32>
    %c0_137 = arith.constant 0 : index
    %c21 = arith.constant 21 : index
    %c0_138 = arith.constant 0 : index
    %299 = vector.load %arg5[%c0_137, %c21, %c0_138] : memref<2x24x128xf32, #tpu.memory_space<vmem>>, vector<1x1x32xf32>
    %300 = vector.shape_cast %299 : vector<1x1x32xf32> to vector<1x32xf32>
    %301 = vector.broadcast %300 : vector<1x32xf32> to vector<8x32xf32>
    %302 = arith.addf %298, %301 : vector<8x32xf32>
    %cst_139 = arith.constant 0.000000e+00 : f32
    %303 = vector.broadcast %cst_139 : f32 to vector<8x32xf32>
    %304 = arith.maximumf %302, %303 : vector<8x32xf32>
    %c0_140 = arith.constant 0 : index
    %c324 = arith.constant 324 : index
    %c0_141 = arith.constant 0 : index
    %305 = vector.load %arg4[%c0_140, %c324, %c0_141] : memref<2x360x128xf32, #tpu.memory_space<vmem>>, vector<1x32x96xf32>
    %306 = vector.shape_cast %305 : vector<1x32x96xf32> to vector<32x96xf32>
    %cst_142 = arith.constant dense<0.000000e+00> : vector<8x96xf32>
    %307 = tpu.matmul %304, %306, %cst_142 {dimension_numbers = #tpu.dot_dimension_numbers<[1], [0], [0], [1], [0, 0, 1, 1], [], []>} : vector<8x32xf32>, vector<32x96xf32>, vector<8x96xf32> -> vector<8x96xf32>
    %c0_143 = arith.constant 0 : index
    %c22 = arith.constant 22 : index
    %c0_144 = arith.constant 0 : index
    %308 = vector.load %arg5[%c0_143, %c22, %c0_144] : memref<2x24x128xf32, #tpu.memory_space<vmem>>, vector<1x1x96xf32>
    %309 = vector.shape_cast %308 : vector<1x1x96xf32> to vector<1x96xf32>
    %310 = vector.broadcast %309 : vector<1x96xf32> to vector<8x96xf32>
    %311 = arith.addf %307, %310 : vector<8x96xf32>
    %312 = vector.extract_strided_slice %311 {offsets = [0, 0], sizes = [8, 32], strides = [1, 1]} : vector<8x96xf32> to vector<8x32xf32>
    %cst_145 = arith.constant 0.000000e+00 : f32
    %313 = vector.broadcast %cst_145 : f32 to vector<8x32xf32>
    %314 = arith.maximumf %312, %313 : vector<8x32xf32>
    %315 = vector.extract_strided_slice %311 {offsets = [0, 32], sizes = [8, 32], strides = [1, 1]} : vector<8x96xf32> to vector<8x32xf32>
    %316 = arith.negf %315 : vector<8x32xf32>
    %317 = math.exp %316 : vector<8x32xf32>
    %cst_146 = arith.constant 1.000000e+00 : f32
    %318 = vector.broadcast %cst_146 : f32 to vector<8x32xf32>
    %319 = arith.addf %318, %317 : vector<8x32xf32>
    %320 = arith.divf %318, %319 : vector<8x32xf32>
    %321 = vector.extract_strided_slice %311 {offsets = [0, 64], sizes = [8, 32], strides = [1, 1]} : vector<8x96xf32> to vector<8x32xf32>
    %322 = arith.negf %321 : vector<8x32xf32>
    %323 = math.exp %322 : vector<8x32xf32>
    %cst_147 = arith.constant 1.000000e+00 : f32
    %324 = vector.broadcast %cst_147 : f32 to vector<8x32xf32>
    %325 = arith.addf %324, %323 : vector<8x32xf32>
    %326 = arith.divf %324, %325 : vector<8x32xf32>
    %c0_148 = arith.constant 0 : index
    %c0_149 = arith.constant 0 : index
    %c0_150 = arith.constant 0 : index
    %327 = vector.load %arg6[%c0_148, %c0_149, %c0_150] : memref<2x8x148xf32, #tpu.memory_space<vmem>>, vector<1x8x32xf32>
    %328 = vector.shape_cast %327 : vector<1x8x32xf32> to vector<8x32xf32>
    %329 = vector.shape_cast %314 : vector<8x32xf32> to vector<1x8x32xf32>
    tpu.vector_store %arg6[%c0_148, %c0_149, %c0_150], %329 {strides = array<i32>} : memref<2x8x148xf32, #tpu.memory_space<vmem>>, vector<1x8x32xf32>,
    %c0_151 = arith.constant 0 : index
    %c0_152 = arith.constant 0 : index
    %c32_153 = arith.constant 32 : index
    %330 = vector.load %arg6[%c0_151, %c0_152, %c32_153] : memref<2x8x148xf32, #tpu.memory_space<vmem>>, vector<1x8x32xf32>
    %331 = vector.shape_cast %330 : vector<1x8x32xf32> to vector<8x32xf32>
    %332 = vector.shape_cast %320 : vector<8x32xf32> to vector<1x8x32xf32>
    tpu.vector_store %arg6[%c0_151, %c0_152, %c32_153], %332 {strides = array<i32>} : memref<2x8x148xf32, #tpu.memory_space<vmem>>, vector<1x8x32xf32>,
    %c0_154 = arith.constant 0 : index
    %c0_155 = arith.constant 0 : index
    %c64_156 = arith.constant 64 : index
    %333 = vector.load %arg6[%c0_154, %c0_155, %c64_156] : memref<2x8x148xf32, #tpu.memory_space<vmem>>, vector<1x8x32xf32>
    %334 = vector.shape_cast %333 : vector<1x8x32xf32> to vector<8x32xf32>
    %335 = vector.shape_cast %326 : vector<8x32xf32> to vector<1x8x32xf32>
    tpu.vector_store %arg6[%c0_154, %c0_155, %c64_156], %335 {strides = array<i32>} : memref<2x8x148xf32, #tpu.memory_space<vmem>>, vector<1x8x32xf32>,
    %c0_157 = arith.constant 0 : index
    %c0_158 = arith.constant 0 : index
    %c96_159 = arith.constant 96 : index
    %336 = vector.load %arg6[%c0_157, %c0_158, %c96_159] : memref<2x8x148xf32, #tpu.memory_space<vmem>>, vector<1x8x16xf32>
    %337 = vector.shape_cast %336 : vector<1x8x16xf32> to vector<8x16xf32>
    %338 = vector.shape_cast %176 : vector<8x16xf32> to vector<1x8x16xf32>
    tpu.vector_store %arg6[%c0_157, %c0_158, %c96_159], %338 {strides = array<i32>} : memref<2x8x148xf32, #tpu.memory_space<vmem>>, vector<1x8x16xf32>,
    %c0_160 = arith.constant 0 : index
    %c0_161 = arith.constant 0 : index
    %c112 = arith.constant 112 : index
    %339 = vector.load %arg6[%c0_160, %c0_161, %c112] : memref<2x8x148xf32, #tpu.memory_space<vmem>>, vector<1x8x8xf32>
    %340 = vector.shape_cast %339 : vector<1x8x8xf32> to vector<8x8xf32>
    %341 = vector.shape_cast %205 : vector<8x8xf32> to vector<1x8x8xf32>
    tpu.vector_store %arg6[%c0_160, %c0_161, %c112], %341 {strides = array<i32>} : memref<2x8x148xf32, #tpu.memory_space<vmem>>, vector<1x8x8xf32>,
    %c0_162 = arith.constant 0 : index
    %c0_163 = arith.constant 0 : index
    %c120 = arith.constant 120 : index
    %342 = vector.load %arg6[%c0_162, %c0_163, %c120] : memref<2x8x148xf32, #tpu.memory_space<vmem>>, vector<1x8x4xf32>
    %343 = vector.shape_cast %342 : vector<1x8x4xf32> to vector<8x4xf32>
    %344 = vector.shape_cast %258 : vector<8x4xf32> to vector<1x8x4xf32>
    tpu.vector_store %arg6[%c0_162, %c0_163, %c120], %344 {strides = array<i32>} : memref<2x8x148xf32, #tpu.memory_space<vmem>>, vector<1x8x4xf32>,
    %c0_164 = arith.constant 0 : index
    %c0_165 = arith.constant 0 : index
    %c124 = arith.constant 124 : index
    %345 = vector.load %arg6[%c0_164, %c0_165, %c124] : memref<2x8x148xf32, #tpu.memory_space<vmem>>, vector<1x8x8xf32>
    %346 = vector.shape_cast %345 : vector<1x8x8xf32> to vector<8x8xf32>
    %347 = vector.shape_cast %233 : vector<8x8xf32> to vector<1x8x8xf32>
    tpu.vector_store %arg6[%c0_164, %c0_165, %c124], %347 {strides = array<i32>} : memref<2x8x148xf32, #tpu.memory_space<vmem>>, vector<1x8x8xf32>,
    %c0_166 = arith.constant 0 : index
    %c0_167 = arith.constant 0 : index
    %c132 = arith.constant 132 : index
    %348 = vector.load %arg6[%c0_166, %c0_167, %c132] : memref<2x8x148xf32, #tpu.memory_space<vmem>>, vector<1x8x4xf32>
    %349 = vector.shape_cast %348 : vector<1x8x4xf32> to vector<8x4xf32>
    %350 = vector.shape_cast %242 : vector<8x4xf32> to vector<1x8x4xf32>
    tpu.vector_store %arg6[%c0_166, %c0_167, %c132], %350 {strides = array<i32>} : memref<2x8x148xf32, #tpu.memory_space<vmem>>, vector<1x8x4xf32>,
    %c0_168 = arith.constant 0 : index
    %c0_169 = arith.constant 0 : index
    %c136 = arith.constant 136 : index
    %351 = vector.load %arg6[%c0_168, %c0_169, %c136] : memref<2x8x148xf32, #tpu.memory_space<vmem>>, vector<1x8x4xf32>
    %352 = vector.shape_cast %351 : vector<1x8x4xf32> to vector<8x4xf32>
    %353 = vector.shape_cast %251 : vector<8x4xf32> to vector<1x8x4xf32>
    tpu.vector_store %arg6[%c0_168, %c0_169, %c136], %353 {strides = array<i32>} : memref<2x8x148xf32, #tpu.memory_space<vmem>>, vector<1x8x4xf32>,
    %c0_170 = arith.constant 0 : index
    %c0_171 = arith.constant 0 : index
    %c140 = arith.constant 140 : index
    %354 = vector.load %arg6[%c0_170, %c0_171, %c140] : memref<2x8x148xf32, #tpu.memory_space<vmem>>, vector<1x8x8xf32>
    %355 = vector.shape_cast %354 : vector<1x8x8xf32> to vector<8x8xf32>
    %356 = vector.shape_cast %193 : vector<8x8xf32> to vector<1x8x8xf32>
    tpu.vector_store %arg6[%c0_170, %c0_171, %c140], %356 {strides = array<i32>} : memref<2x8x148xf32, #tpu.memory_space<vmem>>, vector<1x8x8xf32>,
    %c1_172 = arith.constant 1 : index
    %c0_173 = arith.constant 0 : index
    %c0_174 = arith.constant 0 : index
    %357 = vector.load %arg1[%c1_172, %c0_173, %c0_174] : memref<2x8x32xf32, #tpu.memory_space<vmem>>, vector<1x8x32xf32>
    %358 = vector.shape_cast %357 : vector<1x8x32xf32> to vector<8x32xf32>
    %c1_175 = arith.constant 1 : index
    %c0_176 = arith.constant 0 : index
    %c0_177 = arith.constant 0 : index
    %359 = vector.load %arg4[%c1_175, %c0_176, %c0_177] : memref<2x360x128xf32, #tpu.memory_space<vmem>>, vector<1x32x32xf32>
    %360 = vector.shape_cast %359 : vector<1x32x32xf32> to vector<32x32xf32>
    %cst_178 = arith.constant dense<0.000000e+00> : vector<8x32xf32>
    %361 = tpu.matmul %358, %360, %cst_178 {dimension_numbers = #tpu.dot_dimension_numbers<[1], [0], [0], [1], [0, 0, 1, 1], [], []>} : vector<8x32xf32>, vector<32x32xf32>, vector<8x32xf32> -> vector<8x32xf32>
    %c1_179 = arith.constant 1 : index
    %c0_180 = arith.constant 0 : index
    %c0_181 = arith.constant 0 : index
    %362 = vector.load %arg5[%c1_179, %c0_180, %c0_181] : memref<2x24x128xf32, #tpu.memory_space<vmem>>, vector<1x1x32xf32>
    %363 = vector.shape_cast %362 : vector<1x1x32xf32> to vector<1x32xf32>
    %364 = vector.broadcast %363 : vector<1x32xf32> to vector<8x32xf32>
    %365 = arith.addf %361, %364 : vector<8x32xf32>
    %cst_182 = arith.constant 0.000000e+00 : f32
    %366 = vector.broadcast %cst_182 : f32 to vector<8x32xf32>
    %367 = arith.maximumf %365, %366 : vector<8x32xf32>
    %cst_183 = arith.constant dense<0.000000e+00> : vector<8xf32>
    %368 = vector.multi_reduction <add>, %367, %cst_183 [1] : vector<8x32xf32> to vector<8xf32>
    %369 = vector.shape_cast %368 : vector<8xf32> to vector<8x1xf32>
    %cst_184 = arith.constant 3.200000e+01 : f32
    %370 = vector.broadcast %cst_184 : f32 to vector<8x1xf32>
    %371 = arith.divf %369, %370 : vector<8x1xf32>
    %372 = arith.mulf %367, %367 : vector<8x32xf32>
    %cst_185 = arith.constant dense<0.000000e+00> : vector<8xf32>
    %373 = vector.multi_reduction <add>, %372, %cst_185 [1] : vector<8x32xf32> to vector<8xf32>
    %374 = vector.shape_cast %373 : vector<8xf32> to vector<8x1xf32>
    %cst_186 = arith.constant 3.200000e+01 : f32
    %375 = vector.broadcast %cst_186 : f32 to vector<8x1xf32>
    %376 = arith.divf %374, %375 : vector<8x1xf32>
    %377 = arith.mulf %371, %371 : vector<8x1xf32>
    %378 = arith.subf %376, %377 : vector<8x1xf32>
    %379 = vector.broadcast %371 : vector<8x1xf32> to vector<8x32xf32>
    %380 = arith.subf %367, %379 : vector<8x32xf32>
    %cst_187 = arith.constant 9.99999974E-6 : f32
    %381 = vector.broadcast %cst_187 : f32 to vector<8x1xf32>
    %382 = arith.addf %378, %381 : vector<8x1xf32>
    %383 = math.rsqrt %382 : vector<8x1xf32>
    %384 = vector.broadcast %383 : vector<8x1xf32> to vector<8x32xf32>
    %385 = arith.mulf %380, %384 : vector<8x32xf32>
    %c1_188 = arith.constant 1 : index
    %c1_189 = arith.constant 1 : index
    %c0_190 = arith.constant 0 : index
    %386 = vector.load %arg5[%c1_188, %c1_189, %c0_190] : memref<2x24x128xf32, #tpu.memory_space<vmem>>, vector<1x1x32xf32>
    %387 = vector.shape_cast %386 : vector<1x1x32xf32> to vector<1x32xf32>
    %388 = vector.broadcast %387 : vector<1x32xf32> to vector<8x32xf32>
    %389 = arith.mulf %385, %388 : vector<8x32xf32>
    %c1_191 = arith.constant 1 : index
    %c2_192 = arith.constant 2 : index
    %c0_193 = arith.constant 0 : index
    %390 = vector.load %arg5[%c1_191, %c2_192, %c0_193] : memref<2x24x128xf32, #tpu.memory_space<vmem>>, vector<1x1x32xf32>
    %391 = vector.shape_cast %390 : vector<1x1x32xf32> to vector<1x32xf32>
    %392 = vector.broadcast %391 : vector<1x32xf32> to vector<8x32xf32>
    %393 = arith.addf %389, %392 : vector<8x32xf32>
    %c1_194 = arith.constant 1 : index
    %c32_195 = arith.constant 32 : index
    %c0_196 = arith.constant 0 : index
    %394 = vector.load %arg4[%c1_194, %c32_195, %c0_196] : memref<2x360x128xf32, #tpu.memory_space<vmem>>, vector<1x32x32xf32>
    %395 = vector.shape_cast %394 : vector<1x32x32xf32> to vector<32x32xf32>
    %cst_197 = arith.constant dense<0.000000e+00> : vector<8x32xf32>
    %396 = tpu.matmul %393, %395, %cst_197 {dimension_numbers = #tpu.dot_dimension_numbers<[1], [0], [0], [1], [0, 0, 1, 1], [], []>} : vector<8x32xf32>, vector<32x32xf32>, vector<8x32xf32> -> vector<8x32xf32>
    %c1_198 = arith.constant 1 : index
    %c3_199 = arith.constant 3 : index
    %c0_200 = arith.constant 0 : index
    %397 = vector.load %arg5[%c1_198, %c3_199, %c0_200] : memref<2x24x128xf32, #tpu.memory_space<vmem>>, vector<1x1x32xf32>
    %398 = vector.shape_cast %397 : vector<1x1x32xf32> to vector<1x32xf32>
    %399 = vector.broadcast %398 : vector<1x32xf32> to vector<8x32xf32>
    %400 = arith.addf %396, %399 : vector<8x32xf32>
    %cst_201 = arith.constant 0.000000e+00 : f32
    %401 = vector.broadcast %cst_201 : f32 to vector<8x32xf32>
    %402 = arith.maximumf %400, %401 : vector<8x32xf32>
    %cst_202 = arith.constant dense<0.000000e+00> : vector<8xf32>
    %403 = vector.multi_reduction <add>, %402, %cst_202 [1] : vector<8x32xf32> to vector<8xf32>
    %404 = vector.shape_cast %403 : vector<8xf32> to vector<8x1xf32>
    %cst_203 = arith.constant 3.200000e+01 : f32
    %405 = vector.broadcast %cst_203 : f32 to vector<8x1xf32>
    %406 = arith.divf %404, %405 : vector<8x1xf32>
    %407 = arith.mulf %402, %402 : vector<8x32xf32>
    %cst_204 = arith.constant dense<0.000000e+00> : vector<8xf32>
    %408 = vector.multi_reduction <add>, %407, %cst_204 [1] : vector<8x32xf32> to vector<8xf32>
    %409 = vector.shape_cast %408 : vector<8xf32> to vector<8x1xf32>
    %cst_205 = arith.constant 3.200000e+01 : f32
    %410 = vector.broadcast %cst_205 : f32 to vector<8x1xf32>
    %411 = arith.divf %409, %410 : vector<8x1xf32>
    %412 = arith.mulf %406, %406 : vector<8x1xf32>
    %413 = arith.subf %411, %412 : vector<8x1xf32>
    %414 = vector.broadcast %406 : vector<8x1xf32> to vector<8x32xf32>
    %415 = arith.subf %402, %414 : vector<8x32xf32>
    %cst_206 = arith.constant 9.99999974E-6 : f32
    %416 = vector.broadcast %cst_206 : f32 to vector<8x1xf32>
    %417 = arith.addf %413, %416 : vector<8x1xf32>
    %418 = math.rsqrt %417 : vector<8x1xf32>
    %419 = vector.broadcast %418 : vector<8x1xf32> to vector<8x32xf32>
    %420 = arith.mulf %415, %419 : vector<8x32xf32>
    %c1_207 = arith.constant 1 : index
    %c4_208 = arith.constant 4 : index
    %c0_209 = arith.constant 0 : index
    %421 = vector.load %arg5[%c1_207, %c4_208, %c0_209] : memref<2x24x128xf32, #tpu.memory_space<vmem>>, vector<1x1x32xf32>
    %422 = vector.shape_cast %421 : vector<1x1x32xf32> to vector<1x32xf32>
    %423 = vector.broadcast %422 : vector<1x32xf32> to vector<8x32xf32>
    %424 = arith.mulf %420, %423 : vector<8x32xf32>
    %c1_210 = arith.constant 1 : index
    %c5_211 = arith.constant 5 : index
    %c0_212 = arith.constant 0 : index
    %425 = vector.load %arg5[%c1_210, %c5_211, %c0_212] : memref<2x24x128xf32, #tpu.memory_space<vmem>>, vector<1x1x32xf32>
    %426 = vector.shape_cast %425 : vector<1x1x32xf32> to vector<1x32xf32>
    %427 = vector.broadcast %426 : vector<1x32xf32> to vector<8x32xf32>
    %428 = arith.addf %424, %427 : vector<8x32xf32>
    %c1_213 = arith.constant 1 : index
    %c64_214 = arith.constant 64 : index
    %c0_215 = arith.constant 0 : index
    %429 = vector.load %arg4[%c1_213, %c64_214, %c0_215] : memref<2x360x128xf32, #tpu.memory_space<vmem>>, vector<1x32x32xf32>
    %430 = vector.shape_cast %429 : vector<1x32x32xf32> to vector<32x32xf32>
    %cst_216 = arith.constant dense<0.000000e+00> : vector<8x32xf32>
    %431 = tpu.matmul %428, %430, %cst_216 {dimension_numbers = #tpu.dot_dimension_numbers<[1], [0], [0], [1], [0, 0, 1, 1], [], []>} : vector<8x32xf32>, vector<32x32xf32>, vector<8x32xf32> -> vector<8x32xf32>
    %c1_217 = arith.constant 1 : index
    %c6_218 = arith.constant 6 : index
    %c0_219 = arith.constant 0 : index
    %432 = vector.load %arg5[%c1_217, %c6_218, %c0_219] : memref<2x24x128xf32, #tpu.memory_space<vmem>>, vector<1x1x32xf32>
    %433 = vector.shape_cast %432 : vector<1x1x32xf32> to vector<1x32xf32>
    %434 = vector.broadcast %433 : vector<1x32xf32> to vector<8x32xf32>
    %435 = arith.addf %431, %434 : vector<8x32xf32>
    %cst_220 = arith.constant 0.000000e+00 : f32
    %436 = vector.broadcast %cst_220 : f32 to vector<8x32xf32>
    %437 = arith.maximumf %435, %436 : vector<8x32xf32>
    %cst_221 = arith.constant dense<0.000000e+00> : vector<8xf32>
    %438 = vector.multi_reduction <add>, %437, %cst_221 [1] : vector<8x32xf32> to vector<8xf32>
    %439 = vector.shape_cast %438 : vector<8xf32> to vector<8x1xf32>
    %cst_222 = arith.constant 3.200000e+01 : f32
    %440 = vector.broadcast %cst_222 : f32 to vector<8x1xf32>
    %441 = arith.divf %439, %440 : vector<8x1xf32>
    %442 = arith.mulf %437, %437 : vector<8x32xf32>
    %cst_223 = arith.constant dense<0.000000e+00> : vector<8xf32>
    %443 = vector.multi_reduction <add>, %442, %cst_223 [1] : vector<8x32xf32> to vector<8xf32>
    %444 = vector.shape_cast %443 : vector<8xf32> to vector<8x1xf32>
    %cst_224 = arith.constant 3.200000e+01 : f32
    %445 = vector.broadcast %cst_224 : f32 to vector<8x1xf32>
    %446 = arith.divf %444, %445 : vector<8x1xf32>
    %447 = arith.mulf %441, %441 : vector<8x1xf32>
    %448 = arith.subf %446, %447 : vector<8x1xf32>
    %449 = vector.broadcast %441 : vector<8x1xf32> to vector<8x32xf32>
    %450 = arith.subf %437, %449 : vector<8x32xf32>
    %cst_225 = arith.constant 9.99999974E-6 : f32
    %451 = vector.broadcast %cst_225 : f32 to vector<8x1xf32>
    %452 = arith.addf %448, %451 : vector<8x1xf32>
    %453 = math.rsqrt %452 : vector<8x1xf32>
    %454 = vector.broadcast %453 : vector<8x1xf32> to vector<8x32xf32>
    %455 = arith.mulf %450, %454 : vector<8x32xf32>
    %c1_226 = arith.constant 1 : index
    %c7_227 = arith.constant 7 : index
    %c0_228 = arith.constant 0 : index
    %456 = vector.load %arg5[%c1_226, %c7_227, %c0_228] : memref<2x24x128xf32, #tpu.memory_space<vmem>>, vector<1x1x32xf32>
    %457 = vector.shape_cast %456 : vector<1x1x32xf32> to vector<1x32xf32>
    %458 = vector.broadcast %457 : vector<1x32xf32> to vector<8x32xf32>
    %459 = arith.mulf %455, %458 : vector<8x32xf32>
    %c1_229 = arith.constant 1 : index
    %c8_230 = arith.constant 8 : index
    %c0_231 = arith.constant 0 : index
    %460 = vector.load %arg5[%c1_229, %c8_230, %c0_231] : memref<2x24x128xf32, #tpu.memory_space<vmem>>, vector<1x1x32xf32>
    %461 = vector.shape_cast %460 : vector<1x1x32xf32> to vector<1x32xf32>
    %462 = vector.broadcast %461 : vector<1x32xf32> to vector<8x32xf32>
    %463 = arith.addf %459, %462 : vector<8x32xf32>
    %c1_232 = arith.constant 1 : index
    %c96_233 = arith.constant 96 : index
    %c0_234 = arith.constant 0 : index
    %464 = vector.load %arg4[%c1_232, %c96_233, %c0_234] : memref<2x360x128xf32, #tpu.memory_space<vmem>>, vector<1x32x32xf32>
    %465 = vector.shape_cast %464 : vector<1x32x32xf32> to vector<32x32xf32>
    %cst_235 = arith.constant dense<0.000000e+00> : vector<8x32xf32>
    %466 = tpu.matmul %463, %465, %cst_235 {dimension_numbers = #tpu.dot_dimension_numbers<[1], [0], [0], [1], [0, 0, 1, 1], [], []>} : vector<8x32xf32>, vector<32x32xf32>, vector<8x32xf32> -> vector<8x32xf32>
    %c1_236 = arith.constant 1 : index
    %c9_237 = arith.constant 9 : index
    %c0_238 = arith.constant 0 : index
    %467 = vector.load %arg5[%c1_236, %c9_237, %c0_238] : memref<2x24x128xf32, #tpu.memory_space<vmem>>, vector<1x1x32xf32>
    %468 = vector.shape_cast %467 : vector<1x1x32xf32> to vector<1x32xf32>
    %469 = vector.broadcast %468 : vector<1x32xf32> to vector<8x32xf32>
    %470 = arith.addf %466, %469 : vector<8x32xf32>
    %cst_239 = arith.constant 0.000000e+00 : f32
    %471 = vector.broadcast %cst_239 : f32 to vector<8x32xf32>
    %472 = arith.maximumf %470, %471 : vector<8x32xf32>
    %cst_240 = arith.constant dense<0.000000e+00> : vector<8xf32>
    %473 = vector.multi_reduction <add>, %472, %cst_240 [1] : vector<8x32xf32> to vector<8xf32>
    %474 = vector.shape_cast %473 : vector<8xf32> to vector<8x1xf32>
    %cst_241 = arith.constant 3.200000e+01 : f32
    %475 = vector.broadcast %cst_241 : f32 to vector<8x1xf32>
    %476 = arith.divf %474, %475 : vector<8x1xf32>
    %477 = arith.mulf %472, %472 : vector<8x32xf32>
    %cst_242 = arith.constant dense<0.000000e+00> : vector<8xf32>
    %478 = vector.multi_reduction <add>, %477, %cst_242 [1] : vector<8x32xf32> to vector<8xf32>
    %479 = vector.shape_cast %478 : vector<8xf32> to vector<8x1xf32>
    %cst_243 = arith.constant 3.200000e+01 : f32
    %480 = vector.broadcast %cst_243 : f32 to vector<8x1xf32>
    %481 = arith.divf %479, %480 : vector<8x1xf32>
    %482 = arith.mulf %476, %476 : vector<8x1xf32>
    %483 = arith.subf %481, %482 : vector<8x1xf32>
    %484 = vector.broadcast %476 : vector<8x1xf32> to vector<8x32xf32>
    %485 = arith.subf %472, %484 : vector<8x32xf32>
    %cst_244 = arith.constant 9.99999974E-6 : f32
    %486 = vector.broadcast %cst_244 : f32 to vector<8x1xf32>
    %487 = arith.addf %483, %486 : vector<8x1xf32>
    %488 = math.rsqrt %487 : vector<8x1xf32>
    %489 = vector.broadcast %488 : vector<8x1xf32> to vector<8x32xf32>
    %490 = arith.mulf %485, %489 : vector<8x32xf32>
    %c1_245 = arith.constant 1 : index
    %c10_246 = arith.constant 10 : index
    %c0_247 = arith.constant 0 : index
    %491 = vector.load %arg5[%c1_245, %c10_246, %c0_247] : memref<2x24x128xf32, #tpu.memory_space<vmem>>, vector<1x1x32xf32>
    %492 = vector.shape_cast %491 : vector<1x1x32xf32> to vector<1x32xf32>
    %493 = vector.broadcast %492 : vector<1x32xf32> to vector<8x32xf32>
    %494 = arith.mulf %490, %493 : vector<8x32xf32>
    %c1_248 = arith.constant 1 : index
    %c11_249 = arith.constant 11 : index
    %c0_250 = arith.constant 0 : index
    %495 = vector.load %arg5[%c1_248, %c11_249, %c0_250] : memref<2x24x128xf32, #tpu.memory_space<vmem>>, vector<1x1x32xf32>
    %496 = vector.shape_cast %495 : vector<1x1x32xf32> to vector<1x32xf32>
    %497 = vector.broadcast %496 : vector<1x32xf32> to vector<8x32xf32>
    %498 = arith.addf %494, %497 : vector<8x32xf32>
    %c1_251 = arith.constant 1 : index
    %c128_252 = arith.constant 128 : index
    %c0_253 = arith.constant 0 : index
    %499 = vector.load %arg4[%c1_251, %c128_252, %c0_253] : memref<2x360x128xf32, #tpu.memory_space<vmem>>, vector<1x32x16xf32>
    %500 = vector.shape_cast %499 : vector<1x32x16xf32> to vector<32x16xf32>
    %cst_254 = arith.constant dense<0.000000e+00> : vector<8x16xf32>
    %501 = tpu.matmul %498, %500, %cst_254 {dimension_numbers = #tpu.dot_dimension_numbers<[1], [0], [0], [1], [0, 0, 1, 1], [], []>} : vector<8x32xf32>, vector<32x16xf32>, vector<8x16xf32> -> vector<8x16xf32>
    %c1_255 = arith.constant 1 : index
    %c12_256 = arith.constant 12 : index
    %c0_257 = arith.constant 0 : index
    %502 = vector.load %arg5[%c1_255, %c12_256, %c0_257] : memref<2x24x128xf32, #tpu.memory_space<vmem>>, vector<1x1x16xf32>
    %503 = vector.shape_cast %502 : vector<1x1x16xf32> to vector<1x16xf32>
    %504 = vector.broadcast %503 : vector<1x16xf32> to vector<8x16xf32>
    %505 = arith.addf %501, %504 : vector<8x16xf32>
    %cst_258 = arith.constant 0.000000e+00 : f32
    %506 = vector.broadcast %cst_258 : f32 to vector<8x16xf32>
    %507 = arith.maximumf %505, %506 : vector<8x16xf32>
    %cst_259 = arith.constant dense<0.000000e+00> : vector<8xf32>
    %508 = vector.multi_reduction <add>, %507, %cst_259 [1] : vector<8x16xf32> to vector<8xf32>
    %509 = vector.shape_cast %508 : vector<8xf32> to vector<8x1xf32>
    %cst_260 = arith.constant 1.600000e+01 : f32
    %510 = vector.broadcast %cst_260 : f32 to vector<8x1xf32>
    %511 = arith.divf %509, %510 : vector<8x1xf32>
    %512 = arith.mulf %507, %507 : vector<8x16xf32>
    %cst_261 = arith.constant dense<0.000000e+00> : vector<8xf32>
    %513 = vector.multi_reduction <add>, %512, %cst_261 [1] : vector<8x16xf32> to vector<8xf32>
    %514 = vector.shape_cast %513 : vector<8xf32> to vector<8x1xf32>
    %cst_262 = arith.constant 1.600000e+01 : f32
    %515 = vector.broadcast %cst_262 : f32 to vector<8x1xf32>
    %516 = arith.divf %514, %515 : vector<8x1xf32>
    %517 = arith.mulf %511, %511 : vector<8x1xf32>
    %518 = arith.subf %516, %517 : vector<8x1xf32>
    %519 = vector.broadcast %511 : vector<8x1xf32> to vector<8x16xf32>
    %520 = arith.subf %507, %519 : vector<8x16xf32>
    %cst_263 = arith.constant 9.99999974E-6 : f32
    %521 = vector.broadcast %cst_263 : f32 to vector<8x1xf32>
    %522 = arith.addf %518, %521 : vector<8x1xf32>
    %523 = math.rsqrt %522 : vector<8x1xf32>
    %524 = vector.broadcast %523 : vector<8x1xf32> to vector<8x16xf32>
    %525 = arith.mulf %520, %524 : vector<8x16xf32>
    %c1_264 = arith.constant 1 : index
    %c13_265 = arith.constant 13 : index
    %c0_266 = arith.constant 0 : index
    %526 = vector.load %arg5[%c1_264, %c13_265, %c0_266] : memref<2x24x128xf32, #tpu.memory_space<vmem>>, vector<1x1x16xf32>
    %527 = vector.shape_cast %526 : vector<1x1x16xf32> to vector<1x16xf32>
    %528 = vector.broadcast %527 : vector<1x16xf32> to vector<8x16xf32>
    %529 = arith.mulf %525, %528 : vector<8x16xf32>
    %c1_267 = arith.constant 1 : index
    %c14_268 = arith.constant 14 : index
    %c0_269 = arith.constant 0 : index
    %530 = vector.load %arg5[%c1_267, %c14_268, %c0_269] : memref<2x24x128xf32, #tpu.memory_space<vmem>>, vector<1x1x16xf32>
    %531 = vector.shape_cast %530 : vector<1x1x16xf32> to vector<1x16xf32>
    %532 = vector.broadcast %531 : vector<1x16xf32> to vector<8x16xf32>
    %533 = arith.addf %529, %532 : vector<8x16xf32>
    %c1_270 = arith.constant 1 : index
    %c160_271 = arith.constant 160 : index
    %c0_272 = arith.constant 0 : index
    %534 = vector.load %arg4[%c1_270, %c160_271, %c0_272] : memref<2x360x128xf32, #tpu.memory_space<vmem>>, vector<1x16x8xf32>
    %535 = vector.shape_cast %534 : vector<1x16x8xf32> to vector<16x8xf32>
    %cst_273 = arith.constant dense<0.000000e+00> : vector<8x8xf32>
    %536 = tpu.matmul %533, %535, %cst_273 {dimension_numbers = #tpu.dot_dimension_numbers<[1], [0], [0], [1], [0, 0, 1, 1], [], []>} : vector<8x16xf32>, vector<16x8xf32>, vector<8x8xf32> -> vector<8x8xf32>
    %c1_274 = arith.constant 1 : index
    %c15_275 = arith.constant 15 : index
    %c0_276 = arith.constant 0 : index
    %537 = vector.load %arg5[%c1_274, %c15_275, %c0_276] : memref<2x24x128xf32, #tpu.memory_space<vmem>>, vector<1x1x8xf32>
    %538 = vector.shape_cast %537 : vector<1x1x8xf32> to vector<1x8xf32>
    %539 = vector.broadcast %538 : vector<1x8xf32> to vector<8x8xf32>
    %540 = arith.addf %536, %539 : vector<8x8xf32>
    %cst_277 = arith.constant dense<0xFF800000> : vector<8xf32>
    %541 = vector.multi_reduction <maximumf>, %540, %cst_277 [1] : vector<8x8xf32> to vector<8xf32>
    %542 = vector.shape_cast %541 : vector<8xf32> to vector<8x1xf32>
    %543 = vector.broadcast %542 : vector<8x1xf32> to vector<8x8xf32>
    %544 = arith.subf %540, %543 : vector<8x8xf32>
    %545 = math.exp %544 : vector<8x8xf32>
    %cst_278 = arith.constant dense<0.000000e+00> : vector<8xf32>
    %546 = vector.multi_reduction <add>, %545, %cst_278 [1] : vector<8x8xf32> to vector<8xf32>
    %547 = vector.shape_cast %546 : vector<8xf32> to vector<8x1xf32>
    %548 = tpu.reciprocal %547 {approx = true} : vector<8x1xf32> -> vector<8x1xf32>
    %549 = vector.broadcast %548 : vector<8x1xf32> to vector<8x8xf32>
    %550 = arith.mulf %545, %549 : vector<8x8xf32>
    %cst_279 = arith.constant 8.000000e+00 : f32
    %551 = vector.broadcast %cst_279 : f32 to vector<8x8xf32>
    %552 = arith.mulf %550, %551 : vector<8x8xf32>
    %cst_280 = arith.constant dense<0xFF800000> : vector<8xf32>
    %553 = vector.multi_reduction <maximumf>, %552, %cst_280 [1] : vector<8x8xf32> to vector<8xf32>
    %554 = vector.shape_cast %553 : vector<8xf32> to vector<8x1xf32>
    %555 = vector.broadcast %554 : vector<8x1xf32> to vector<8x8xf32>
    %556 = arith.subf %552, %555 : vector<8x8xf32>
    %557 = math.exp %556 : vector<8x8xf32>
    %cst_281 = arith.constant dense<0.000000e+00> : vector<8xf32>
    %558 = vector.multi_reduction <add>, %557, %cst_281 [1] : vector<8x8xf32> to vector<8xf32>
    %559 = vector.shape_cast %558 : vector<8xf32> to vector<8x1xf32>
    %560 = tpu.reciprocal %559 {approx = true} : vector<8x1xf32> -> vector<8x1xf32>
    %561 = vector.broadcast %560 : vector<8x1xf32> to vector<8x8xf32>
    %562 = arith.mulf %557, %561 : vector<8x8xf32>
    %c1_282 = arith.constant 1 : index
    %c0_283 = arith.constant 0 : index
    %c0_284 = arith.constant 0 : index
    %563 = vector.load %arg2[%c1_282, %c0_283, %c0_284] : memref<2x8x8xf32, #tpu.memory_space<vmem>>, vector<1x8x8xf32>
    %564 = vector.shape_cast %563 : vector<1x8x8xf32> to vector<8x8xf32>
    %cst_285 = arith.constant 9.99999993E-9 : f32
    %565 = vector.broadcast %cst_285 : f32 to vector<8x8xf32>
    %566 = arith.addf %564, %565 : vector<8x8xf32>
    %567 = math.log %566 : vector<8x8xf32>
    %cst_286 = arith.constant 0.000000e+00 : f32
    %568 = vector.broadcast %cst_286 : f32 to vector<8x8xf32>
    %569 = arith.subf %568, %567 : vector<8x8xf32>
    %cst_287 = arith.constant 9.99999993E-9 : f32
    %570 = vector.broadcast %cst_287 : f32 to vector<8x8xf32>
    %571 = arith.addf %569, %570 : vector<8x8xf32>
    %572 = math.log %571 : vector<8x8xf32>
    %cst_288 = arith.constant 0.000000e+00 : f32
    %573 = vector.broadcast %cst_288 : f32 to vector<8x8xf32>
    %574 = arith.subf %573, %572 : vector<8x8xf32>
    %cst_289 = arith.constant 9.99999993E-9 : f32
    %575 = vector.broadcast %cst_289 : f32 to vector<8x8xf32>
    %576 = arith.addf %562, %575 : vector<8x8xf32>
    %577 = math.log %576 : vector<8x8xf32>
    %578 = arith.addf %577, %574 : vector<8x8xf32>
    %cst_290 = arith.constant 1.000000e+00 : f32
    %579 = vector.broadcast %cst_290 : f32 to vector<8x8xf32>
    %580 = arith.mulf %578, %579 : vector<8x8xf32>
    %cst_291 = arith.constant dense<0xFF800000> : vector<8xf32>
    %581 = vector.multi_reduction <maximumf>, %580, %cst_291 [1] : vector<8x8xf32> to vector<8xf32>
    %582 = vector.shape_cast %581 : vector<8xf32> to vector<8x1xf32>
    %583 = vector.broadcast %582 : vector<8x1xf32> to vector<8x8xf32>
    %584 = arith.subf %580, %583 : vector<8x8xf32>
    %585 = math.exp %584 : vector<8x8xf32>
    %cst_292 = arith.constant dense<0.000000e+00> : vector<8xf32>
    %586 = vector.multi_reduction <add>, %585, %cst_292 [1] : vector<8x8xf32> to vector<8xf32>
    %587 = vector.shape_cast %586 : vector<8xf32> to vector<8x1xf32>
    %588 = tpu.reciprocal %587 {approx = true} : vector<8x1xf32> -> vector<8x1xf32>
    %589 = vector.broadcast %588 : vector<8x1xf32> to vector<8x8xf32>
    %590 = arith.mulf %585, %589 : vector<8x8xf32>
    %591 = tpu.concatenate %533, %590 in 1 : vector<8x16xf32>, vector<8x8xf32> -> vector<8x24xf32>
    %c1_293 = arith.constant 1 : index
    %c176_294 = arith.constant 176 : index
    %c0_295 = arith.constant 0 : index
    %592 = vector.load %arg4[%c1_293, %c176_294, %c0_295] : memref<2x360x128xf32, #tpu.memory_space<vmem>>, vector<1x24x8xf32>
    %593 = vector.shape_cast %592 : vector<1x24x8xf32> to vector<24x8xf32>
    %cst_296 = arith.constant dense<0.000000e+00> : vector<8x8xf32>
    %594 = tpu.matmul %591, %593, %cst_296 {dimension_numbers = #tpu.dot_dimension_numbers<[1], [0], [0], [1], [0, 0, 1, 1], [], []>} : vector<8x24xf32>, vector<24x8xf32>, vector<8x8xf32> -> vector<8x8xf32>
    %c1_297 = arith.constant 1 : index
    %c16_298 = arith.constant 16 : index
    %c0_299 = arith.constant 0 : index
    %595 = vector.load %arg5[%c1_297, %c16_298, %c0_299] : memref<2x24x128xf32, #tpu.memory_space<vmem>>, vector<1x1x8xf32>
    %596 = vector.shape_cast %595 : vector<1x1x8xf32> to vector<1x8xf32>
    %597 = vector.broadcast %596 : vector<1x8xf32> to vector<8x8xf32>
    %598 = arith.addf %594, %597 : vector<8x8xf32>
    %599 = vector.extract_strided_slice %598 {offsets = [0, 0], sizes = [8, 4], strides = [1, 1]} : vector<8x8xf32> to vector<8x4xf32>
    %600 = vector.extract_strided_slice %598 {offsets = [0, 4], sizes = [8, 4], strides = [1, 1]} : vector<8x8xf32> to vector<8x4xf32>
    %601 = arith.negf %600 : vector<8x4xf32>
    %602 = math.exp %601 : vector<8x4xf32>
    %cst_300 = arith.constant 1.000000e+00 : f32
    %603 = vector.broadcast %cst_300 : f32 to vector<8x4xf32>
    %604 = arith.addf %603, %602 : vector<8x4xf32>
    %605 = arith.divf %603, %604 : vector<8x4xf32>
    %cst_301 = arith.constant 9.99999993E-9 : f32
    %606 = vector.broadcast %cst_301 : f32 to vector<8x4xf32>
    %607 = arith.addf %605, %606 : vector<8x4xf32>
    %608 = math.log %607 : vector<8x4xf32>
    %cst_302 = arith.constant 9.99999993E-9 : f32
    %609 = vector.broadcast %cst_302 : f32 to vector<8x4xf32>
    %610 = arith.addf %605, %609 : vector<8x4xf32>
    %611 = math.sqrt %610 : vector<8x4xf32>
    %c1_303 = arith.constant 1 : index
    %c0_304 = arith.constant 0 : index
    %c0_305 = arith.constant 0 : index
    %612 = vector.load %arg3[%c1_303, %c0_304, %c0_305] : memref<2x8x4xf32, #tpu.memory_space<vmem>>, vector<1x8x4xf32>
    %613 = vector.shape_cast %612 : vector<1x8x4xf32> to vector<8x4xf32>
    %614 = arith.mulf %613, %611 : vector<8x4xf32>
    %615 = arith.addf %614, %599 : vector<8x4xf32>
    %616 = tpu.concatenate %590, %615 in 1 : vector<8x8xf32>, vector<8x4xf32> -> vector<8x12xf32>
    %c1_306 = arith.constant 1 : index
    %c200_307 = arith.constant 200 : index
    %c0_308 = arith.constant 0 : index
    %617 = vector.load %arg4[%c1_306, %c200_307, %c0_308] : memref<2x360x128xf32, #tpu.memory_space<vmem>>, vector<1x12x16xf32>
    %618 = vector.shape_cast %617 : vector<1x12x16xf32> to vector<12x16xf32>
    %cst_309 = arith.constant dense<0.000000e+00> : vector<8x16xf32>
    %619 = tpu.matmul %616, %618, %cst_309 {dimension_numbers = #tpu.dot_dimension_numbers<[1], [0], [0], [1], [0, 0, 1, 1], [], []>} : vector<8x12xf32>, vector<12x16xf32>, vector<8x16xf32> -> vector<8x16xf32>
    %c1_310 = arith.constant 1 : index
    %c17_311 = arith.constant 17 : index
    %c0_312 = arith.constant 0 : index
    %620 = vector.load %arg5[%c1_310, %c17_311, %c0_312] : memref<2x24x128xf32, #tpu.memory_space<vmem>>, vector<1x1x16xf32>
    %621 = vector.shape_cast %620 : vector<1x1x16xf32> to vector<1x16xf32>
    %622 = vector.broadcast %621 : vector<1x16xf32> to vector<8x16xf32>
    %623 = arith.addf %619, %622 : vector<8x16xf32>
    %cst_313 = arith.constant 0.000000e+00 : f32
    %624 = vector.broadcast %cst_313 : f32 to vector<8x16xf32>
    %625 = arith.maximumf %623, %624 : vector<8x16xf32>
    %c1_314 = arith.constant 1 : index
    %c212_315 = arith.constant 212 : index
    %c0_316 = arith.constant 0 : index
    %626 = vector.load %arg4[%c1_314, %c212_315, %c0_316] : memref<2x360x128xf32, #tpu.memory_space<vmem>>, vector<1x16x32xf32>
    %627 = vector.shape_cast %626 : vector<1x16x32xf32> to vector<16x32xf32>
    %cst_317 = arith.constant dense<0.000000e+00> : vector<8x32xf32>
    %628 = tpu.matmul %625, %627, %cst_317 {dimension_numbers = #tpu.dot_dimension_numbers<[1], [0], [0], [1], [0, 0, 1, 1], [], []>} : vector<8x16xf32>, vector<16x32xf32>, vector<8x32xf32> -> vector<8x32xf32>
    %c1_318 = arith.constant 1 : index
    %c18_319 = arith.constant 18 : index
    %c0_320 = arith.constant 0 : index
    %629 = vector.load %arg5[%c1_318, %c18_319, %c0_320] : memref<2x24x128xf32, #tpu.memory_space<vmem>>, vector<1x1x32xf32>
    %630 = vector.shape_cast %629 : vector<1x1x32xf32> to vector<1x32xf32>
    %631 = vector.broadcast %630 : vector<1x32xf32> to vector<8x32xf32>
    %632 = arith.addf %628, %631 : vector<8x32xf32>
    %cst_321 = arith.constant 0.000000e+00 : f32
    %633 = vector.broadcast %cst_321 : f32 to vector<8x32xf32>
    %634 = arith.maximumf %632, %633 : vector<8x32xf32>
    %c1_322 = arith.constant 1 : index
    %c228_323 = arith.constant 228 : index
    %c0_324 = arith.constant 0 : index
    %635 = vector.load %arg4[%c1_322, %c228_323, %c0_324] : memref<2x360x128xf32, #tpu.memory_space<vmem>>, vector<1x32x32xf32>
    %636 = vector.shape_cast %635 : vector<1x32x32xf32> to vector<32x32xf32>
    %cst_325 = arith.constant dense<0.000000e+00> : vector<8x32xf32>
    %637 = tpu.matmul %634, %636, %cst_325 {dimension_numbers = #tpu.dot_dimension_numbers<[1], [0], [0], [1], [0, 0, 1, 1], [], []>} : vector<8x32xf32>, vector<32x32xf32>, vector<8x32xf32> -> vector<8x32xf32>
    %c1_326 = arith.constant 1 : index
    %c19_327 = arith.constant 19 : index
    %c0_328 = arith.constant 0 : index
    %638 = vector.load %arg5[%c1_326, %c19_327, %c0_328] : memref<2x24x128xf32, #tpu.memory_space<vmem>>, vector<1x1x32xf32>
    %639 = vector.shape_cast %638 : vector<1x1x32xf32> to vector<1x32xf32>
    %640 = vector.broadcast %639 : vector<1x32xf32> to vector<8x32xf32>
    %641 = arith.addf %637, %640 : vector<8x32xf32>
    %cst_329 = arith.constant 0.000000e+00 : f32
    %642 = vector.broadcast %cst_329 : f32 to vector<8x32xf32>
    %643 = arith.maximumf %641, %642 : vector<8x32xf32>
    %c1_330 = arith.constant 1 : index
    %c260_331 = arith.constant 260 : index
    %c0_332 = arith.constant 0 : index
    %644 = vector.load %arg4[%c1_330, %c260_331, %c0_332] : memref<2x360x128xf32, #tpu.memory_space<vmem>>, vector<1x32x32xf32>
    %645 = vector.shape_cast %644 : vector<1x32x32xf32> to vector<32x32xf32>
    %cst_333 = arith.constant dense<0.000000e+00> : vector<8x32xf32>
    %646 = tpu.matmul %643, %645, %cst_333 {dimension_numbers = #tpu.dot_dimension_numbers<[1], [0], [0], [1], [0, 0, 1, 1], [], []>} : vector<8x32xf32>, vector<32x32xf32>, vector<8x32xf32> -> vector<8x32xf32>
    %c1_334 = arith.constant 1 : index
    %c20_335 = arith.constant 20 : index
    %c0_336 = arith.constant 0 : index
    %647 = vector.load %arg5[%c1_334, %c20_335, %c0_336] : memref<2x24x128xf32, #tpu.memory_space<vmem>>, vector<1x1x32xf32>
    %648 = vector.shape_cast %647 : vector<1x1x32xf32> to vector<1x32xf32>
    %649 = vector.broadcast %648 : vector<1x32xf32> to vector<8x32xf32>
    %650 = arith.addf %646, %649 : vector<8x32xf32>
    %cst_337 = arith.constant 0.000000e+00 : f32
    %651 = vector.broadcast %cst_337 : f32 to vector<8x32xf32>
    %652 = arith.maximumf %650, %651 : vector<8x32xf32>
    %c1_338 = arith.constant 1 : index
    %c292_339 = arith.constant 292 : index
    %c0_340 = arith.constant 0 : index
    %653 = vector.load %arg4[%c1_338, %c292_339, %c0_340] : memref<2x360x128xf32, #tpu.memory_space<vmem>>, vector<1x32x32xf32>
    %654 = vector.shape_cast %653 : vector<1x32x32xf32> to vector<32x32xf32>
    %cst_341 = arith.constant dense<0.000000e+00> : vector<8x32xf32>
    %655 = tpu.matmul %652, %654, %cst_341 {dimension_numbers = #tpu.dot_dimension_numbers<[1], [0], [0], [1], [0, 0, 1, 1], [], []>} : vector<8x32xf32>, vector<32x32xf32>, vector<8x32xf32> -> vector<8x32xf32>
    %c1_342 = arith.constant 1 : index
    %c21_343 = arith.constant 21 : index
    %c0_344 = arith.constant 0 : index
    %656 = vector.load %arg5[%c1_342, %c21_343, %c0_344] : memref<2x24x128xf32, #tpu.memory_space<vmem>>, vector<1x1x32xf32>
    %657 = vector.shape_cast %656 : vector<1x1x32xf32> to vector<1x32xf32>
    %658 = vector.broadcast %657 : vector<1x32xf32> to vector<8x32xf32>
    %659 = arith.addf %655, %658 : vector<8x32xf32>
    %cst_345 = arith.constant 0.000000e+00 : f32
    %660 = vector.broadcast %cst_345 : f32 to vector<8x32xf32>
    %661 = arith.maximumf %659, %660 : vector<8x32xf32>
    %c1_346 = arith.constant 1 : index
    %c324_347 = arith.constant 324 : index
    %c0_348 = arith.constant 0 : index
    %662 = vector.load %arg4[%c1_346, %c324_347, %c0_348] : memref<2x360x128xf32, #tpu.memory_space<vmem>>, vector<1x32x96xf32>
    %663 = vector.shape_cast %662 : vector<1x32x96xf32> to vector<32x96xf32>
    %cst_349 = arith.constant dense<0.000000e+00> : vector<8x96xf32>
    %664 = tpu.matmul %661, %663, %cst_349 {dimension_numbers = #tpu.dot_dimension_numbers<[1], [0], [0], [1], [0, 0, 1, 1], [], []>} : vector<8x32xf32>, vector<32x96xf32>, vector<8x96xf32> -> vector<8x96xf32>
    %c1_350 = arith.constant 1 : index
    %c22_351 = arith.constant 22 : index
    %c0_352 = arith.constant 0 : index
    %665 = vector.load %arg5[%c1_350, %c22_351, %c0_352] : memref<2x24x128xf32, #tpu.memory_space<vmem>>, vector<1x1x96xf32>
    %666 = vector.shape_cast %665 : vector<1x1x96xf32> to vector<1x96xf32>
    %667 = vector.broadcast %666 : vector<1x96xf32> to vector<8x96xf32>
    %668 = arith.addf %664, %667 : vector<8x96xf32>
    %669 = vector.extract_strided_slice %668 {offsets = [0, 0], sizes = [8, 32], strides = [1, 1]} : vector<8x96xf32> to vector<8x32xf32>
    %cst_353 = arith.constant 0.000000e+00 : f32
    %670 = vector.broadcast %cst_353 : f32 to vector<8x32xf32>
    %671 = arith.maximumf %669, %670 : vector<8x32xf32>
    %672 = vector.extract_strided_slice %668 {offsets = [0, 32], sizes = [8, 32], strides = [1, 1]} : vector<8x96xf32> to vector<8x32xf32>
    %673 = arith.negf %672 : vector<8x32xf32>
    %674 = math.exp %673 : vector<8x32xf32>
    %cst_354 = arith.constant 1.000000e+00 : f32
    %675 = vector.broadcast %cst_354 : f32 to vector<8x32xf32>
    %676 = arith.addf %675, %674 : vector<8x32xf32>
    %677 = arith.divf %675, %676 : vector<8x32xf32>
    %678 = vector.extract_strided_slice %668 {offsets = [0, 64], sizes = [8, 32], strides = [1, 1]} : vector<8x96xf32> to vector<8x32xf32>
    %679 = arith.negf %678 : vector<8x32xf32>
    %680 = math.exp %679 : vector<8x32xf32>
    %cst_355 = arith.constant 1.000000e+00 : f32
    %681 = vector.broadcast %cst_355 : f32 to vector<8x32xf32>
    %682 = arith.addf %681, %680 : vector<8x32xf32>
    %683 = arith.divf %681, %682 : vector<8x32xf32>
    %c1_356 = arith.constant 1 : index
    %c0_357 = arith.constant 0 : index
    %c0_358 = arith.constant 0 : index
    %684 = vector.load %arg6[%c1_356, %c0_357, %c0_358] : memref<2x8x148xf32, #tpu.memory_space<vmem>>, vector<1x8x32xf32>
    %685 = vector.shape_cast %684 : vector<1x8x32xf32> to vector<8x32xf32>
    %686 = vector.shape_cast %671 : vector<8x32xf32> to vector<1x8x32xf32>
    tpu.vector_store %arg6[%c1_356, %c0_357, %c0_358], %686 {strides = array<i32>} : memref<2x8x148xf32, #tpu.memory_space<vmem>>, vector<1x8x32xf32>,
    %c1_359 = arith.constant 1 : index
    %c0_360 = arith.constant 0 : index
    %c32_361 = arith.constant 32 : index
    %687 = vector.load %arg6[%c1_359, %c0_360, %c32_361] : memref<2x8x148xf32, #tpu.memory_space<vmem>>, vector<1x8x32xf32>
    %688 = vector.shape_cast %687 : vector<1x8x32xf32> to vector<8x32xf32>
    %689 = vector.shape_cast %677 : vector<8x32xf32> to vector<1x8x32xf32>
    tpu.vector_store %arg6[%c1_359, %c0_360, %c32_361], %689 {strides = array<i32>} : memref<2x8x148xf32, #tpu.memory_space<vmem>>, vector<1x8x32xf32>,
    %c1_362 = arith.constant 1 : index
    %c0_363 = arith.constant 0 : index
    %c64_364 = arith.constant 64 : index
    %690 = vector.load %arg6[%c1_362, %c0_363, %c64_364] : memref<2x8x148xf32, #tpu.memory_space<vmem>>, vector<1x8x32xf32>
    %691 = vector.shape_cast %690 : vector<1x8x32xf32> to vector<8x32xf32>
    %692 = vector.shape_cast %683 : vector<8x32xf32> to vector<1x8x32xf32>
    tpu.vector_store %arg6[%c1_362, %c0_363, %c64_364], %692 {strides = array<i32>} : memref<2x8x148xf32, #tpu.memory_space<vmem>>, vector<1x8x32xf32>,
    %c1_365 = arith.constant 1 : index
    %c0_366 = arith.constant 0 : index
    %c96_367 = arith.constant 96 : index
    %693 = vector.load %arg6[%c1_365, %c0_366, %c96_367] : memref<2x8x148xf32, #tpu.memory_space<vmem>>, vector<1x8x16xf32>
    %694 = vector.shape_cast %693 : vector<1x8x16xf32> to vector<8x16xf32>
    %695 = vector.shape_cast %533 : vector<8x16xf32> to vector<1x8x16xf32>
    tpu.vector_store %arg6[%c1_365, %c0_366, %c96_367], %695 {strides = array<i32>} : memref<2x8x148xf32, #tpu.memory_space<vmem>>, vector<1x8x16xf32>,
    %c1_368 = arith.constant 1 : index
    %c0_369 = arith.constant 0 : index
    %c112_370 = arith.constant 112 : index
    %696 = vector.load %arg6[%c1_368, %c0_369, %c112_370] : memref<2x8x148xf32, #tpu.memory_space<vmem>>, vector<1x8x8xf32>
    %697 = vector.shape_cast %696 : vector<1x8x8xf32> to vector<8x8xf32>
    %698 = vector.shape_cast %562 : vector<8x8xf32> to vector<1x8x8xf32>
    tpu.vector_store %arg6[%c1_368, %c0_369, %c112_370], %698 {strides = array<i32>} : memref<2x8x148xf32, #tpu.memory_space<vmem>>, vector<1x8x8xf32>,
    %c1_371 = arith.constant 1 : index
    %c0_372 = arith.constant 0 : index
    %c120_373 = arith.constant 120 : index
    %699 = vector.load %arg6[%c1_371, %c0_372, %c120_373] : memref<2x8x148xf32, #tpu.memory_space<vmem>>, vector<1x8x4xf32>
    %700 = vector.shape_cast %699 : vector<1x8x4xf32> to vector<8x4xf32>
    %701 = vector.shape_cast %615 : vector<8x4xf32> to vector<1x8x4xf32>
    tpu.vector_store %arg6[%c1_371, %c0_372, %c120_373], %701 {strides = array<i32>} : memref<2x8x148xf32, #tpu.memory_space<vmem>>, vector<1x8x4xf32>,
    %c1_374 = arith.constant 1 : index
    %c0_375 = arith.constant 0 : index
    %c124_376 = arith.constant 124 : index
    %702 = vector.load %arg6[%c1_374, %c0_375, %c124_376] : memref<2x8x148xf32, #tpu.memory_space<vmem>>, vector<1x8x8xf32>
    %703 = vector.shape_cast %702 : vector<1x8x8xf32> to vector<8x8xf32>
    %704 = vector.shape_cast %590 : vector<8x8xf32> to vector<1x8x8xf32>
    tpu.vector_store %arg6[%c1_374, %c0_375, %c124_376], %704 {strides = array<i32>} : memref<2x8x148xf32, #tpu.memory_space<vmem>>, vector<1x8x8xf32>,
    %c1_377 = arith.constant 1 : index
    %c0_378 = arith.constant 0 : index
    %c132_379 = arith.constant 132 : index
    %705 = vector.load %arg6[%c1_377, %c0_378, %c132_379] : memref<2x8x148xf32, #tpu.memory_space<vmem>>, vector<1x8x4xf32>
    %706 = vector.shape_cast %705 : vector<1x8x4xf32> to vector<8x4xf32>
    %707 = vector.shape_cast %599 : vector<8x4xf32> to vector<1x8x4xf32>
    tpu.vector_store %arg6[%c1_377, %c0_378, %c132_379], %707 {strides = array<i32>} : memref<2x8x148xf32, #tpu.memory_space<vmem>>, vector<1x8x4xf32>,
    %c1_380 = arith.constant 1 : index
    %c0_381 = arith.constant 0 : index
    %c136_382 = arith.constant 136 : index
    %708 = vector.load %arg6[%c1_380, %c0_381, %c136_382] : memref<2x8x148xf32, #tpu.memory_space<vmem>>, vector<1x8x4xf32>
    %709 = vector.shape_cast %708 : vector<1x8x4xf32> to vector<8x4xf32>
    %710 = vector.shape_cast %608 : vector<8x4xf32> to vector<1x8x4xf32>
    tpu.vector_store %arg6[%c1_380, %c0_381, %c136_382], %710 {strides = array<i32>} : memref<2x8x148xf32, #tpu.memory_space<vmem>>, vector<1x8x4xf32>,
    %c1_383 = arith.constant 1 : index
    %c0_384 = arith.constant 0 : index
    %c140_385 = arith.constant 140 : index
    %711 = vector.load %arg6[%c1_383, %c0_384, %c140_385] : memref<2x8x148xf32, #tpu.memory_space<vmem>>, vector<1x8x8xf32>
    %712 = vector.shape_cast %711 : vector<1x8x8xf32> to vector<8x8xf32>
    %713 = vector.shape_cast %550 : vector<8x8xf32> to vector<1x8x8xf32>
    tpu.vector_store %arg6[%c1_383, %c0_384, %c140_385], %713 {strides = array<i32>} : memref<2x8x148xf32, #tpu.memory_space<vmem>>, vector<1x8x8xf32>,
    return
  }
  func.func @transform_0(%arg0: i32) -> (i32, i32, i32) {
    %c0_i32 = arith.constant 0 : i32
    %c0_i32_0 = arith.constant 0 : i32
    %c0_i32_1 = arith.constant 0 : i32
    %c0_i32_2 = arith.constant 0 : i32
    return %c0_i32, %c0_i32_0, %c0_i32_1 : i32, i32, i32
  }
  func.func @transform_1(%arg0: i32) -> (i32, i32, i32) {
    %c0_i32 = arith.constant 0 : i32
    %c0_i32_0 = arith.constant 0 : i32
    %c0_i32_1 = arith.constant 0 : i32
    %c0_i32_2 = arith.constant 0 : i32
    return %c0_i32, %c0_i32_0, %c0_i32_1 : i32, i32, i32
  }
  func.func @transform_2(%arg0: i32) -> (i32, i32, i32) {
    %c0_i32 = arith.constant 0 : i32
    %c0_i32_0 = arith.constant 0 : i32
    %c0_i32_1 = arith.constant 0 : i32
    %c0_i32_2 = arith.constant 0 : i32
    return %c0_i32, %c0_i32_0, %c0_i32_1 : i32, i32, i32
  }
  func.func @transform_3(%arg0: i32) -> (i32, i32, i32) {
    %c0_i32 = arith.constant 0 : i32
    %c0_i32_0 = arith.constant 0 : i32
    %c0_i32_1 = arith.constant 0 : i32
    %c0_i32_2 = arith.constant 0 : i32
    return %c0_i32, %c0_i32_0, %c0_i32_1 : i32, i32, i32
  }
  func.func @transform_4(%arg0: i32) -> (i32, i32, i32) {
    %c0_i32 = arith.constant 0 : i32
    %c0_i32_0 = arith.constant 0 : i32
    %c0_i32_1 = arith.constant 0 : i32
    %c0_i32_2 = arith.constant 0 : i32
    return %c0_i32, %c0_i32_0, %c0_i32_1 : i32, i32, i32
  }
  func.func @transform_5(%arg0: i32) -> (i32, i32, i32) {
    %c0_i32 = arith.constant 0 : i32
    %c0_i32_0 = arith.constant 0 : i32
    %c0_i32_1 = arith.constant 0 : i32
    %c0_i32_2 = arith.constant 0 : i32
    return %c0_i32, %c0_i32_0, %c0_i32_1 : i32, i32, i32
  }
}

</mosaic_0001>

<bundles_post_ra>
// kernel: tpu_custom_call.1
= control target key start
LH: loop header
LB: loop body
LE: loop exit
PB: predicated region body
PF: predicated region fallthrough
CT: control target
= control target key end

     0   :  { %10 = vsyncpa [#allocation3], 0  ;;  %s3767_s0 = inlined_call_operand.vmem [shape: f32[2,8,32], index: 0, kind: input, shape index: {}]   ;;  %s3768_s1 = inlined_call_operand.hbm [shape: f32[2,8,8], index: 1, kind: input, shape index: {}]   ;;  %s3769_s2 = inlined_call_operand.vmem [shape: f32[2,8,4], index: 2, kind: input, shape index: {}]   ;;  %s3770_s3 = inlined_call_operand.hbm [shape: f32[2,360,128], index: 3, kind: input, shape index: {}]   ;;  %s3771_s4 = inlined_call_operand.hbm [shape: f32[2,24,128], index: 4, kind: input, shape index: {}]   ;;  %s3772_s5 = inlined_call_operand.hbm [shape: f32[2,8,148], index: 5, kind: output, shape index: {}]  }
   0x1   :  { %11 = vsyncpa [#allocation6], 0 }
   0x2   :  { %12 = vsyncpa [#allocation4], 0  ;;  %s3402_s18 = smov [#allocation5]   ;;  %s3403_s20 = smov [#allocation2]  }
   0x3   :  { %s34_s19 = sshll.u32 %s3402_s18, 4  ;;  %s20_s21 = sshll.u32 %s3403_s20, 4  ;;  %s35_s19 = int_to_ptr.vmem [resolvable:$true] %s34_s19  ;;  %s21_s21 = int_to_ptr.vmem [resolvable:$true] %s20_s21 }
   0x4   :  { %s3324_s22 = scalar_lea.vmem %s35_s19, 11520  ;;  %p3329_p1 = scmp.lt.s32.totalorder %s35_s19, %s35_s19 }
   0x5   :  { %p3325_p0 = scmp.ne.s32.totalorder %s35_s19, %s3324_s22  ;;  %p3330_p2 = scmp.lt.s32.totalorder %s3324_s22, %s3324_s22 }
   0x7   :  { %p3331_p3 = por %p3330_p2, %p3329_p1 }
   0x9   :  { %p3332_p4 = pnand %p3331_p3, %p3325_p0 }
   0xb   :  { %3335 = shalt.err (!%p3332_p4)
}
   0xc   :  { %s3404_s23 = smov 128   ;;  %s3405_s24 = smov 8  }
   0xd   :  { %40 = dma.hbm_to_vmem [thread:$0]  %s3770_s3, 11520, %s35_s19, [#allocation6], %s3404_s23, %s3404_s23, %s3405_s24  }
   0xe   :  { %s3344_s27 = scalar_lea.vmem %s21_s21, 256  ;;  %p3349_p6 = scmp.lt.s32.totalorder %s21_s21, %s21_s21 }
   0xf   :  { %p3345_p5 = scmp.ne.s32.totalorder %s21_s21, %s3344_s27  ;;  %p3350_p7 = scmp.lt.s32.totalorder %s3344_s27, %s3344_s27 }
  0x11   :  { %p3351_p8 = por %p3350_p7, %p3349_p6 }
  0x13   :  { %p3352_p9 = pnand %p3351_p8, %p3345_p5 }
  0x15   :  { %3355 = shalt.err (!%p3352_p9)
}
  0x16   :  { %26 = dma.hbm_to_vmem [thread:$0]  %s3768_s1, 256, %s21_s21, [#allocation3], %s3404_s23, %s3404_s23, %s3405_s24  }
  0x17   :  { %s3406_s30 = smov [#allocation7]  }
  0x18   :  { %s46_s6 = sshll.u32 %s3406_s30, 4  ;;  %s47_s6 = int_to_ptr.vmem [resolvable:$true] %s46_s6 }
  0x19   :  { %s3364_s7 = scalar_lea.vmem %s47_s6, 768  ;;  %p3369_p11 = scmp.lt.s32.totalorder %s47_s6, %s47_s6 }
  0x1a   :  { %p3365_p10 = scmp.ne.s32.totalorder %s47_s6, %s3364_s7  ;;  %p3370_p12 = scmp.lt.s32.totalorder %s3364_s7, %s3364_s7 }
  0x1c   :  { %p3371_p13 = por %p3370_p12, %p3369_p11 }
  0x1e   :  { %p3372_p0 = pnand %p3371_p13, %p3365_p10 }
  0x20   :  { %3375 = shalt.err (!%p3372_p0)
}
  0x21   :  { %52 = dma.hbm_to_vmem [thread:$0]  %s3771_s4, 768, %s47_s6, [#allocation6], %s3404_s23, %s3404_s23, %s3405_s24  }
  0x22   :  { %3396 = dma.done.wait [#allocation3], 256  }
  0x23   :  { %3397 = vsyncadd [#allocation3], 4294967040 }
  0x24   :  { %3398 = dma.done.wait [#allocation6], 12288  }
  0x25   :  { %3399 = vsyncadd [#allocation6], 4294955008  ;;  %v3407_v0 = vmov 0.0   ;;  %vm3408_vm0 = vmmov 0   ;;  %v66_v1 = vld [vmem:[#allocation5 + $0x18] sm:$0xff]  ;;  %v65_v2 = vld [vmem:[#allocation5 + $0x10] sm:$0xff] }
  0x26   :  { %2962 = vmatprep.subr.mxu0 %v3407_v0  ;;  %2970 = vmatprep.mubr.msk.f32.mxu0 %vm3408_vm0, %v3407_v0  ;;  %v64_v3 = vld [vmem:[#allocation5 + $0x8] sm:$0xff]  ;;  %v63_v4 = vld [vmem:[#allocation5] sm:$0xff]  ;;  %v62_v5 = vld [vmem:[%s3767_s0] sm:$0xff]  ;;  %vm72_vm1 = vcmask 261120   ;;  %vm588_vm2 = vcmask 130048   ;;  %vm697_vm3 = vcmask 64512  }
  0x27   :  { %2973 = vmatprep.subr.mxu1 %v3407_v0  ;;  %2981 = vmatprep.mubr.msk.f32.mxu1 %vm3408_vm0, %v3407_v0  ;;  %v2766_v6 = vld [vmem:[#allocation7] ss:$0 sm:$0xff]  ;;  %v178_v14 = vld [vmem:[#allocation5 + $0x38] sm:$0xff]  ;;  %v176_v16 = vld [vmem:[#allocation5 + $0x28] sm:$0xff]  ;;  %s3409_s9 = smov 16   ;;  %vm758_vm4 = vcmask 195584  }
  0x28   :  { %2963 = vmatpush3.msra.mxu0 %v66_v1  ;;  %v177_v15 = vld [vmem:[#allocation5 + $0x30] sm:$0xff]  ;;  %2974 = vmatpush3.msra.mxu1 %v178_v14  ;;  %v175_v17 = vld [vmem:[#allocation5 + $0x20] sm:$0xff]  ;;  %v288_v40 = vld [vmem:[#allocation5 + $0x58] sm:$0xff]  ;;  %vm871_vm5 = vcmask 1043456   ;;  %s3410_s10 = smov 124   ;;  %vm867_vm8 = vcmask 97280  }
  0x29   :  { %2964 = vmatprep.subr.mxu0 %v3407_v0  ;;  %2975 = vmatprep.subr.mxu1 %v3407_v0  ;;  %v2768_v27 = vld [vmem:[#allocation7 + $0x1] ss:$0 sm:$0xff]  ;;  %v2769_v29 = vld [vmem:[#allocation7 + $0x2] ss:$0 sm:$0xff]  ;;  %v2770_v32 = vld [vmem:[#allocation7 + $0x3] ss:$0 sm:$0xff] }
  0x2a   :  { %2965 = vmatpush3.msra.mxu0 %v65_v2  ;;  %2976 = vmatpush3.msra.mxu1 %v177_v15  ;;  %v287_v41 = vld [vmem:[#allocation5 + $0x50] sm:$0xff]  ;;  %v286_v42 = vld [vmem:[#allocation5 + $0x48] sm:$0xff]  ;;  %v285_v43 = vld [vmem:[#allocation5 + $0x40] sm:$0xff]  ;;  %vm1366_vm9 = vcmask 523520   ;;  %vm1368_vm10 = vcmask 785920   ;;  %s3412_s15 = smov 112  }
  0x2b   :  { %2966 = vmatprep.subr.mxu0 %v3407_v0  ;;  %2977 = vmatprep.subr.mxu1 %v3407_v0  ;;  %v2772_v53 = vld [vmem:[#allocation7 + $0x4] ss:$0 sm:$0xff]  ;;  %v2773_v55 = vld [vmem:[#allocation7 + $0x5] ss:$0 sm:$0xff]  ;;  %v2774_v58 = vld [vmem:[#allocation7 + $0x6] ss:$0 sm:$0xff] }
  0x2c   :  { %2967 = vmatpush3.msra.mxu0 %v64_v3  ;;  %2978 = vmatpush3.msra.mxu1 %v176_v16  ;;  %v398_v3 = vld [vmem:[#allocation5 + $0x78] sm:$0xff]  ;;  %v2776_v16 = vld [vmem:[#allocation7 + $0x7] ss:$0 sm:$0xff]  ;;  %s3413_s16 = smov 120   ;;  %s3414_s19 = smov 12   ;;  %vm1373_vm13 = vcmask 917248  }
  0x2d   :  { %2968 = vmatprep.subr.mxu0 %v3407_v0  ;;  %2979 = vmatprep.subr.mxu1 %v3407_v0  ;;  %vm1379_vm14 = vcmask 982912   ;;  %vm1384_vm15 = vcmask 1015744   ;;  %s3416_s20 = smov [#allocation8]  }
  0x2e   :  { %2969 = vmatpush3.msra.mxu0 %v63_v4  ;;  %2980 = vmatpush3.msra.mxu1 %v175_v17  ;;  %v397_v4 = vld [vmem:[#allocation5 + $0x70] sm:$0xff]  ;;  %s2753_s21 = sshll.u32 %s3416_s20, 4  ;;  %s2754_s21 = int_to_ptr.vmem [resolvable:$true] %s2753_s21 }
  0x2f   :  { %2971 = vmatmul.mubr.msk.f32.vlgmr.msra.gmra.mxu0 %vm72_vm1, %v62_v5  ;;  %2984 = vmatprep.subr.mxu0 %v3407_v0  ;;  %v396_v5 = vld [vmem:[#allocation5 + $0x68] sm:$0xff]  ;;  %s3376_s22 = scalar_lea.vmem %s2754_s21, 512  ;;  %p3381_p2 = scmp.lt.s32.totalorder %s2754_s21, %s2754_s21 }
  0x30   :  { %2992 = vmatprep.mubr.msk.f32.mxu0 %vm3408_vm0, %v3407_v0  ;;  %2995 = vmatprep.subr.mxu1 %v3407_v0  ;;  %p3377_p1 = scmp.ne.s32.totalorder %s2754_s21, %s3376_s22  ;;  %p3382_p3 = scmp.lt.s32.totalorder %s3376_s22, %s3376_s22 }
  0x31   :  { %2985 = vmatpush3.msra.mxu0 %v288_v40 }
  0x32   :  { %2986 = vmatprep.subr.mxu0 %v3407_v0  ;;  %p3383_p4 = por %p3382_p3, %p3381_p2 }
  0x33   :  { %2987 = vmatpush3.msra.mxu0 %v287_v41 }
  0x34   :  { %2988 = vmatprep.subr.mxu0 %v3407_v0  ;;  %p3384_p5 = pnand %p3383_p4, %p3377_p1 }
  0x35   :  { %2989 = vmatpush3.msra.mxu0 %v286_v42  ;;  %v2780_v42 = vld [vmem:[#allocation7 + $0xa] ss:$0 sm:$0xff] }
  0x36   :  { %2990 = vmatprep.subr.mxu0 %v3407_v0 }
  0x37   :  { %2991 = vmatpush3.msra.mxu0 %v285_v43 }
  0x38   :  { %3006 = vmatprep.subr.mxu0 %v3407_v0 }
  0xef   :  { %v142_v7 = vpop.f32.mrf.mxu0 }
  0xf0   :  { %v143_v8 = vadd.f32 %v2766_v6, %v142_v7  ;;  %v395_v6 = vld [vmem:[#allocation5 + $0x60] sm:$0xff] }
  0xf1   :  { %v2972_v9 = vpop.f32.mrf.mxu0 }
  0xf2   :  { %v146_v10 = vmax.f32 %v143_v8, 0.0 }
  0xf4   :  { %v147_v11 = vsel %vm72_vm1, %v146_v10, 0.0  ;;  %v152_v12 = vmul.f32 %v146_v10, %v146_v10 }
  0xf5   :  { %148 = vadd.xlane.f32.xlu0 %v147_v11 }
  0xf6   :  { %v153_v13 = vsel %vm72_vm1, %v152_v12, 0.0 }
  0xf9   :  { %154 = vadd.xlane.f32.xlu0 %v153_v13 }
 0x17e   :  { %v149_v18 = vpop.xlane.xlu0 %148 }
 0x17f   :  { %v151_v19 = vmul.f32 0.03125, %v149_v18  ;;  %v2777_v18 = vld [vmem:[#allocation7 + $0x8] ss:$0 sm:$0xff] }
 0x181   :  { %v157_v21 = vmul.f32 %v151_v19, %v151_v19  ;;  %v159_v25 = vsub.f32 %v146_v10, %v151_v19 }
 0x182   :  { %v155_v20 = vpop.xlane.xlu0 %154 }
 0x183   :  { %v156_v22 = vmul.f32 0.03125, %v155_v20 }
 0x185   :  { %v158_v23 = vsub.f32 %v156_v22, %v157_v21  ;;  %v2778_v21 = vld [vmem:[#allocation7 + $0x9] ss:$0 sm:$0xff] }
 0x187   :  { %v160_v24 = vadd.f32 1e-05, %v158_v23 }
 0x189   :  { %3236 = vrsqrt.f32 %v160_v24 }
 0x196   :  { %v3237_v26 = vpop.eup %3236 }
 0x197   :  { %v162_v28 = vmul.f32 %v3237_v26, %v159_v25 }
 0x199   :  { %v168_v30 = vmul.f32 %v2768_v27, %v162_v28 }
 0x19b   :  { %v174_v31 = vadd.f32 %v2769_v29, %v168_v30  ;;  %v508_v29 = vld [vmem:[#allocation5 + $0x98] sm:$0xff]  ;;  %v507_v30 = vld [vmem:[#allocation5 + $0x90] sm:$0xff] }
 0x19d   :  { %2982 = vmatmul.mubr.msk.f32.vlgmr.msra.gmra.mxu1 %vm72_vm1, %v174_v31  ;;  %v506_v31 = vld [vmem:[#allocation5 + $0x88] sm:$0xff] }
 0x19e   :  { %3003 = vmatprep.mubr.msk.f32.mxu1 %vm3408_vm0, %v3407_v0  ;;  %2996 = vmatpush3.msra.mxu1 %v398_v3  ;;  %v2784_v3 = vld [vmem:[#allocation7 + $0xd] ss:$0 sm:$0xff] }
 0x19f   :  { %2997 = vmatprep.subr.mxu1 %v3407_v0 }
 0x1a0   :  { %2998 = vmatpush3.msra.mxu1 %v397_v4 }
 0x1a1   :  { %2999 = vmatprep.subr.mxu1 %v3407_v0 }
 0x1a2   :  { %3000 = vmatpush3.msra.mxu1 %v396_v5  ;;  %v2785_v5 = vld [vmem:[#allocation7 + $0xe] ss:$0 sm:$0xff] }
 0x1a3   :  { %3001 = vmatprep.subr.mxu1 %v3407_v0 }
 0x1a4   :  { %3002 = vmatpush3.msra.mxu1 %v395_v6 }
 0x1a5   :  { %3017 = vmatprep.subr.mxu1 %v3407_v0 }
 0x25d   :  { %v253_v33 = vpop.f32.mrf.mxu1 }
 0x25e   :  { %v254_v34 = vadd.f32 %v2770_v32, %v253_v33  ;;  %v505_v32 = vld [vmem:[#allocation5 + $0x80] sm:$0xff] }
 0x25f   :  { %v2983_v35 = vpop.f32.mrf.mxu1 }
 0x260   :  { %v257_v36 = vmax.f32 %v254_v34, 0.0 }
 0x262   :  { %v258_v37 = vsel %vm72_vm1, %v257_v36, 0.0  ;;  %v262_v38 = vmul.f32 %v257_v36, %v257_v36 }
 0x263   :  { %259 = vadd.xlane.f32.xlu1 %v258_v37 }
 0x264   :  { %v263_v39 = vsel %vm72_vm1, %v262_v38, 0.0 }
 0x267   :  { %264 = vadd.xlane.f32.xlu1 %v263_v39 }
 0x2ec   :  { %v260_v44 = vpop.xlane.xlu1 %259 }
 0x2ed   :  { %v261_v45 = vmul.f32 0.03125, %v260_v44  ;;  %v2781_v44 = vld [vmem:[#allocation7 + $0xb] ss:$0 sm:$0xff] }
 0x2ef   :  { %v267_v47 = vmul.f32 %v261_v45, %v261_v45  ;;  %v269_v51 = vsub.f32 %v257_v36, %v261_v45 }
 0x2f0   :  { %v265_v46 = vpop.xlane.xlu1 %264 }
 0x2f1   :  { %v266_v48 = vmul.f32 0.03125, %v265_v46 }
 0x2f3   :  { %v268_v49 = vsub.f32 %v266_v48, %v267_v47  ;;  %v2782_v47 = vld [vmem:[#allocation7 + $0xc] ss:$0 sm:$0xff] }
 0x2f5   :  { %v270_v50 = vadd.f32 1e-05, %v268_v49 }
 0x2f7   :  { %3238 = vrsqrt.f32 %v270_v50 }
 0x304   :  { %v3239_v52 = vpop.eup %3238 }
 0x305   :  { %v272_v54 = vmul.f32 %v3239_v52, %v269_v51 }
 0x307   :  { %v278_v56 = vmul.f32 %v2772_v53, %v272_v54 }
 0x309   :  { %v284_v57 = vadd.f32 %v2773_v55, %v278_v56  ;;  %v618_v55 = vld [vmem:[#allocation5 + $0xa8] sm:$0xff]  ;;  %v617_v56 = vld [vmem:[#allocation5 + $0xa0] sm:$0xff] }
 0x30b   :  { %2993 = vmatmul.mubr.msk.f32.vlgmr.msra.gmra.mxu0 %vm72_vm1, %v284_v57 }
 0x30c   :  { %3014 = vmatprep.mubr.msk.f32.mxu0 %vm3408_vm0, %v3407_v0  ;;  %3007 = vmatpush3.msra.mxu0 %v508_v29 }
 0x30d   :  { %3008 = vmatprep.subr.mxu0 %v3407_v0 }
 0x30e   :  { %3009 = vmatpush3.msra.mxu0 %v507_v30 }
 0x30f   :  { %3010 = vmatprep.subr.mxu0 %v3407_v0 }
 0x310   :  { %3011 = vmatpush3.msra.mxu0 %v506_v31 }
 0x311   :  { %3012 = vmatprep.subr.mxu0 %v3407_v0 }
 0x312   :  { %3013 = vmatpush3.msra.mxu0 %v505_v32 }
 0x313   :  { %3033 = vmatprep.subr.mxu0 %v3407_v0 }
 0x3cb   :  { %v363_v59 = vpop.f32.mrf.mxu0 }
 0x3cc   :  { %v364_v60 = vadd.f32 %v2774_v58, %v363_v59 }
 0x3cd   :  { %v2994_v61 = vpop.f32.mrf.mxu0 }
 0x3ce   :  { %v367_v62 = vmax.f32 %v364_v60, 0.0 }
 0x3d0   :  { %v368_v63 = vsel %vm72_vm1, %v367_v62, 0.0  ;;  %v372_v1 = vmul.f32 %v367_v62, %v367_v62 }
 0x3d1   :  { %369 = vadd.xlane.f32.xlu0 %v368_v63 }
 0x3d2   :  { %v373_v2 = vsel %vm72_vm1, %v372_v1, 0.0 }
 0x3d3   :  { %374 = vadd.xlane.f32.xlu1 %v373_v2 }
 0x45a   :  { %v370_v7 = vpop.xlane.xlu0 %369 }
 0x45b   :  { %v371_v8 = vmul.f32 0.03125, %v370_v7 }
 0x45c   :  { %v375_v9 = vpop.xlane.xlu1 %374 }
 0x45d   :  { %v377_v10 = vmul.f32 %v371_v8, %v371_v8  ;;  %v376_v11 = vmul.f32 0.03125, %v375_v9  ;;  %v379_v14 = vsub.f32 %v367_v62, %v371_v8  ;;  %v2786_v8 = vld [vmem:[#allocation7 + $0xf] ss:$0 sm:$0xff] }
 0x45f   :  { %v378_v12 = vsub.f32 %v376_v11, %v377_v10 }
 0x461   :  { %v380_v13 = vadd.f32 1e-05, %v378_v12 }
 0x463   :  { %3240 = vrsqrt.f32 %v380_v13 }
 0x470   :  { %v3241_v15 = vpop.eup %3240 }
 0x471   :  { %v382_v17 = vmul.f32 %v3241_v15, %v379_v14 }
 0x473   :  { %v388_v19 = vmul.f32 %v2776_v16, %v382_v17 }
 0x475   :  { %v394_v20 = vadd.f32 %v2777_v18, %v388_v19 }
 0x477   :  { %3004 = vmatmul.mubr.msk.f32.vlgmr.msra.gmra.mxu1 %vm72_vm1, %v394_v20 }
 0x478   :  { %3021 = vmatprep.mubr.msk.f32.mxu1 %vm3408_vm0, %v3407_v0  ;;  %3018 = vmatpush3.msra.mxu1 %v618_v55 }
 0x479   :  { %3019 = vmatprep.subr.mxu1 %v3407_v0 }
 0x47a   :  { %3020 = vmatpush3.msra.mxu1 %v617_v56 }
 0x47b   :  { %3024 = vmatprep.subr.mxu1 %v3407_v0 }
 0x537   :  { %v473_v22 = vpop.f32.mrf.mxu1 }
 0x538   :  { %v474_v23 = vadd.f32 %v2778_v21, %v473_v22 }
 0x539   :  { %v3005_v24 = vpop.f32.mrf.mxu1 }
 0x53a   :  { %v477_v25 = vmax.f32 %v474_v23, 0.0 }
 0x53c   :  { %v478_v26 = vsel %vm72_vm1, %v477_v25, 0.0  ;;  %v482_v27 = vmul.f32 %v477_v25, %v477_v25 }
 0x53d   :  { %479 = vadd.xlane.f32.xlu0 %v478_v26 }
 0x53e   :  { %v483_v28 = vsel %vm72_vm1, %v482_v27, 0.0 }
 0x53f   :  { %484 = vadd.xlane.f32.xlu1 %v483_v28  ;;  %v721_v28 = vld [vmem:[#allocation2] sm:$0xff] }
 0x540   :  { %v722_v29 = vadd.f32 1e-08, %v721_v28  ;;  %v1028_v28 = vld [vmem:[#allocation5 + $0xec] sm:$0xff] }
 0x5c6   :  { %v480_v33 = vpop.xlane.xlu0 %479 }
 0x5c7   :  { %v481_v34 = vmul.f32 0.03125, %v480_v33 }
 0x5c8   :  { %v485_v35 = vpop.xlane.xlu1 %484 }
 0x5c9   :  { %v487_v36 = vmul.f32 %v481_v34, %v481_v34  ;;  %v486_v37 = vmul.f32 0.03125, %v485_v35  ;;  %v489_v40 = vsub.f32 %v477_v25, %v481_v34 }
 0x5cb   :  { %v488_v38 = vsub.f32 %v486_v37, %v487_v36 }
 0x5cd   :  { %v490_v39 = vadd.f32 1e-05, %v488_v38 }
 0x5cf   :  { %3242 = vrsqrt.f32 %v490_v39 }
 0x5dc   :  { %v3243_v41 = vpop.eup %3242 }
 0x5dd   :  { %v492_v43 = vmul.f32 %v3243_v41, %v489_v40 }
 0x5df   :  { %v498_v45 = vmul.f32 %v2780_v42, %v492_v43 }
 0x5e1   :  { %v504_v46 = vadd.f32 %v2781_v44, %v498_v45 }
 0x5e3   :  { %3015 = vmatmul.mubr.msk.f32.vlgmr.msra.gmra.mxu0 %vm72_vm1, %v504_v46 }
 0x5e4   :  { %3037 = vmatprep.mubr.msk.f32.mxu0 %vm3408_vm0, %v3407_v0 }
 0x6a3   :  { %v583_v48 = vpop.f32.mrf.mxu0 }
 0x6a4   :  { %v584_v49 = vadd.f32 %v2782_v47, %v583_v48 }
 0x6a5   :  { %v3016_v50 = vpop.f32.mrf.mxu0 }
 0x6a6   :  { %v587_v51 = vmax.f32 %v584_v49, 0.0  ;;  %v752_v50 = vld [vmem:[#allocation5 + $0xc0] sm:$0xff] }
 0x6a8   :  { %v589_v52 = vsel %vm588_vm2, %v587_v51, 0.0  ;;  %v594_v53 = vmul.f32 %v587_v51, %v587_v51 }
 0x6a9   :  { %590 = vadd.xlane.f32.xlu0 %v589_v52 }
 0x6aa   :  { %v595_v54 = vsel %vm588_vm2, %v594_v53, 0.0  ;;  %v750_v53 = vld [vmem:[#allocation5 + $0xb0] sm:$0xff] }
 0x6ab   :  { %596 = vadd.xlane.f32.xlu1 %v595_v54 }
 0x732   :  { %v591_v57 = vpop.xlane.xlu0 %590 }
 0x733   :  { %v593_v58 = vmul.f32 0.0625, %v591_v57 }
 0x734   :  { %v597_v59 = vpop.xlane.xlu1 %596 }
 0x735   :  { %v599_v60 = vmul.f32 %v593_v58, %v593_v58  ;;  %v598_v61 = vmul.f32 0.0625, %v597_v59  ;;  %v601_v1 = vsub.f32 %v587_v51, %v593_v58  ;;  %v751_v51 = vld [vmem:[#allocation5 + $0xb8] sm:$0xff]  ;;  %v2788_v58 = vld [vmem:[#allocation7 + $0x10] ss:$0 sm:$0xff] }
 0x737   :  { %v600_v62 = vsub.f32 %v598_v61, %v599_v60 }
 0x739   :  { %v602_v63 = vadd.f32 1e-05, %v600_v62 }
 0x73b   :  { %3244 = vrsqrt.f32 %v602_v63 }
 0x748   :  { %v3245_v2 = vpop.eup %3244 }
 0x749   :  { %v604_v4 = vmul.f32 %v3245_v2, %v601_v1 }
 0x74b   :  { %v610_v6 = vmul.f32 %v2784_v3, %v604_v4  ;;  %v861_v4 = vld [vmem:[#allocation5 + $0xd0] sm:$0xf] }
 0x74c   :  { %3034 = vmatpush3.msk.msra.mxu0 %vm871_vm5, %v861_v4 }
 0x74d   :  { %v3516_v7 = vadd.f32 %v2785_v5, %v610_v6  ;;  %v860_v5 = vld [vmem:[#allocation5 + $0xc8] sm:$0xff]  ;;  %3035 = vmatprep.subr.mxu0 %v3407_v0 }
 0x74e   :  { %3036 = vmatpush3.msra.mxu0 %v860_v5 }
 0x74f   :  { %3022 = vmatmul.mubr.msk.f32.vlgmr.msra.gmra.mxu1 %vm588_vm2, %v3516_v7  ;;  %3047 = vmatprep.subr.mxu0 %v3407_v0 }
 0x750   :  { %3030 = vmatprep.mubr.msk.f32.mxu1 %vm3408_vm0, %v3407_v0  ;;  %3025 = vmatpush3.msra.mxu1 %v752_v50  ;;  %v2798_v50 = vld [vmem:[#allocation7 + $0x14] ss:$0 sm:$0xff] }
 0x751   :  { %3026 = vmatprep.subr.mxu1 %v3407_v0 }
 0x752   :  { %3027 = vmatpush3.msra.mxu1 %v751_v51 }
 0x753   :  { %3028 = vmatprep.subr.mxu1 %v3407_v0 }
 0x754   :  { %3029 = vmatpush3.msra.mxu1 %v750_v53 }
 0x755   :  { %3040 = vmatprep.subr.mxu1 %v3407_v0 }
 0x80f   :  { %v693_v9 = vpop.f32.mrf.mxu1 }
 0x810   :  { %v694_v10 = vadd.f32 %v2786_v8, %v693_v9 }
 0x811   :  { %v3023_v11 = vpop.f32.mrf.mxu1 }
 0x812   :  { %v698_v12 = vsel %vm697_vm3, %v694_v10, -inf }
 0x813   :  { %699 = vmax.xlane.f32.xlu0 %v698_v12  ;;  %v848_v12 = vld [vmem:[%s3769_s2] sm:$0xff] }
 0x89c   :  { %v700_v13 = vpop.xlane.xlu0 %699 }
 0x89d   :  { %v701_v14 = vsub.f32 %v694_v10, %v700_v13 }
 0x89f   :  { %v702_v15 = vmul.f32 1.442695, %v701_v14 }
 0x8a1   :  { %3246 = vpow2.f32 %v702_v15 }
 0x8ae   :  { %v3247_v16 = vpop.eup %3246 }
 0x8af   :  { %v704_v17 = vsel %vm697_vm3, %v3247_v16, 0.0 }
 0x8b0   :  { %705 = vadd.xlane.f32.xlu1 %v704_v17 }
 0x939   :  { %v706_v18 = vpop.xlane.xlu1 %705 }
 0x93a   :  { %3248 = vrcp.f32 %v706_v18  ;;  %v947_v18 = vld [vmem:[#allocation5 + $0xdc] sm:$0xff] }
 0x947   :  { %v3249_v19 = vpop.eup %3248 }
 0x948   :  { %v3524_v20 = vmul.f32 %v3249_v19, %v3247_v16  ;;  %v946_v19 = vld [vmem:[#allocation5 + $0xd4] sm:$0xff] }
 0x94a   :  { %v709_v21 = vmul.f32 8.0, %v3524_v20 }
 0x94c   :  { %v710_v22 = vsel %vm697_vm3, %v709_v21, -inf }
 0x94d   :  { %711 = vmax.xlane.f32.xlu0 %v710_v22  ;;  %v2791_v22 = vld [vmem:[#allocation7 + $0x11] ss:$0 sm:$0xff] }
 0x9d6   :  { %v712_v23 = vpop.xlane.xlu0 %711 }
 0x9d7   :  { %v713_v24 = vsub.f32 %v709_v21, %v712_v23  ;;  %v1030_v21 = vld [vmem:[#allocation5 + $0xfc] sm:$0xff] }
 0x9d9   :  { %v714_v25 = vmul.f32 1.442695, %v713_v24 }
 0x9db   :  { %3250 = vpow2.f32 %v714_v25 }
 0x9dc   :  { %3252 = vlog2.f32 %v722_v29  ;;  %v1027_v29 = vld [vmem:[#allocation5 + $0xe4] sm:$0xff] }
 0x9e8   :  { %v3251_v26 = vpop.eup %3250 }
 0x9e9   :  { %v716_v27 = vsel %vm697_vm3, %v3251_v26, 0.0  ;;  %v3253_v30 = vpop.eup %3252 }
 0x9ea   :  { %717 = vadd.xlane.f32.xlu1 %v716_v27  ;;  %v724_v31 = vmul.f32 0.6931472, %v3253_v30  ;;  %v1029_v27 = vld [vmem:[#allocation5 + $0xf4] sm:$0xff]  ;;  %v1113_v30 = vld [vmem:[#allocation5 + $0x11c] sm:$0xff] }
 0x9ec   :  { %v725_v33 = vsub.f32 0.0, %v724_v31  ;;  %v2794_v31 = vld [vmem:[#allocation7 + $0x12] ss:$0 sm:$0xff] }
 0x9ee   :  { %v726_v34 = vadd.f32 1e-08, %v725_v33 }
 0xa73   :  { %v718_v32 = vpop.xlane.xlu1 %717 }
 0xa74   :  { %3254 = vrcp.f32 %v718_v32 }
 0xa75   :  { %3256 = vlog2.f32 %v726_v34 }
 0xa81   :  { %v3255_v35 = vpop.eup %3254 }
 0xa82   :  { %v3529_v36 = vmul.f32 %v3255_v35, %v3251_v26  ;;  %v3257_v38 = vpop.eup %3256 }
 0xa83   :  { %v728_v39 = vmul.f32 0.6931472, %v3257_v38  ;;  %v1111_v38 = vld [vmem:[#allocation5 + $0x10c] sm:$0xff] }
 0xa84   :  { %v730_v37 = vadd.f32 1e-08, %v3529_v36 }
 0xa85   :  { %v729_v40 = vsub.f32 0.0, %v728_v39  ;;  %v1110_v39 = vld [vmem:[#allocation5 + $0x104] sm:$0xff] }
 0xa86   :  { %3258 = vlog2.f32 %v730_v37  ;;  %v1112_v37 = vld [vmem:[#allocation5 + $0x114] sm:$0xff] }
 0xa93   :  { %v3259_v41 = vpop.eup %3258 }
 0xa94   :  { %v732_v42 = vmul.f32 0.6931472, %v3259_v41  ;;  %v1195_v41 = vld [vmem:[#allocation5 + $0x134] sm:$0xff] }
 0xa96   :  { %v733_v43 = vadd.f32 %v732_v42, %v729_v40  ;;  %v1196_v40 = vld [vmem:[#allocation5 + $0x13c] sm:$0xff] }
 0xa97   :  { %v2796_v42 = vld [vmem:[#allocation7 + $0x13] ss:$0 sm:$0xff] }
 0xa98   :  { %v734_v44 = vsel %vm697_vm3, %v733_v43, -inf }
 0xa99   :  { %735 = vmax.xlane.f32.xlu0 %v734_v44 }
 0xb22   :  { %v736_v45 = vpop.xlane.xlu0 %735 }
 0xb23   :  { %v737_v46 = vsub.f32 %v733_v43, %v736_v45 }
 0xb25   :  { %v738_v47 = vmul.f32 1.442695, %v737_v46 }
 0xb27   :  { %3260 = vpow2.f32 %v738_v47  ;;  %v1194_v47 = vld [vmem:[#allocation5 + $0x12c] sm:$0xff] }
 0xb34   :  { %v3261_v48 = vpop.eup %3260 }
 0xb35   :  { %v740_v49 = vsel %vm697_vm3, %v3261_v48, 0.0 }
 0xb36   :  { %741 = vadd.xlane.f32.xlu1 %v740_v49  ;;  %v1279_v49 = vld [vmem:[#allocation5 + $0x15c] sm:$0xff] }
 0xbbf   :  { %v742_v52 = vpop.xlane.xlu1 %741 }
 0xbc0   :  { %3262 = vrcp.f32 %v742_v52 }
 0xbcd   :  { %v3263_v54 = vpop.eup %3262 }
 0xbce   :  { %v3537_v55 = vmul.f32 %v3263_v54, %v3261_v48  ;;  %v1193_v48 = vld [vmem:[#allocation5 + $0x124] sm:$0xff] }
 0xbd0   :  { %746 = vrot.lane.b32.xlu0 %v3537_v55, %s3409_s9 }
 0xc42   :  { %v747_v56 = vpop.permute.xlu0 %746 }
 0xc43   :  { %v749_v57 = vsel %vm588_vm2, %v3516_v7, %v747_v56  ;;  %v1417_v56 = vld [vmem:[#allocation5 + $0x180] sm:$0xff] }
 0xc44   :  { %3031 = vmatmul.mubr.msk.f32.vlgmr.msra.gmra.mxu1 %vm758_vm4, %v749_v57  ;;  %v1416_v57 = vld [vmem:[#allocation5 + $0x178] sm:$0xff] }
 0xc45   :  { %3044 = vmatprep.mubr.msk.f32.mxu1 %vm3408_vm0, %v3407_v0  ;;  %3041 = vmatpush3.msra.mxu1 %v947_v18  ;;  %v1528_v18 = vld [vmem:[#allocation5 + $0x1a0] sm:$0xff] }
 0xc46   :  { %3042 = vmatprep.subr.mxu1 %v3407_v0 }
 0xc47   :  { %3043 = vmatpush3.msra.mxu1 %v946_v19  ;;  %v1527_v19 = vld [vmem:[#allocation5 + $0x198] sm:$0xff] }
 0xc48   :  { %3058 = vmatprep.subr.mxu1 %v3407_v0 }
 0xd04   :  { %v828_v59 = vpop.f32.mrf.mxu1 }
 0xd05   :  { %v3546_v60 = vadd.f32 %v2788_v58, %v828_v59  ;;  %v1415_v58 = vld [vmem:[#allocation5 + $0x170] sm:$0xff]  ;;  %v1414_v59 = vld [vmem:[#allocation5 + $0x168] sm:$0xff] }
 0xd06   :  { %v3032_v61 = vpop.f32.mrf.mxu1 }
 0xd07   :  { %v2790_v62 = vmul.f32 -1.442695, %v3546_v60  ;;  %v2805_v61 = vld [vmem:[%s3767_s0 + $0x8] sm:$0xff]  ;;  %s3411_s0 = smov 96  }
 0xd09   :  { %3264 = vpow2.f32 %v2790_v62  ;;  %v1278_v62 = vld [vmem:[#allocation5 + $0x154] sm:$0xff] }
 0xd16   :  { %v3265_v63 = vpop.eup %3264 }
 0xd17   :  { %v835_v1 = vadd.f32 1.0, %v3265_v63  ;;  %v1277_v63 = vld [vmem:[#allocation5 + $0x14c] sm:$0xff] }
 0xd19   :  { %3266 = vrcp.f32 %v835_v1  ;;  %v1276_v1 = vld [vmem:[#allocation5 + $0x144] sm:$0xff] }
 0xd26   :  { %v3267_v2 = vpop.eup %3266 }
 0xd27   :  { %v3549_v3 = vadd.f32 1e-08, %v3267_v2  ;;  %v2800_v2 = vld [vmem:[#allocation7 + $0x15] ss:$0 sm:$0xff] }
 0xd29   :  { %3268 = vrsqrt.f32 %v3549_v3  ;;  %vm843_vm6 = vcmp.eq.f32.partialorder %v3549_v3, inf  ;;  %v846_v9 = vand.u32 2147483648, %v3549_v3  ;;  %vm845_vm7 = vcmp.eq.f32.partialorder %v3549_v3, 0.0 }
 0xd36   :  { %v3269_v6 = vpop.eup %3268 }
 0xd37   :  { %v842_v8 = vmul.f32 %v3269_v6, %v3549_v3 }
 0xd39   :  { %v844_v10 = vsel %vm843_vm6, %v3549_v3, %v842_v8  ;;  %vm1403_vm6 = vcmask 97344  }
 0xd3a   :  { %v847_v11 = vsel %vm845_vm7, %v846_v9, %v844_v10  ;;  %v2806_v9 = vld [vmem:[#allocation7 + $0x18] ss:$0 sm:$0xff]  ;;  %vm1409_vm7 = vcmask 162912  }
 0xd3b   :  { %850 = vrot.lane.b32.xlu1 %v847_v11, %s3410_s10 }
 0xdad   :  { %v851_v13 = vpop.permute.xlu1 %850 }
 0xdae   :  { %v853_v14 = vmul.f32 %v851_v13, %v848_v12 }
 0xdb0   :  { %v3565_v15 = vadd.f32 %v853_v14, %v3546_v60 }
 0xdb2   :  { %856 = vrot.lane.b32.xlu1 %v3565_v15, %s3405_s24 }
 0xe24   :  { %v857_v16 = vpop.permute.xlu1 %856 }
 0xe25   :  { %v859_v17 = vsel %vm697_vm3, %v3537_v55, %v857_v16 }
 0xe26   :  { %3038 = vmatmul.mubr.msk.f32.vlgmr.msra.gmra.mxu0 %vm867_vm8, %v859_v17 }
 0xe27   :  { %3055 = vmatprep.mubr.msk.f32.mxu0 %vm3408_vm0, %v3407_v0  ;;  %3048 = vmatpush3.msra.mxu0 %v1030_v21  ;;  %v1526_v21 = vld [vmem:[#allocation5 + $0x190] sm:$0xff] }
 0xe28   :  { %3049 = vmatprep.subr.mxu0 %v3407_v0 }
 0xe29   :  { %3050 = vmatpush3.msra.mxu0 %v1029_v27 }
 0xe2a   :  { %3051 = vmatprep.subr.mxu0 %v3407_v0 }
 0xe2b   :  { %3052 = vmatpush3.msra.mxu0 %v1028_v28 }
 0xe2c   :  { %3053 = vmatprep.subr.mxu0 %v3407_v0 }
 0xe2d   :  { %3054 = vmatpush3.msra.mxu0 %v1027_v29 }
 0xe2e   :  { %3069 = vmatprep.subr.mxu0 %v3407_v0 }
 0xee6   :  { %v941_v23 = vpop.f32.mrf.mxu0 }
 0xee7   :  { %v942_v24 = vadd.f32 %v2791_v22, %v941_v23  ;;  %v1525_v22 = vld [vmem:[#allocation5 + $0x188] sm:$0xff] }
 0xee8   :  { %v3039_v25 = vpop.f32.mrf.mxu0 }
 0xee9   :  { %v945_v26 = vmax.f32 %v942_v24, 0.0 }
 0xeeb   :  { %3045 = vmatmul.mubr.msk.f32.vlgmr.msra.gmra.mxu1 %vm588_vm2, %v945_v26 }
 0xeec   :  { %3066 = vmatprep.mubr.msk.f32.mxu1 %vm3408_vm0, %v3407_v0  ;;  %3059 = vmatpush3.msra.mxu1 %v1113_v30 }
 0xeed   :  { %3060 = vmatprep.subr.mxu1 %v3407_v0 }
 0xeee   :  { %3061 = vmatpush3.msra.mxu1 %v1112_v37 }
 0xeef   :  { %3062 = vmatprep.subr.mxu1 %v3407_v0 }
 0xef0   :  { %3063 = vmatpush3.msra.mxu1 %v1111_v38  ;;  %v2802_v38 = vld [vmem:[#allocation7 + $0x16] ss:$0 sm:$0xff] }
 0xef1   :  { %3064 = vmatprep.subr.mxu1 %v3407_v0 }
 0xef2   :  { %3065 = vmatpush3.msra.mxu1 %v1110_v39 }
 0xef3   :  { %3080 = vmatprep.subr.mxu1 %v3407_v0 }
 0xfab   :  { %v1022_v32 = vpop.f32.mrf.mxu1 }
 0xfac   :  { %v1023_v33 = vadd.f32 %v2794_v31, %v1022_v32  ;;  %v2808_v32 = vld [vmem:[#allocation7 + $0x19] ss:$0 sm:$0xff] }
 0xfad   :  { %v3046_v34 = vpop.f32.mrf.mxu1 }
 0xfae   :  { %v1026_v35 = vmax.f32 %v1023_v33, 0.0  ;;  %v2809_v34 = vld [vmem:[#allocation7 + $0x1a] ss:$0 sm:$0xff] }
 0xfb0   :  { %3056 = vmatmul.mubr.msk.f32.vlgmr.msra.gmra.mxu0 %vm72_vm1, %v1026_v35 }
 0xfb1   :  { %3077 = vmatprep.mubr.msk.f32.mxu0 %vm3408_vm0, %v3407_v0  ;;  %3070 = vmatpush3.msra.mxu0 %v1196_v40 }
 0xfb2   :  { %3071 = vmatprep.subr.mxu0 %v3407_v0 }
 0xfb3   :  { %3072 = vmatpush3.msra.mxu0 %v1195_v41 }
 0xfb4   :  { %3073 = vmatprep.subr.mxu0 %v3407_v0 }
 0xfb5   :  { %3074 = vmatpush3.msra.mxu0 %v1194_v47  ;;  %v2810_v47 = vld [vmem:[#allocation7 + $0x1b] ss:$0 sm:$0xff] }
 0xfb6   :  { %3075 = vmatprep.subr.mxu0 %v3407_v0 }
 0xfb7   :  { %3076 = vmatpush3.msra.mxu0 %v1193_v48 }
 0xfb8   :  { %3091 = vmatprep.subr.mxu0 %v3407_v0 }
0x1070   :  { %v1105_v43 = vpop.f32.mrf.mxu0 }
0x1071   :  { %v1106_v44 = vadd.f32 %v2796_v42, %v1105_v43 }
0x1072   :  { %v3057_v45 = vpop.f32.mrf.mxu0 }
0x1073   :  { %v1109_v46 = vmax.f32 %v1106_v44, 0.0 }
0x1075   :  { %3067 = vmatmul.mubr.msk.f32.vlgmr.msra.gmra.mxu1 %vm72_vm1, %v1109_v46 }
0x1076   :  { %3088 = vmatprep.mubr.msk.f32.mxu1 %vm3408_vm0, %v3407_v0  ;;  %3081 = vmatpush3.msra.mxu1 %v1279_v49 }
0x1077   :  { %3082 = vmatprep.subr.mxu1 %v3407_v0 }
0x1078   :  { %3083 = vmatpush3.msra.mxu1 %v1278_v62 }
0x1079   :  { %3084 = vmatprep.subr.mxu1 %v3407_v0 }
0x107a   :  { %3085 = vmatpush3.msra.mxu1 %v1277_v63 }
0x107b   :  { %3086 = vmatprep.subr.mxu1 %v3407_v0 }
0x107c   :  { %3087 = vmatpush3.msra.mxu1 %v1276_v1 }
0x107d   :  { %3102 = vmatprep.subr.mxu1 %v3407_v0 }
0x1135   :  { %v1188_v51 = vpop.f32.mrf.mxu1 }
0x1136   :  { %v1189_v52 = vadd.f32 %v2798_v50, %v1188_v51 }
0x1137   :  { %v3068_v53 = vpop.f32.mrf.mxu1 }
0x1138   :  { %v1192_v54 = vmax.f32 %v1189_v52, 0.0 }
0x113a   :  { %3078 = vmatmul.mubr.msk.f32.vlgmr.msra.gmra.mxu0 %vm72_vm1, %v1192_v54 }
0x113b   :  { %3092 = vmatpush3.msra.mxu0 %v1417_v56  ;;  %3099 = vmatprep.mubr.msk.f32.mxu0 %vm3408_vm0, %v3407_v0  ;;  %v1638_v56 = vld [vmem:[#allocation5 + $0x1c0] sm:$0xff] }
0x113c   :  { %3093 = vmatprep.subr.mxu0 %v3407_v0 }
0x113d   :  { %3094 = vmatpush3.msra.mxu0 %v1416_v57  ;;  %v1637_v57 = vld [vmem:[#allocation5 + $0x1b8] sm:$0xff] }
0x113e   :  { %3095 = vmatprep.subr.mxu0 %v3407_v0 }
0x113f   :  { %3096 = vmatpush3.msra.mxu0 %v1415_v58  ;;  %v1636_v58 = vld [vmem:[#allocation5 + $0x1b0] sm:$0xff] }
0x1140   :  { %3097 = vmatprep.subr.mxu0 %v3407_v0 }
0x1141   :  { %3098 = vmatpush3.msra.mxu0 %v1414_v59  ;;  %v1635_v59 = vld [vmem:[#allocation5 + $0x1a8] sm:$0xff] }
0x1142   :  { %3100 = vmatmul.mubr.msk.f32.vlgmr.msra.gmra.mxu0 %vm72_vm1, %v2805_v61  ;;  %3113 = vmatprep.subr.mxu0 %v3407_v0 }
0x1143   :  { %3121 = vmatprep.mubr.msk.f32.mxu0 %vm3408_vm0, %v3407_v0  ;;  %3114 = vmatpush3.msra.mxu0 %v1638_v56 }
0x1144   :  { %3115 = vmatprep.subr.mxu0 %v3407_v0 }
0x1145   :  { %3116 = vmatpush3.msra.mxu0 %v1637_v57 }
0x1146   :  { %3117 = vmatprep.subr.mxu0 %v3407_v0 }
0x1147   :  { %3118 = vmatpush3.msra.mxu0 %v1636_v58 }
0x1148   :  { %3119 = vmatprep.subr.mxu0 %v3407_v0 }
0x1149   :  { %3120 = vmatpush3.msra.mxu0 %v1635_v59 }
0x114a   :  { %3135 = vmatprep.subr.mxu0 %v3407_v0 }
0x11fa   :  { %v1271_v4 = vpop.f32.mrf.mxu0 }
0x11fb   :  { %v1272_v5 = vadd.f32 %v2800_v2, %v1271_v4 }
0x11fc   :  { %v3079_v6 = vpop.f32.mrf.mxu0 }
0x11fd   :  { %v1275_v8 = vmax.f32 %v1272_v5, 0.0 }
0x11ff   :  { %3089 = vmatmul.mubr.msk.f32.vlgmr.msra.gmra.mxu1 %vm72_vm1, %v1275_v8 }
0x1200   :  { %3110 = vmatprep.mubr.msk.f32.mxu1 %vm3408_vm0, %v3407_v0  ;;  %3103 = vmatpush3.msra.mxu1 %v1528_v18 }
0x1201   :  { %3104 = vmatprep.subr.mxu1 %v3407_v0 }
0x1202   :  { %v1493_v10 = vpop.f32.mrf.mxu0  ;;  %3105 = vmatpush3.msra.mxu1 %v1527_v19 }
0x1203   :  { %v1494_v11 = vadd.f32 %v2806_v9, %v1493_v10  ;;  %3106 = vmatprep.subr.mxu1 %v3407_v0  ;;  %v2812_v9 = vld [vmem:[#allocation7 + $0x1c] ss:$0 sm:$0xff] }
0x1204   :  { %v3101_v12 = vpop.f32.mrf.mxu0  ;;  %3107 = vmatpush3.msra.mxu1 %v1526_v21 }
0x1205   :  { %v1497_v13 = vmax.f32 %v1494_v11, 0.0  ;;  %3108 = vmatprep.subr.mxu1 %v3407_v0  ;;  %v2813_v11 = vld [vmem:[#allocation7 + $0x1d] ss:$0 sm:$0xff] }
0x1206   :  { %3109 = vmatpush3.msra.mxu1 %v1525_v22 }
0x1207   :  { %v1498_v14 = vsel %vm72_vm1, %v1497_v13, 0.0  ;;  %v1502_v16 = vmul.f32 %v1497_v13, %v1497_v13  ;;  %3124 = vmatprep.subr.mxu1 %v3407_v0 }
0x1208   :  { %1499 = vadd.xlane.f32.xlu1 %v1498_v14  ;;  %v2814_v14 = vld [vmem:[#allocation7 + $0x1e] ss:$0 sm:$0xff] }
0x1209   :  { %v1503_v17 = vsel %vm72_vm1, %v1502_v16, 0.0 }
0x120a   :  { %1504 = vadd.xlane.f32.xlu0 %v1503_v17 }
0x1291   :  { %v1500_v23 = vpop.xlane.xlu1 %1499 }
0x1292   :  { %v1501_v24 = vmul.f32 0.03125, %v1500_v23 }
0x1293   :  { %v1505_v25 = vpop.xlane.xlu0 %1504 }
0x1294   :  { %v1507_v26 = vmul.f32 %v1501_v24, %v1501_v24  ;;  %v1506_v27 = vmul.f32 0.03125, %v1505_v25  ;;  %v1509_v30 = vsub.f32 %v1497_v13, %v1501_v24  ;;  %v1748_v24 = vld [vmem:[#allocation5 + $0x1e0] sm:$0xff]  ;;  %v1747_v25 = vld [vmem:[#allocation5 + $0x1d8] sm:$0xff] }
0x1296   :  { %v1508_v28 = vsub.f32 %v1506_v27, %v1507_v26  ;;  %v1746_v26 = vld [vmem:[#allocation5 + $0x1d0] sm:$0xff]  ;;  %v1745_v27 = vld [vmem:[#allocation5 + $0x1c8] sm:$0xff] }
0x1298   :  { %v1510_v29 = vadd.f32 1e-05, %v1508_v28 }
0x129a   :  { %3270 = vrsqrt.f32 %v1510_v29 }
0x12a7   :  { %v3271_v31 = vpop.eup %3270 }
0x12a8   :  { %v1512_v33 = vmul.f32 %v3271_v31, %v1509_v30 }
0x12aa   :  { %v1518_v35 = vmul.f32 %v2808_v32, %v1512_v33 }
0x12ac   :  { %v1524_v37 = vadd.f32 %v2809_v34, %v1518_v35 }
0x12ae   :  { %3111 = vmatmul.mubr.msk.f32.vlgmr.msra.gmra.mxu1 %vm72_vm1, %v1524_v37 }
0x12af   :  { %3132 = vmatprep.mubr.msk.f32.mxu1 %vm3408_vm0, %v3407_v0  ;;  %3125 = vmatpush3.msra.mxu1 %v1748_v24 }
0x12b0   :  { %3126 = vmatprep.subr.mxu1 %v3407_v0 }
0x12b1   :  { %3127 = vmatpush3.msra.mxu1 %v1747_v25 }
0x12b2   :  { %3128 = vmatprep.subr.mxu1 %v3407_v0 }
0x12b3   :  { %3129 = vmatpush3.msra.mxu1 %v1746_v26 }
0x12b4   :  { %3130 = vmatprep.subr.mxu1 %v3407_v0 }
0x12b5   :  { %3131 = vmatpush3.msra.mxu1 %v1745_v27 }
0x12b6   :  { %3146 = vmatprep.subr.mxu1 %v3407_v0 }
0x12bf   :  { %v1354_v39 = vpop.f32.mrf.mxu1 }
0x12c0   :  { %v1355_v40 = vadd.f32 %v2802_v38, %v1354_v39  ;;  %v2816_v38 = vld [vmem:[#allocation7 + $0x1f] ss:$0 sm:$0xff] }
0x12c1   :  { %v3090_v41 = vpop.f32.mrf.mxu1 }
0x12c2   :  { %v1358_v42 = vmax.f32 %v1355_v40, 0.0  ;;  %v2804_v43 = vmul.f32 -1.442695, %v1355_v40  ;;  %v2817_v40 = vld [vmem:[#allocation7 + $0x20] ss:$0 sm:$0xff] }
0x12c4   :  { %3272 = vpow2.f32 %v2804_v43  ;;  %1365 = vst.msk [vmem:[#allocation8] sm:$0xff] %vm72_vm1, %v1358_v42  ;;  %v2818_v43 = vld [vmem:[#allocation7 + $0x21] ss:$0 sm:$0xff] }
0x12d1   :  { %v3273_v44 = vpop.eup %3272 }
0x12d2   :  { %v1362_v45 = vadd.f32 1.0, %v3273_v44 }
0x12d4   :  { %3274 = vrcp.f32 %v1362_v45 }
0x12e1   :  { %v3275_v46 = vpop.eup %3274 }
0x12e2   :  { %1367 = vst.msk [vmem:[#allocation8] sm:$0xff] %vm1366_vm9, %v3275_v46 }
0x12e3   :  { %1369 = vst.msk [vmem:[#allocation8] sm:$0xff] %vm1368_vm10, %v3275_v46 }
0x136e   :  { %v1603_v48 = vpop.f32.mrf.mxu1 }
0x136f   :  { %v1604_v49 = vadd.f32 %v2810_v47, %v1603_v48 }
0x1370   :  { %v3112_v50 = vpop.f32.mrf.mxu1 }
0x1371   :  { %v1607_v51 = vmax.f32 %v1604_v49, 0.0 }
0x1373   :  { %v1608_v52 = vsel %vm72_vm1, %v1607_v51, 0.0  ;;  %v1612_v53 = vmul.f32 %v1607_v51, %v1607_v51 }
0x1374   :  { %1609 = vadd.xlane.f32.xlu0 %v1608_v52  ;;  %v1857_v52 = vld [vmem:[#allocation5 + $0x1f8] sm:$0xff] }
0x1375   :  { %v1613_v54 = vsel %vm72_vm1, %v1612_v53, 0.0  ;;  %v1856_v53 = vld [vmem:[#allocation5 + $0x1f0] sm:$0xff] }
0x1378   :  { %1614 = vadd.xlane.f32.xlu0 %v1613_v54  ;;  %v1855_v54 = vld [vmem:[#allocation5 + $0x1e8] sm:$0xff] }
0x13fd   :  { %v1610_v61 = vpop.xlane.xlu0 %1609 }
0x13fe   :  { %v1611_v62 = vmul.f32 0.03125, %v1610_v61 }
0x1400   :  { %v1617_v1 = vmul.f32 %v1611_v62, %v1611_v62  ;;  %v1619_v6 = vsub.f32 %v1607_v51, %v1611_v62  ;;  %v1858_v51 = vld [vmem:[#allocation5 + $0x200] sm:$0xff] }
0x1401   :  { %v1615_v63 = vpop.xlane.xlu0 %1614 }
0x1402   :  { %v1616_v2 = vmul.f32 0.03125, %v1615_v63 }
0x1404   :  { %v1618_v4 = vsub.f32 %v1616_v2, %v1617_v1 }
0x1406   :  { %v1620_v5 = vadd.f32 1e-05, %v1618_v4  ;;  %v2820_v4 = vld [vmem:[#allocation7 + $0x22] ss:$0 sm:$0xff] }
0x1408   :  { %3276 = vrsqrt.f32 %v1620_v5 }
0x1415   :  { %v3277_v8 = vpop.eup %3276 }
0x1416   :  { %v1622_v10 = vmul.f32 %v3277_v8, %v1619_v6  ;;  %v2821_v6 = vld [vmem:[#allocation7 + $0x23] ss:$0 sm:$0xff] }
0x1418   :  { %v1628_v12 = vmul.f32 %v2812_v9, %v1622_v10  ;;  %v2822_v10 = vld [vmem:[#allocation7 + $0x24] ss:$0 sm:$0xff] }
0x141a   :  { %v1634_v13 = vadd.f32 %v2813_v11, %v1628_v12 }
0x141c   :  { %3122 = vmatmul.mubr.msk.f32.vlgmr.msra.gmra.mxu0 %vm72_vm1, %v1634_v13 }
0x141d   :  { %3143 = vmatprep.mubr.msk.f32.mxu0 %vm3408_vm0, %v3407_v0  ;;  %3136 = vmatpush3.msra.mxu0 %v1858_v51 }
0x141e   :  { %3137 = vmatprep.subr.mxu0 %v3407_v0 }
0x141f   :  { %3138 = vmatpush3.msra.mxu0 %v1857_v52 }
0x1420   :  { %3139 = vmatprep.subr.mxu0 %v3407_v0 }
0x1421   :  { %3140 = vmatpush3.msra.mxu0 %v1856_v53 }
0x1422   :  { %3141 = vmatprep.subr.mxu0 %v3407_v0 }
0x1423   :  { %3142 = vmatpush3.msra.mxu0 %v1855_v54 }
0x1424   :  { %3162 = vmatprep.subr.mxu0 %v3407_v0 }
0x14dc   :  { %v1713_v16 = vpop.f32.mrf.mxu0 }
0x14dd   :  { %v1714_v17 = vadd.f32 %v2814_v14, %v1713_v16 }
0x14de   :  { %v3123_v18 = vpop.f32.mrf.mxu0 }
0x14df   :  { %v1717_v19 = vmax.f32 %v1714_v17, 0.0 }
0x14e1   :  { %v1718_v21 = vsel %vm72_vm1, %v1717_v19, 0.0  ;;  %v1722_v22 = vmul.f32 %v1717_v19, %v1717_v19 }
0x14e2   :  { %1719 = vadd.xlane.f32.xlu1 %v1718_v21  ;;  %v1965_v21 = vld [vmem:[#allocation5 + $0x208] sm:$0xff] }
0x14e3   :  { %v1723_v23 = vsel %vm72_vm1, %v1722_v22, 0.0 }
0x14e4   :  { %1724 = vadd.xlane.f32.xlu0 %v1723_v23 }
0x156b   :  { %v1720_v28 = vpop.xlane.xlu1 %1719 }
0x156c   :  { %v1721_v29 = vmul.f32 0.03125, %v1720_v28 }
0x156d   :  { %v1725_v30 = vpop.xlane.xlu0 %1724 }
0x156e   :  { %v1727_v31 = vmul.f32 %v1721_v29, %v1721_v29  ;;  %v1726_v32 = vmul.f32 0.03125, %v1725_v30  ;;  %v1729_v35 = vsub.f32 %v1717_v19, %v1721_v29  ;;  %v1966_v19 = vld [vmem:[#allocation5 + $0x210] sm:$0xff] }
0x1570   :  { %v1728_v33 = vsub.f32 %v1726_v32, %v1727_v31  ;;  %v2824_v31 = vld [vmem:[#allocation7 + $0x25] ss:$0 sm:$0xff] }
0x1572   :  { %v1730_v34 = vadd.f32 1e-05, %v1728_v33  ;;  %v2825_v33 = vld [vmem:[#allocation7 + $0x26] ss:$0 sm:$0xff] }
0x1574   :  { %3278 = vrsqrt.f32 %v1730_v34 }
0x1581   :  { %v3279_v37 = vpop.eup %3278 }
0x1582   :  { %v1732_v39 = vmul.f32 %v3279_v37, %v1729_v35  ;;  %v2826_v37 = vld [vmem:[#allocation7 + $0x27] ss:$0 sm:$0xff] }
0x1584   :  { %v1738_v41 = vmul.f32 %v2816_v38, %v1732_v39 }
0x1586   :  { %v1744_v42 = vadd.f32 %v2817_v40, %v1738_v41 }
0x1588   :  { %3133 = vmatmul.mubr.msk.f32.vlgmr.msra.gmra.mxu1 %vm72_vm1, %v1744_v42 }
0x1589   :  { %3150 = vmatprep.mubr.msk.f32.mxu1 %vm3408_vm0, %v3407_v0  ;;  %3147 = vmatpush3.msra.mxu1 %v1966_v19 }
0x158a   :  { %3148 = vmatprep.subr.mxu1 %v3407_v0 }
0x158b   :  { %3149 = vmatpush3.msra.mxu1 %v1965_v21 }
0x158c   :  { %3153 = vmatprep.subr.mxu1 %v3407_v0 }
0x1648   :  { %v1823_v44 = vpop.f32.mrf.mxu1 }
0x1649   :  { %v1824_v45 = vadd.f32 %v2818_v43, %v1823_v44 }
0x164a   :  { %v3134_v46 = vpop.f32.mrf.mxu1 }
0x164b   :  { %v1827_v47 = vmax.f32 %v1824_v45, 0.0 }
0x164d   :  { %v1828_v48 = vsel %vm72_vm1, %v1827_v47, 0.0  ;;  %v1832_v49 = vmul.f32 %v1827_v47, %v1827_v47 }
0x164e   :  { %1829 = vadd.xlane.f32.xlu1 %v1828_v48 }
0x164f   :  { %v1833_v50 = vsel %vm72_vm1, %v1832_v49, 0.0 }
0x1650   :  { %1834 = vadd.xlane.f32.xlu0 %v1833_v50 }
0x16d7   :  { %v1830_v56 = vpop.xlane.xlu1 %1829 }
0x16d8   :  { %v1831_v57 = vmul.f32 0.03125, %v1830_v56 }
0x16d9   :  { %v1835_v58 = vpop.xlane.xlu0 %1834 }
0x16da   :  { %v1837_v59 = vmul.f32 %v1831_v57, %v1831_v57  ;;  %v1836_v61 = vmul.f32 0.03125, %v1835_v58  ;;  %v1839_v1 = vsub.f32 %v1827_v47, %v1831_v57  ;;  %v2069_v58 = vld [vmem:[#allocation2 + $0x8] sm:$0xff] }
0x16dc   :  { %v1838_v62 = vsub.f32 %v1836_v61, %v1837_v59  ;;  %v2070_v59 = vadd.f32 1e-08, %v2069_v58 }
0x16de   :  { %v1840_v63 = vadd.f32 1e-05, %v1838_v62 }
0x16e0   :  { %3280 = vrsqrt.f32 %v1840_v63 }
0x16ed   :  { %v3281_v2 = vpop.eup %3280 }
0x16ee   :  { %v1842_v5 = vmul.f32 %v3281_v2, %v1839_v1 }
0x16f0   :  { %v1848_v8 = vmul.f32 %v2820_v4, %v1842_v5 }
0x16f2   :  { %v1854_v9 = vadd.f32 %v2821_v6, %v1848_v8 }
0x16f4   :  { %3144 = vmatmul.mubr.msk.f32.vlgmr.msra.gmra.mxu0 %vm72_vm1, %v1854_v9 }
0x16f5   :  { %3166 = vmatprep.mubr.msk.f32.mxu0 %vm3408_vm0, %v3407_v0 }
0x17b4   :  { %v1933_v11 = vpop.f32.mrf.mxu0 }
0x17b5   :  { %v1934_v12 = vadd.f32 %v2822_v10, %v1933_v11 }
0x17b6   :  { %v3145_v13 = vpop.f32.mrf.mxu0 }
0x17b7   :  { %v1937_v14 = vmax.f32 %v1934_v12, 0.0 }
0x17b9   :  { %v1938_v16 = vsel %vm588_vm2, %v1937_v14, 0.0  ;;  %v1942_v17 = vmul.f32 %v1937_v14, %v1937_v14 }
0x17ba   :  { %1939 = vadd.xlane.f32.xlu1 %v1938_v16 }
0x17bb   :  { %v1943_v18 = vsel %vm588_vm2, %v1942_v17, 0.0 }
0x17bc   :  { %1944 = vadd.xlane.f32.xlu0 %v1943_v18 }
0x1843   :  { %v1940_v22 = vpop.xlane.xlu1 %1939 }
0x1844   :  { %v1941_v23 = vmul.f32 0.0625, %v1940_v22  ;;  %v2100_v22 = vld [vmem:[#allocation5 + $0x228] sm:$0xff] }
0x1845   :  { %v1945_v24 = vpop.xlane.xlu0 %1944 }
0x1846   :  { %v1947_v25 = vmul.f32 %v1941_v23, %v1941_v23  ;;  %v1946_v26 = vmul.f32 0.0625, %v1945_v24  ;;  %v1949_v29 = vsub.f32 %v1937_v14, %v1941_v23  ;;  %v2099_v23 = vld [vmem:[#allocation5 + $0x220] sm:$0xff] }
0x1848   :  { %v1948_v27 = vsub.f32 %v1946_v26, %v1947_v25  ;;  %v2098_v25 = vld [vmem:[#allocation5 + $0x218] sm:$0xff] }
0x184a   :  { %v1950_v28 = vadd.f32 1e-05, %v1948_v27 }
0x184c   :  { %3282 = vrsqrt.f32 %v1950_v28 }
0x1859   :  { %v3283_v30 = vpop.eup %3282 }
0x185a   :  { %v1952_v32 = vmul.f32 %v3283_v30, %v1949_v29  ;;  %v2828_v30 = vld [vmem:[#allocation7 + $0x28] ss:$0 sm:$0xff] }
0x185c   :  { %v1958_v34 = vmul.f32 %v2824_v31, %v1952_v32 }
0x185e   :  { %v3660_v35 = vadd.f32 %v2825_v33, %v1958_v34 }
0x1860   :  { %3151 = vmatmul.mubr.msk.f32.vlgmr.msra.gmra.mxu1 %vm588_vm2, %v3660_v35 }
0x1861   :  { %3159 = vmatprep.mubr.msk.f32.mxu1 %vm3408_vm0, %v3407_v0  ;;  %3154 = vmatpush3.msra.mxu1 %v2100_v22 }
0x1862   :  { %3155 = vmatprep.subr.mxu1 %v3407_v0 }
0x1863   :  { %3156 = vmatpush3.msra.mxu1 %v2099_v23 }
0x1864   :  { %3157 = vmatprep.subr.mxu1 %v3407_v0 }
0x1865   :  { %3158 = vmatpush3.msra.mxu1 %v2098_v25  ;;  %v2457_v25 = vld [vmem:[#allocation5 + $0x274] sm:$0xff] }
0x1866   :  { %3176 = vmatprep.subr.mxu1 %v3407_v0 }
0x1920   :  { %v2041_v38 = vpop.f32.mrf.mxu1 }
0x1921   :  { %v2042_v39 = vadd.f32 %v2826_v37, %v2041_v38 }
0x1922   :  { %v3152_v40 = vpop.f32.mrf.mxu1 }
0x1923   :  { %v2045_v41 = vsel %vm697_vm3, %v2042_v39, -inf }
0x1924   :  { %2046 = vmax.xlane.f32.xlu1 %v2045_v41 }
0x19ad   :  { %v2047_v42 = vpop.xlane.xlu1 %2046 }
0x19ae   :  { %v2048_v43 = vsub.f32 %v2042_v39, %v2047_v42 }
0x19b0   :  { %v2049_v44 = vmul.f32 1.442695, %v2048_v43 }
0x19b2   :  { %3284 = vpow2.f32 %v2049_v44 }
0x19bf   :  { %v3285_v45 = vpop.eup %3284 }
0x19c0   :  { %v2051_v46 = vsel %vm697_vm3, %v3285_v45, 0.0 }
0x19c1   :  { %2052 = vadd.xlane.f32.xlu0 %v2051_v46  ;;  %v2209_v46 = vld [vmem:[#allocation5 + $0x238] sm:$0xf] }
0x19c2   :  { %3163 = vmatpush3.msk.msra.mxu0 %vm871_vm5, %v2209_v46  ;;  %vm1391_vm5 = vcmask 31744   ;;  %v2622_v46 = vld [vmem:[#allocation5 + $0x2ac] sm:$0xff] }
0x19c3   :  { %3164 = vmatprep.subr.mxu0 %v3407_v0 }
0x1a4a   :  { %v2053_v47 = vpop.xlane.xlu0 %2052 }
0x1a4b   :  { %3286 = vrcp.f32 %v2053_v47  ;;  %v2208_v47 = vld [vmem:[#allocation5 + $0x230] sm:$0xff] }
0x1a4c   :  { %3165 = vmatpush3.msra.mxu0 %v2208_v47  ;;  %v2841_v47 = vld [vmem:[#allocation7 + $0x2d] ss:$0 sm:$0xff] }
0x1a4d   :  { %3169 = vmatprep.subr.mxu0 %v3407_v0 }
0x1a58   :  { %v3287_v48 = vpop.eup %3286 }
0x1a59   :  { %v3668_v49 = vmul.f32 %v3287_v48, %v3285_v45 }
0x1a5b   :  { %v2056_v50 = vmul.f32 8.0, %v3668_v49 }
0x1a5d   :  { %v2057_v51 = vsel %vm697_vm3, %v2056_v50, -inf }
0x1a5e   :  { %2058 = vmax.xlane.f32.xlu1 %v2057_v51 }
0x1ae7   :  { %v2059_v52 = vpop.xlane.xlu1 %2058 }
0x1ae8   :  { %v2060_v53 = vsub.f32 %v2056_v50, %v2059_v52 }
0x1aea   :  { %v2061_v54 = vmul.f32 1.442695, %v2060_v53 }
0x1aec   :  { %3288 = vpow2.f32 %v2061_v54 }
0x1aed   :  { %3290 = vlog2.f32 %v2070_v59 }
0x1af9   :  { %v3289_v56 = vpop.eup %3288 }
0x1afa   :  { %v2063_v57 = vsel %vm697_vm3, %v3289_v56, 0.0  ;;  %v3291_v61 = vpop.eup %3290 }
0x1afb   :  { %2064 = vadd.xlane.f32.xlu0 %v2063_v57  ;;  %v2072_v62 = vmul.f32 0.6931472, %v3291_v61 }
0x1afd   :  { %v2073_v1 = vsub.f32 0.0, %v2072_v62 }
0x1aff   :  { %v2074_v2 = vadd.f32 1e-08, %v2073_v1 }
0x1b84   :  { %v2065_v63 = vpop.xlane.xlu0 %2064 }
0x1b85   :  { %3292 = vrcp.f32 %v2065_v63 }
0x1b86   :  { %3294 = vlog2.f32 %v2074_v2 }
0x1b92   :  { %v3293_v4 = vpop.eup %3292 }
0x1b93   :  { %v2067_v5 = vmul.f32 %v3293_v4, %v3289_v56  ;;  %v3295_v8 = vpop.eup %3294  ;;  %v2293_v4 = vld [vmem:[#allocation5 + $0x244] sm:$0xff] }
0x1b94   :  { %v2076_v9 = vmul.f32 0.6931472, %v3295_v8  ;;  %v2832_v8 = vld [vmem:[#allocation7 + $0x29] ss:$0 sm:$0xff] }
0x1b95   :  { %v2078_v6 = vadd.f32 1e-08, %v2067_v5 }
0x1b96   :  { %v2077_v10 = vsub.f32 0.0, %v2076_v9 }
0x1b97   :  { %3296 = vlog2.f32 %v2078_v6  ;;  %v2376_v6 = vld [vmem:[#allocation5 + $0x264] sm:$0xff] }
0x1ba4   :  { %v3297_v11 = vpop.eup %3296 }
0x1ba5   :  { %v2080_v12 = vmul.f32 0.6931472, %v3297_v11 }
0x1ba7   :  { %v2081_v13 = vadd.f32 %v2080_v12, %v2077_v10 }
0x1ba9   :  { %v2082_v14 = vsel %vm697_vm3, %v2081_v13, -inf }
0x1baa   :  { %2083 = vmax.xlane.f32.xlu1 %v2082_v14  ;;  %v2374_v14 = vld [vmem:[#allocation5 + $0x254] sm:$0xff] }
0x1c33   :  { %v2084_v16 = vpop.xlane.xlu1 %2083 }
0x1c34   :  { %v2085_v17 = vsub.f32 %v2081_v13, %v2084_v16  ;;  %v2375_v13 = vld [vmem:[#allocation5 + $0x25c] sm:$0xff]  ;;  %v2373_v16 = vld [vmem:[#allocation5 + $0x24c] sm:$0xff] }
0x1c36   :  { %v2086_v18 = vmul.f32 1.442695, %v2085_v17  ;;  %v2459_v17 = vld [vmem:[#allocation5 + $0x284] sm:$0xff] }
0x1c38   :  { %3298 = vpow2.f32 %v2086_v18  ;;  %v2835_v18 = vld [vmem:[#allocation7 + $0x2a] ss:$0 sm:$0xff] }
0x1c45   :  { %v3299_v19 = vpop.eup %3298 }
0x1c46   :  { %v2088_v21 = vsel %vm697_vm3, %v3299_v19, 0.0 }
0x1c47   :  { %2089 = vadd.xlane.f32.xlu0 %v2088_v21 }
0x1cd0   :  { %v2090_v24 = vpop.xlane.xlu0 %2089 }
0x1cd1   :  { %3300 = vrcp.f32 %v2090_v24  ;;  %v2458_v24 = vld [vmem:[#allocation5 + $0x27c] sm:$0xff] }
0x1cde   :  { %v3301_v26 = vpop.eup %3300 }
0x1cdf   :  { %v3678_v27 = vmul.f32 %v3301_v26, %v3299_v19  ;;  %v2456_v26 = vld [vmem:[#allocation5 + $0x26c] sm:$0xff] }
0x1ce1   :  { %2094 = vrot.lane.b32.xlu1 %v3678_v27, %s3409_s9 }
0x1d53   :  { %v2095_v28 = vpop.permute.xlu1 %2094 }
0x1d54   :  { %v2097_v29 = vsel %vm588_vm2, %v3660_v35, %v2095_v28  ;;  %v2837_v28 = vld [vmem:[#allocation7 + $0x2b] ss:$0 sm:$0xff] }
0x1d55   :  { %3160 = vmatmul.mubr.msk.f32.vlgmr.msra.gmra.mxu1 %vm758_vm4, %v2097_v29  ;;  %vm1389_vm4 = vcmask 1048544  }
0x1d56   :  { %3184 = vmatprep.mubr.msk.f32.mxu1 %vm3408_vm0, %v3407_v0  ;;  %3177 = vmatpush3.msra.mxu1 %v2376_v6 }
0x1d57   :  { %3178 = vmatprep.subr.mxu1 %v3407_v0 }
0x1d58   :  { %3179 = vmatpush3.msra.mxu1 %v2375_v13 }
0x1d59   :  { %3180 = vmatprep.subr.mxu1 %v3407_v0 }
0x1d5a   :  { %3181 = vmatpush3.msra.mxu1 %v2374_v14 }
0x1d5b   :  { %3182 = vmatprep.subr.mxu1 %v3407_v0 }
0x1d5c   :  { %3183 = vmatpush3.msra.mxu1 %v2373_v16 }
0x1d5d   :  { %3198 = vmatprep.subr.mxu1 %v3407_v0 }
0x1e15   :  { %v2175_v31 = vpop.f32.mrf.mxu1 }
0x1e16   :  { %v2176_v32 = vadd.f32 %v2828_v30, %v2175_v31 }
0x1e17   :  { %v3161_v33 = vpop.f32.mrf.mxu1 }
0x1e18   :  { %v2830_v34 = vmul.f32 -1.442695, %v2176_v32  ;;  %v2541_v33 = vld [vmem:[#allocation5 + $0x29c] sm:$0xff] }
0x1e1a   :  { %3302 = vpow2.f32 %v2830_v34  ;;  %v2540_v34 = vld [vmem:[#allocation5 + $0x294] sm:$0xff] }
0x1e27   :  { %v3303_v37 = vpop.eup %3302 }
0x1e28   :  { %v2182_v38 = vadd.f32 1.0, %v3303_v37  ;;  %v2539_v37 = vld [vmem:[#allocation5 + $0x28c] sm:$0xff] }
0x1e2a   :  { %3304 = vrcp.f32 %v2182_v38  ;;  %v2625_v38 = vld [vmem:[#allocation5 + $0x2c4] sm:$0xff] }
0x1e37   :  { %v3305_v39 = vpop.eup %3304 }
0x1e38   :  { %v2185_v40 = vadd.f32 1e-08, %v3305_v39  ;;  %v2839_v39 = vld [vmem:[#allocation7 + $0x2c] ss:$0 sm:$0xff] }
0x1e3a   :  { %3306 = vrsqrt.f32 %v2185_v40  ;;  %vm2190_vm11 = vcmp.eq.f32.partialorder %v2185_v40, inf  ;;  %v2193_v43 = vand.u32 2147483648, %v2185_v40  ;;  %vm2192_vm12 = vcmp.eq.f32.partialorder %v2185_v40, 0.0 }
0x1e3b   :  { %3308 = vlog2.f32 %v3549_v3 }
0x1e3c   :  { %3310 = vlog2.f32 %v2185_v40 }
0x1e47   :  { %v3307_v41 = vpop.eup %3306 }
0x1e48   :  { %v2189_v42 = vmul.f32 %v3307_v41, %v2185_v40 }
0x1e4a   :  { %v2191_v44 = vsel %vm2190_vm11, %v2185_v40, %v2189_v42 }
0x1e4b   :  { %v2194_v45 = vsel %vm2192_vm12, %v2193_v43, %v2191_v44  ;;  %v2624_v44 = vld [vmem:[#allocation5 + $0x2bc] sm:$0xff] }
0x1e4c   :  { %2198 = vrot.lane.b32.xlu0 %v2194_v45, %s3410_s10  ;;  %v2623_v45 = vld [vmem:[#allocation5 + $0x2b4] sm:$0xff] }
0x1e50   :  { %2715 = vrot.lane.b32.xlu0 %v3660_v35, %s3411_s0  ;;  %v2831_v35 = vld [vmem:[%s3769_s2 + $0x8] sm:$0xff]  ;;  %s3415_s2 = smov 4  }
0x1e54   :  { %1376 = vrot.lane.b32.xlu0 %v3529_v36, %s3412_s15 }
0x1e58   :  { %2720 = vrot.lane.b32.xlu0 %v2067_v5, %s3412_s15  ;;  %v2292_v5 = vld [vmem:[#allocation5 + $0x23c] sm:$0xff] }
0x1e5c   :  { %1381 = vrot.lane.b32.xlu0 %v3565_v15, %s3413_s16  ;;  %v3309_v15 = vpop.eup %3308 }
0x1e5d   :  { %v840_v51 = vmul.f32 0.6931472, %v3309_v15  ;;  %v3311_v52 = vpop.eup %3310  ;;  %v2843_v15 = vld [vmem:[#allocation7 + $0x2e] ss:$0 sm:$0xff] }
0x1ebe   :  { %v2199_v48 = vpop.permute.xlu0 %2198 }
0x1ebf   :  { %v2201_v50 = vmul.f32 %v2831_v35, %v2199_v48 }
0x1ec1   :  { %v2202_v36 = vadd.f32 %v2201_v50, %v2176_v32 }
0x1ec3   :  { %2724 = vrot.lane.b32.xlu0 %v2202_v36, %s3413_s16  ;;  %2204 = vrot.lane.b32.xlu1 %v2202_v36, %s3405_s24 }
0x1ec7   :  { %1406 = vrot.lane.b32.xlu0 %v3524_v20, %s3414_s19  ;;  %1370 = vrot.lane.b32.xlu1 %v3516_v7, %s3411_s0  ;;  %v2187_v20 = vmul.f32 0.6931472, %v3311_v52  ;;  %v3707_v7 = vpop.permute.xlu0 %2715 }
0x1ecb   :  { %1386 = vrot.lane.b32.xlu1 %v3537_v55, %s3410_s10  ;;  %v1377_v3 = vpop.permute.xlu0 %1376 }
0x1ecf   :  { %2728 = vrot.lane.b32.xlu1 %v3678_v27, %s3410_s10  ;;  %v3709_v55 = vpop.permute.xlu0 %2720 }
0x1ed3   :  { %1394 = vrot.lane.b32.xlu1 %v3546_v60, %s3415_s2 }
0x1ed7   :  { %2734 = vrot.lane.b32.xlu1 %v2176_v32, %s3415_s2 }
0x1edb   :  { %1400 = vrot.lane.b32.xlu1 %v840_v51, %s3415_s2 }
0x1edf   :  { %2739 = vrot.lane.b32.xlu1 %v2187_v20, %s3415_s2 }
0x1ee3   :  { %2744 = vrot.lane.b32.xlu1 %v3668_v49, %s3414_s19  ;;  %v1382_v49 = vpop.permute.xlu0 %1381 }
0x1f35   :  { %v2205_v53 = vpop.permute.xlu1 %2204  ;;  %v3723_v59 = vpop.permute.xlu0 %2724 }
0x1f36   :  { %v2207_v54 = vsel %vm697_vm3, %v3678_v27, %v2205_v53  ;;  %vm1397_vm3 = vcmask 64544   ;;  %v2542_v27 = vld [vmem:[#allocation5 + $0x2a4] sm:$0xff] }
0x1f37   :  { %3167 = vmatmul.mubr.msk.f32.vlgmr.msra.gmra.mxu0 %vm867_vm8, %v2207_v54 }
0x1f38   :  { %3173 = vmatprep.mubr.msk.f32.mxu0 %vm3408_vm0, %v3407_v0  ;;  %3170 = vmatpush3.msra.mxu0 %v2293_v4 }
0x1f39   :  { %v1371_v60 = vpop.permute.xlu1 %1370  ;;  %v1407_v63 = vpop.permute.xlu0 %1406  ;;  %3171 = vmatprep.subr.mxu0 %v3407_v0 }
0x1f3a   :  { %1374 = vst.msk [vmem:[#allocation8] sm:$0xff] %vm1373_vm13, %v1371_v60  ;;  %3172 = vmatpush3.msra.mxu0 %v2292_v5 }
0x1f3b   :  { %1380 = vst.msk [vmem:[#allocation8] sm:$0xff] %vm1379_vm14, %v1377_v3  ;;  %3187 = vmatprep.subr.mxu0 %v3407_v0 }
0x1f3c   :  { %1385 = vst.msk [vmem:[#allocation8] sm:$0xff] %vm1384_vm15, %v1382_v49 }
0x1f3d   :  { %v1387_v56 = vpop.permute.xlu1 %1386 }
0x1f3e   :  { %1390 = vst.msk [vmem:[#allocation8] sm:$0xff] %vm1389_vm4, %v1387_v56 }
0x1f3f   :  { %1392 = vst.msk [vmem:[#allocation8 + $0x8] sm:$0xff] %vm1391_vm5, %v1387_v56 }
0x1f41   :  { %v3720_v57 = vpop.permute.xlu1 %2728 }
0x1f42   :  { %2732 = vst.msk [vmem:[#allocation8 + $0x18] sm:$0xff] %vm1391_vm5, %v3720_v57 }
0x1f45   :  { %v1395_v58 = vpop.permute.xlu1 %1394 }
0x1f46   :  { %1398 = vst.msk [vmem:[#allocation8 + $0x8] sm:$0xff] %vm1397_vm3, %v1395_v58 }
0x1f49   :  { %v2735_v61 = vpop.permute.xlu1 %2734 }
0x1f4a   :  { %2737 = vst.msk [vmem:[#allocation8 + $0x18] sm:$0xff] %vm1397_vm3, %v2735_v61 }
0x1f4d   :  { %v1401_v62 = vpop.permute.xlu1 %1400 }
0x1f4e   :  { %1404 = vst.msk [vmem:[#allocation8 + $0x8] sm:$0xff] %vm1403_vm6, %v1401_v62 }
0x1f4f   :  { %1410 = vst.msk [vmem:[#allocation8 + $0x8] sm:$0xff] %vm1409_vm7, %v1407_v63 }
0x1f51   :  { %v2740_v1 = vpop.permute.xlu1 %2739 }
0x1f52   :  { %2742 = vst.msk [vmem:[#allocation8 + $0x18] sm:$0xff] %vm1403_vm6, %v2740_v1 }
0x1f55   :  { %v2745_v2 = vpop.permute.xlu1 %2744 }
0x1f56   :  { %2747 = vst.msk [vmem:[#allocation8 + $0x18] sm:$0xff] %vm1409_vm7, %v2745_v2 }
0x1ff7   :  { %v2287_v9 = vpop.f32.mrf.mxu0 }
0x1ff8   :  { %v2288_v10 = vadd.f32 %v2832_v8, %v2287_v9 }
0x1ff9   :  { %v3168_v11 = vpop.f32.mrf.mxu0 }
0x1ffa   :  { %v2291_v12 = vmax.f32 %v2288_v10, 0.0 }
0x1ffc   :  { %3174 = vmatmul.mubr.msk.f32.vlgmr.msra.gmra.mxu0 %vm588_vm2, %v2291_v12 }
0x1ffd   :  { %3195 = vmatprep.mubr.msk.f32.mxu0 %vm3408_vm0, %v3407_v0  ;;  %3188 = vmatpush3.msra.mxu0 %v2459_v17 }
0x1ffe   :  { %3189 = vmatprep.subr.mxu0 %v3407_v0 }
0x1fff   :  { %3190 = vmatpush3.msra.mxu0 %v2458_v24 }
0x2000   :  { %3191 = vmatprep.subr.mxu0 %v3407_v0 }
0x2001   :  { %3192 = vmatpush3.msra.mxu0 %v2457_v25 }
0x2002   :  { %3193 = vmatprep.subr.mxu0 %v3407_v0 }
0x2003   :  { %3194 = vmatpush3.msra.mxu0 %v2456_v26 }
0x2004   :  { %3209 = vmatprep.subr.mxu0 %v3407_v0 }
0x20bc   :  { %v2368_v19 = vpop.f32.mrf.mxu0 }
0x20bd   :  { %v2369_v21 = vadd.f32 %v2835_v18, %v2368_v19 }
0x20be   :  { %v3175_v22 = vpop.f32.mrf.mxu0 }
0x20bf   :  { %v2372_v23 = vmax.f32 %v2369_v21, 0.0 }
0x20c1   :  { %3185 = vmatmul.mubr.msk.f32.vlgmr.msra.gmra.mxu1 %vm72_vm1, %v2372_v23 }
0x20c2   :  { %3206 = vmatprep.mubr.msk.f32.mxu1 %vm3408_vm0, %v3407_v0  ;;  %3199 = vmatpush3.msra.mxu1 %v2542_v27 }
0x20c3   :  { %3200 = vmatprep.subr.mxu1 %v3407_v0 }
0x20c4   :  { %3201 = vmatpush3.msra.mxu1 %v2541_v33 }
0x20c5   :  { %3202 = vmatprep.subr.mxu1 %v3407_v0 }
0x20c6   :  { %3203 = vmatpush3.msra.mxu1 %v2540_v34 }
0x20c7   :  { %3204 = vmatprep.subr.mxu1 %v3407_v0 }
0x20c8   :  { %3205 = vmatpush3.msra.mxu1 %v2539_v37 }
0x2181   :  { %v2451_v29 = vpop.f32.mrf.mxu1 }
0x2182   :  { %v2452_v30 = vadd.f32 %v2837_v28, %v2451_v29 }
0x2183   :  { %v3186_v31 = vpop.f32.mrf.mxu1 }
0x2184   :  { %v2455_v32 = vmax.f32 %v2452_v30, 0.0 }
0x2186   :  { %3196 = vmatmul.mubr.msk.f32.vlgmr.msra.gmra.mxu0 %vm72_vm1, %v2455_v32 }
0x2187   :  { %3217 = vmatprep.mubr.msk.f32.mxu0 %vm3408_vm0, %v3407_v0  ;;  %3210 = vmatpush3.msra.mxu0 %v2625_v38 }
0x2188   :  { %3211 = vmatprep.subr.mxu0 %v3407_v0 }
0x2189   :  { %3212 = vmatpush3.msra.mxu0 %v2624_v44 }
0x218a   :  { %3213 = vmatprep.subr.mxu0 %v3407_v0 }
0x218b   :  { %3214 = vmatpush3.msra.mxu0 %v2623_v45 }
0x218c   :  { %3215 = vmatprep.subr.mxu0 %v3407_v0 }
0x218d   :  { %3216 = vmatpush3.msra.mxu0 %v2622_v46 }
0x2246   :  { %v2534_v40 = vpop.f32.mrf.mxu0 }
0x2247   :  { %v2535_v41 = vadd.f32 %v2839_v39, %v2534_v40 }
0x2248   :  { %v3197_v42 = vpop.f32.mrf.mxu0 }
0x2249   :  { %v2538_v43 = vmax.f32 %v2535_v41, 0.0 }
0x224b   :  { %3207 = vmatmul.mubr.msk.f32.vlgmr.msra.gmra.mxu1 %vm72_vm1, %v2538_v43 }
0x230b   :  { %v2617_v35 = vpop.f32.mrf.mxu1 }
0x230c   :  { %v2618_v48 = vadd.f32 %v2841_v47, %v2617_v35 }
0x230d   :  { %v3208_v50 = vpop.f32.mrf.mxu1 }
0x230e   :  { %v2621_v36 = vmax.f32 %v2618_v48, 0.0 }
0x2310   :  { %3218 = vmatmul.mubr.msk.f32.vlgmr.msra.gmra.mxu0 %vm72_vm1, %v2621_v36 }
0x23d0   :  { %v2700_v51 = vpop.f32.mrf.mxu0 }
0x23d1   :  { %v2701_v52 = vadd.f32 %v2843_v15, %v2700_v51 }
0x23d2   :  { %v3219_v20 = vpop.f32.mrf.mxu0 }
0x23d3   :  { %v2704_v3 = vmax.f32 %v2701_v52, 0.0  ;;  %v2845_v53 = vmul.f32 -1.442695, %v2701_v52 }
0x23d5   :  { %3312 = vpow2.f32 %v2845_v53  ;;  %2712 = vst.msk [vmem:[#allocation8 + $0x10] sm:$0xff] %vm72_vm1, %v2704_v3 }
0x23e2   :  { %v3313_v54 = vpop.eup %3312 }
0x23e3   :  { %v2708_v60 = vadd.f32 1.0, %v3313_v54 }
0x23e5   :  { %3314 = vrcp.f32 %v2708_v60 }
0x23f2   :  { %v3315_v0 = vpop.eup %3314 }
0x23f3   :  { %2713 = vst.msk [vmem:[#allocation8 + $0x10] sm:$0xff] %vm1366_vm9, %v3315_v0 }
0x23f4   :  { %2714 = vst.msk [vmem:[#allocation8 + $0x10] sm:$0xff] %vm1368_vm10, %v3315_v0 }
0x23f5   :  { %2718 = vst.msk [vmem:[#allocation8 + $0x10] sm:$0xff] %vm1373_vm13, %v3707_v7 }
0x23f6   :  { %2723 = vst.msk [vmem:[#allocation8 + $0x10] sm:$0xff] %vm1379_vm14, %v3709_v55 }
0x23f7   :  { %2727 = vst.msk [vmem:[#allocation8 + $0x10] sm:$0xff] %vm1384_vm15, %v3723_v59 }
0x23f8   :  { %2731 = vst.msk [vmem:[#allocation8 + $0x10] sm:$0xff] %vm1389_vm4, %v3720_v57 }
0x23f9   :  { %3387 = shalt.err (!%p3384_p5)
}
0x23fa   :  { %s3417_s23 = smov 256  }
0x23fb   :  { %2759 = dma.vmem_to_hbm [thread:$0]  %s2754_s21, 512, %s3772_s5, [#allocation4], %s3417_s23, %s3417_s23, %s3409_s9  }
0x23fc   :  { %3400 = dma.done.wait [#allocation4], 512  }
0x23fd   :  { %3401 = vsyncadd [#allocation4], 4294966784 }
0x23fe   :  { %2763 = vsyncpa [#allocation3], 1 }
0x23ff   :  { %2764 = vsyncpa [#allocation6], 1 }
0x2400   :  { %2765 = vsyncpa [#allocation4], 1 }

</bundles_post_ra>
